<compile_context>
chip_gen: v7x
topology: tpu7x:2x2x1
jax: 0.10.0
libtpu: 0.0.40
codegen_flags: <defaults>
</compile_context>

<pallas_src>
import functools

import numpy as np
import jax
import jax.numpy as jnp
from jax import lax
from jax.experimental import pallas as pl
from jax.experimental.pallas import tpu as pltpu


def _round_up(a, b):
    return -(-a // b) * b


def lmi_kernel(a_ref, b_ref, out_ref, acc_ref, *,
               preterm, inv_n, bin_step, bin_min, num_bin,
               block_p, chunk, n_chunks, steps, p_real, use_bf16_mxu):
    """One grid step: a (BLOCK_P, N) slab of patches -> (NB, NB) partial MI sums.

    a_ref  : (BLOCK_P, N)  y_true patches (patch elements on lanes)
    b_ref  : (BLOCK_P, N)  y_pred patches
    out_ref: (1, 128)      lane-dense per-core partial sum
    acc_ref: (NB, NB)      VMEM accumulator of sum_p pab*log(pab/papb + eps)
    """
    c = pl.program_id(0)          # core-split axis ("parallel"; 2 on dual-TC parts, else 1)
    i = pl.program_id(1)          # patch-block reduction axis ("arbitrary")

    @pl.when(i == 0)
    def _init():
        acc_ref[...] = jnp.zeros_like(acc_ref)
        out_ref[...] = jnp.zeros_like(out_ref)     # defensive init (revisit robustness)

    # Bin centers from an iota -> compile-time constants, no DMA'd input.
    bins = lax.broadcasted_iota(jnp.int32, (1, num_bin, 1), 1).astype(jnp.float32)
    vbc = bins * bin_step + bin_min                                   # (1, NB, 1)

    block_base = (c * steps + i) * block_p

    def chunk_body(j, carry):
        off = j * chunk
        if not isinstance(off, int):
            off = pl.multiple_of(off, chunk)
        a = a_ref[pl.ds(off, chunk), :]                               # (chunk, N)
        b = b_ref[pl.ds(off, chunk), :]

        # Soft histograms, bins on the 2nd-minor axis / elements on lanes: (chunk, NB, N).
        # Normalization uses an EXACT reciprocal (small tensor) -> bit-close to reference.
        wa = jnp.exp(-preterm * jnp.square(a[:, None, :] - vbc))
        ia = wa * (1.0 / jnp.sum(wa, axis=1, keepdims=True))
        wb = jnp.exp(-preterm * jnp.square(b[:, None, :] - vbc))
        ib = wb * (1.0 / jnp.sum(wb, axis=1, keepdims=True))

        # bf16 operands for the MXU-native batched matmul; f32 accumulation.
        if use_bf16_mxu:
            ia_m = ia.astype(jnp.bfloat16)
            ib_m = ib.astype(jnp.bfloat16)
        else:
            ia_m, ib_m = ia, ib

        # Joint distribution per patch: pab[p,k,l] = (1/N) * sum_n Ia[p,k,n]*Ib[p,l,n].
        pab = jnp.einsum('pkn,pln->pkl', ia_m, ib_m,
                         preferred_element_type=jnp.float32) * inv_n  # (chunk, NB, NB)

        # Marginals as margins of pab (exact: Ia/Ib are exactly bin-normalized).
        pa = jnp.sum(pab, axis=2, keepdims=True)                      # (chunk, NB, 1)
        pb = jnp.sum(pab, axis=1, keepdims=True)                      # (chunk, 1, NB)
        papb = pa * pb + 1e-6

        # Exact f32 divide (feeds the log) to match the PyTorch reference.
        contrib = pab * jnp.log(pab / papb + 1e-6)

        base = block_base + off

        @pl.when(base + chunk <= p_real)       # interior blocks: no masking at all
        def _acc_fast():
            acc_ref[...] = acc_ref[...] + jnp.sum(contrib, axis=0)

        @pl.when(base + chunk > p_real)        # only the boundary block pays the mask
        def _acc_masked():
            gpid = lax.broadcasted_iota(jnp.int32, (chunk, 1, 1), 0) + base
            masked = jnp.where(gpid < p_real, contrib, 0.0)
            acc_ref[...] = acc_ref[...] + jnp.sum(masked, axis=0)

        return carry

    if n_chunks == 1:
        chunk_body(0, 0)
    else:
        lax.fori_loop(0, n_chunks, chunk_body, 0)

    @pl.when(i == steps - 1)
    def _finalize():
        part = jnp.sum(acc_ref[...], keepdims=True)                   # (1, 1)
        out_ref[...] = jnp.broadcast_to(part, out_ref.shape)          # lane-dense store


def local_mutual_information(y_true, y_pred, *, sigma_ratio=1.0, minval=0.0,
                             maxval=1.0, num_bin=32, patch_size=5,
                             max_block_p=None, num_split=None, use_bf16_mxu=True):
    """Pallas implementation of LocalMutualInformation.forward (3-D inputs, NCDHW)."""
    assert y_true.ndim == 5 and y_pred.shape == y_true.shape, "expects (B,C,X,Y,Z)"

    # --- parameter setup (mirrors __init__) ----------------------------------
    bin_centers = np.linspace(minval, maxval, num=num_bin)
    sigma = np.mean(np.diff(bin_centers)) * sigma_ratio
    preterm = float(1.0 / (2.0 * sigma ** 2))
    bin_step = float((maxval - minval) / (num_bin - 1))

    # --- generation-aware tiling defaults -------------------------------------
    try:
        vmem_cap = int(pltpu.get_tpu_info().vmem_capacity_bytes)
    except Exception:
        vmem_cap = 64 * 1024 * 1024                    # conservative (v7x-sized) fallback
    vmem_limit = int(min(96 * 2 ** 20, max(32 * 2 ** 20, (vmem_cap * 3) // 4)))
    if max_block_p is None:
        max_block_p = 1024 if vmem_cap >= 100 * 2 ** 20 else 512   # v5e/v6e vs v7x
    if num_split is None:
        try:
            num_split = 2 if int(getattr(jax.devices()[0], "num_cores", 1)) >= 2 else 1
        except Exception:
            num_split = 1

    # --- glue: clamp, pad, extract non-overlapping patches --------------------
    yt = jnp.clip(y_true.astype(jnp.float32), 0.0, maxval)
    yp = jnp.clip(y_pred.astype(jnp.float32), 0.0, maxval)

    B, C, X, Y, Z = y_true.shape
    x_r, y_r, z_r = (-X) % patch_size, (-Y) % patch_size, (-Z) % patch_size
    pads = ((0, 0), (0, 0),
            (x_r // 2, x_r - x_r // 2),
            (y_r // 2, y_r - y_r // 2),
            (z_r // 2, z_r - z_r // 2))
    yt = jnp.pad(yt, pads)
    yp = jnp.pad(yp, pads)
    Xp, Yp, Zp = X + x_r, Y + y_r, Z + z_r

    # TODO(synk): for very large volumes, move this reshape/transpose pre-pass into the
    #             kernel via sub-volume BlockSpecs to avoid an extra HBM read+write pass.
    def to_patches(v):
        v = v.reshape(B, C, Xp // patch_size, patch_size,
                      Yp // patch_size, patch_size,
                      Zp // patch_size, patch_size)
        v = v.transpose(0, 1, 2, 4, 6, 3, 5, 7)
        return v.reshape(-1, patch_size ** 3)

    ta = to_patches(yt)                     # (P, N)
    tb = to_patches(yp)
    P, N = ta.shape

    # --- tiling: big DMA blocks, small compute chunks, optional 2-way core split
    per_core = -(-P // num_split)
    BLOCK_P = min(_round_up(per_core, 8), _round_up(max(8, max_block_p), 8))
    CHUNK = BLOCK_P if BLOCK_P < 64 else 64
    BLOCK_P = _round_up(BLOCK_P, CHUNK)
    n_chunks = BLOCK_P // CHUNK
    steps = -(-per_core // BLOCK_P)
    P_pad = num_split * steps * BLOCK_P
    if P_pad > P:                                              # zero patches, masked in-kernel
        ta = jnp.pad(ta, ((0, P_pad - P), (0, 0)))
        tb = jnp.pad(tb, ((0, P_pad - P), (0, 0)))

    kernel = functools.partial(
        lmi_kernel,
        preterm=preterm, inv_n=float(1.0 / (patch_size ** 3)),
        bin_step=bin_step, bin_min=float(minval), num_bin=num_bin,
        block_p=BLOCK_P, chunk=CHUNK, n_chunks=n_chunks, steps=steps,
        p_real=P, use_bf16_mxu=use_bf16_mxu)

    out = pl.pallas_call(
        kernel,
        out_shape=jax.ShapeDtypeStruct((1, num_split * 128), jnp.float32),
        grid_spec=pltpu.PrefetchScalarGridSpec(
            num_scalar_prefetch=0,
            grid=(num_split, steps),
            in_specs=[
                pl.BlockSpec((BLOCK_P, N), lambda c, i: (c * steps + i, 0)),
                pl.BlockSpec((BLOCK_P, N), lambda c, i: (c * steps + i, 0)),
            ],
            out_specs=pl.BlockSpec((1, 128), lambda c, i: (0, c)),
            scratch_shapes=[pltpu.VMEM((num_bin, num_bin), jnp.float32)],
        ),
        compiler_params=pltpu.CompilerParams(
            dimension_semantics=("parallel", "arbitrary"),
            vmem_limit_bytes=vmem_limit),
    )(ta, tb)

    partials = out.reshape(num_split, 128)[:, 0]               # one partial sum per core
    return -(jnp.sum(partials) / P)                            # forward() returns -mean(MI)


def _reference(y_true, y_pred, *, sigma_ratio=1.0, minval=0.0, maxval=1.0,
               num_bin=32, patch_size=5):
    """Pure-jnp replication of the PyTorch 3-D path (for verification)."""
    bin_centers = np.linspace(minval, maxval, num=num_bin)
    sigma = np.mean(np.diff(bin_centers)) * sigma_ratio
    preterm = 1.0 / (2.0 * sigma ** 2)
    vbc = jnp.asarray(bin_centers, jnp.float32).reshape(1, 1, num_bin)

    yt = jnp.clip(y_true.astype(jnp.float32), 0.0, maxval)
    yp = jnp.clip(y_pred.astype(jnp.float32), 0.0, maxval)
    B, C, X, Y, Z = y_true.shape
    x_r, y_r, z_r = (-X) % patch_size, (-Y) % patch_size, (-Z) % patch_size
    pads = ((0, 0), (0, 0), (x_r // 2, x_r - x_r // 2),
            (y_r // 2, y_r - y_r // 2), (z_r // 2, z_r - z_r // 2))
    yt, yp = jnp.pad(yt, pads), jnp.pad(yp, pads)
    Xp, Yp, Zp = X + x_r, Y + y_r, Z + z_r

    def to_patches(v):
        v = v.reshape(B, C, Xp // patch_size, patch_size, Yp // patch_size,
                      patch_size, Zp // patch_size, patch_size)
        v = v.transpose(0, 1, 2, 4, 6, 3, 5, 7)
        return v.reshape(-1, patch_size ** 3, 1)

    ta, tb = to_patches(yt), to_patches(yp)
    Ia = jnp.exp(-preterm * jnp.square(ta - vbc))
    Ia = Ia / jnp.sum(Ia, axis=-1, keepdims=True)
    Ib = jnp.exp(-preterm * jnp.square(tb - vbc))
    Ib = Ib / jnp.sum(Ib, axis=-1, keepdims=True)
    pab = jnp.einsum('pnb,pnc->pbc', Ia, Ib) / (patch_size ** 3)
    pa = jnp.mean(Ia, axis=1, keepdims=True)
    pb_ = jnp.mean(Ib, axis=1, keepdims=True)
    papb = jnp.einsum('pab,pac->pbc', pa, pb_) + 1e-6
    mi = jnp.sum(pab * jnp.log(pab / papb + 1e-6), axis=(1, 2))
    return -jnp.mean(mi)


if __name__ == "__main__":
    key = jax.random.PRNGKey(0)

    cases = [
        # (B,C,X,Y,Z), kwargs                           -- exercises:
        ((2, 1, 8, 8, 8), {}),                                            # spatial padding, auto core split
        ((1, 1, 15, 15, 12), {"max_block_p": 8, "num_split": 2}),         # patch padding + mask, multi-step acc, 2-way split
        ((2, 1, 20, 20, 20), {"num_split": 1}),                           # multi-chunk inner loop (BLOCK_P=128, CHUNK=64)
        ((1, 1, 25, 25, 25), {"max_block_p": 64, "num_split": 1}),        # steps>1 + boundary mask on single split
    ]

    for idx, (shape, kw) in enumerate(cases):
        ka, kb = jax.random.split(jax.random.fold_in(key, idx))
        y_true = jax.random.uniform(ka, shape, dtype=jnp.float32)
        y_pred = jax.random.uniform(kb, shape, dtype=jnp.float32)

        out = jax.block_until_ready(local_mutual_information(y_true, y_pred, **kw))
        ref = jax.block_until_ready(_reference(y_true, y_pred))

        assert jnp.isfinite(out), ("non-finite output", shape)
        # Normalization / papb divides are exact now; remaining deviation is the bf16 MXU
        # operands of the joint-histogram einsum (~1e-4 in the final scalar).
        assert jnp.allclose(out, ref, rtol=3e-3, atol=1e-3), (shape, float(out), float(ref))

    print("KERNEL_OK")
</pallas_src>

<mosaic_0001>
module attributes {stable_mosaic.version = 11 : i64} {
  func.func @lmi_kernel(%arg0: i32, %arg1: i32, %arg2: memref<16x125xf32, #tpu.memory_space<vmem>>, %arg3: memref<16x125xf32, #tpu.memory_space<vmem>>, %arg4: memref<1x128xf32, #tpu.memory_space<vmem>>, %arg5: memref<32x32xf32, #tpu.memory_space<vmem>>) attributes {dimension_semantics = [#tpu.dimension_semantics<parallel>, #tpu.dimension_semantics<arbitrary>], iteration_bounds = array<i64: 1, 1>, scalar_prefetch = 0 : i64, scratch_operands = 1 : i64, tpu.core_type = #tpu.core_type<tc>, window_params = [{transform_indices = @transform_0, window_bounds = array<i64: 16, 125>}, {transform_indices = @transform_1, window_bounds = array<i64: 16, 125>}, {transform_indices = @transform_2, window_bounds = array<i64: 1, 128>}]} {
    %c0_i32 = arith.constant 0 : i32
    %0 = arith.cmpi eq, %arg1, %c0_i32 : i32
    %1 = arith.extui %0 : i1 to i32
    %c0_i32_0 = arith.constant 0 : i32
    %2 = arith.cmpi ne, %1, %c0_i32_0 : i32
    scf.if %2 {
      %cst_26 = arith.constant 0.000000e+00 : f32
      %73 = vector.broadcast %cst_26 : f32 to vector<32x32xf32>
      %c0_27 = arith.constant 0 : index
      %c0_28 = arith.constant 0 : index
      %74 = vector.load %arg5[%c0_27, %c0_28] : memref<32x32xf32, #tpu.memory_space<vmem>>, vector<32x32xf32>
      tpu.vector_store %arg5[%c0_27, %c0_28], %73 {strides = array<i32>} : memref<32x32xf32, #tpu.memory_space<vmem>>, vector<32x32xf32>,
      %cst_29 = arith.constant 0.000000e+00 : f32
      %75 = vector.broadcast %cst_29 : f32 to vector<1x128xf32>
      %c0_30 = arith.constant 0 : index
      %c0_31 = arith.constant 0 : index
      %76 = vector.load %arg4[%c0_30, %c0_31] : memref<1x128xf32, #tpu.memory_space<vmem>>, vector<1x128xf32>
      tpu.vector_store %arg4[%c0_30, %c0_31], %75 {strides = array<i32>} : memref<1x128xf32, #tpu.memory_space<vmem>>, vector<1x128xf32>,
    } else {
    }
    %3 = tpu.iota {dimensions = array<i32: 1>} : vector<1x32x1xi32>
    %4 = arith.sitofp %3 : vector<1x32x1xi32> to vector<1x32x1xf32>
    %cst = arith.constant 0.0322580636 : f32
    %5 = vector.broadcast %cst : f32 to vector<1x32x1xf32>
    %6 = arith.mulf %4, %5 : vector<1x32x1xf32>
    %cst_1 = arith.constant 0.000000e+00 : f32
    %7 = vector.broadcast %cst_1 : f32 to vector<1x32x1xf32>
    %8 = arith.addf %6, %7 : vector<1x32x1xf32>
    %c1_i32 = arith.constant 1 : i32
    %9 = arith.muli %arg0, %c1_i32 : i32
    %10 = arith.addi %9, %arg1 : i32
    %c16_i32 = arith.constant 16 : i32
    %11 = arith.muli %10, %c16_i32 : i32
    %c0 = arith.constant 0 : index
    %c0_2 = arith.constant 0 : index
    %12 = vector.load %arg2[%c0, %c0_2] : memref<16x125xf32, #tpu.memory_space<vmem>>, vector<16x125xf32>
    %c0_3 = arith.constant 0 : index
    %c0_4 = arith.constant 0 : index
    %13 = vector.load %arg3[%c0_3, %c0_4] : memref<16x125xf32, #tpu.memory_space<vmem>>, vector<16x125xf32>
    %14 = vector.shape_cast %12 : vector<16x125xf32> to vector<16x1x125xf32>
    %15 = vector.broadcast %14 : vector<16x1x125xf32> to vector<16x32x125xf32>
    %16 = vector.broadcast %8 : vector<1x32x1xf32> to vector<16x32x125xf32>
    %17 = arith.subf %15, %16 : vector<16x32x125xf32>
    %18 = arith.mulf %17, %17 : vector<16x32x125xf32>
    %cst_5 = arith.constant -4.805000e+02 : f32
    %19 = vector.broadcast %cst_5 : f32 to vector<16x32x125xf32>
    %20 = arith.mulf %19, %18 : vector<16x32x125xf32>
    %21 = math.exp %20 : vector<16x32x125xf32>
    %cst_6 = arith.constant dense<0.000000e+00> : vector<16x125xf32>
    %22 = vector.multi_reduction <add>, %21, %cst_6 [1] : vector<16x32x125xf32> to vector<16x125xf32>
    %23 = vector.shape_cast %22 : vector<16x125xf32> to vector<16x1x125xf32>
    %cst_7 = arith.constant 1.000000e+00 : f32
    %24 = vector.broadcast %cst_7 : f32 to vector<16x1x125xf32>
    %25 = arith.divf %24, %23 : vector<16x1x125xf32>
    %26 = vector.broadcast %25 : vector<16x1x125xf32> to vector<16x32x125xf32>
    %27 = arith.mulf %21, %26 : vector<16x32x125xf32>
    %28 = vector.shape_cast %13 : vector<16x125xf32> to vector<16x1x125xf32>
    %29 = vector.broadcast %28 : vector<16x1x125xf32> to vector<16x32x125xf32>
    %30 = vector.broadcast %8 : vector<1x32x1xf32> to vector<16x32x125xf32>
    %31 = arith.subf %29, %30 : vector<16x32x125xf32>
    %32 = arith.mulf %31, %31 : vector<16x32x125xf32>
    %cst_8 = arith.constant -4.805000e+02 : f32
    %33 = vector.broadcast %cst_8 : f32 to vector<16x32x125xf32>
    %34 = arith.mulf %33, %32 : vector<16x32x125xf32>
    %35 = math.exp %34 : vector<16x32x125xf32>
    %cst_9 = arith.constant dense<0.000000e+00> : vector<16x125xf32>
    %36 = vector.multi_reduction <add>, %35, %cst_9 [1] : vector<16x32x125xf32> to vector<16x125xf32>
    %37 = vector.shape_cast %36 : vector<16x125xf32> to vector<16x1x125xf32>
    %cst_10 = arith.constant 1.000000e+00 : f32
    %38 = vector.broadcast %cst_10 : f32 to vector<16x1x125xf32>
    %39 = arith.divf %38, %37 : vector<16x1x125xf32>
    %40 = vector.broadcast %39 : vector<16x1x125xf32> to vector<16x32x125xf32>
    %41 = arith.mulf %35, %40 : vector<16x32x125xf32>
    %42 = arith.truncf %27 : vector<16x32x125xf32> to vector<16x32x125xbf16>
    %43 = arith.truncf %41 : vector<16x32x125xf32> to vector<16x32x125xbf16>
    "tpu.trace_start"() <{level = 10 : i32, message = "pkn,pln->pkl"}> : () -> ()
    %cst_11 = arith.constant dense<0.000000e+00> : vector<16x32x32xf32>
    %44 = tpu.matmul %42, %43, %cst_11 {dimension_numbers = #tpu.dot_dimension_numbers<[2], [2], [1], [1], [0, 0, 0, 1, 1, 1], [0], [0]>} : vector<16x32x125xbf16>, vector<16x32x125xbf16>, vector<16x32x32xf32> -> vector<16x32x32xf32>
    "tpu.trace_stop"() : () -> ()
    %cst_12 = arith.constant 8.000000e-03 : f32
    %45 = vector.broadcast %cst_12 : f32 to vector<16x32x32xf32>
    %46 = arith.mulf %44, %45 : vector<16x32x32xf32>
    %cst_13 = arith.constant dense<0.000000e+00> : vector<16x32xf32>
    %47 = vector.multi_reduction <add>, %46, %cst_13 [2] : vector<16x32x32xf32> to vector<16x32xf32>
    %48 = vector.shape_cast %47 : vector<16x32xf32> to vector<16x32x1xf32>
    %cst_14 = arith.constant dense<0.000000e+00> : vector<16x32xf32>
    %49 = vector.multi_reduction <add>, %46, %cst_14 [1] : vector<16x32x32xf32> to vector<16x32xf32>
    %50 = vector.shape_cast %49 : vector<16x32xf32> to vector<16x1x32xf32>
    %51 = vector.broadcast %48 : vector<16x32x1xf32> to vector<16x32x32xf32>
    %52 = vector.broadcast %50 : vector<16x1x32xf32> to vector<16x32x32xf32>
    %53 = arith.mulf %51, %52 : vector<16x32x32xf32>
    %cst_15 = arith.constant 9.99999997E-7 : f32
    %54 = vector.broadcast %cst_15 : f32 to vector<16x32x32xf32>
    %55 = arith.addf %53, %54 : vector<16x32x32xf32>
    %56 = arith.divf %46, %55 : vector<16x32x32xf32>
    %cst_16 = arith.constant 9.99999997E-7 : f32
    %57 = vector.broadcast %cst_16 : f32 to vector<16x32x32xf32>
    %58 = arith.addf %56, %57 : vector<16x32x32xf32>
    %59 = math.log %58 : vector<16x32x32xf32>
    %60 = arith.mulf %46, %59 : vector<16x32x32xf32>
    %c0_i32_17 = arith.constant 0 : i32
    %61 = arith.addi %11, %c0_i32_17 : i32
    %c16_i32_18 = arith.constant 16 : i32
    %62 = arith.addi %61, %c16_i32_18 : i32
    %c16_i32_19 = arith.constant 16 : i32
    %63 = arith.cmpi sle, %62, %c16_i32_19 : i32
    %64 = arith.extui %63 : i1 to i32
    %c0_i32_20 = arith.constant 0 : i32
    %65 = arith.cmpi ne, %64, %c0_i32_20 : i32
    scf.if %65 {
      %c0_26 = arith.constant 0 : index
      %c0_27 = arith.constant 0 : index
      %73 = vector.load %arg5[%c0_26, %c0_27] : memref<32x32xf32, #tpu.memory_space<vmem>>, vector<32x32xf32>
      %cst_28 = arith.constant dense<0.000000e+00> : vector<32x32xf32>
      %74 = vector.multi_reduction <add>, %60, %cst_28 [0] : vector<16x32x32xf32> to vector<32x32xf32>
      %75 = arith.addf %73, %74 : vector<32x32xf32>
      %c0_29 = arith.constant 0 : index
      %c0_30 = arith.constant 0 : index
      %76 = vector.load %arg5[%c0_29, %c0_30] : memref<32x32xf32, #tpu.memory_space<vmem>>, vector<32x32xf32>
      tpu.vector_store %arg5[%c0_29, %c0_30], %75 {strides = array<i32>} : memref<32x32xf32, #tpu.memory_space<vmem>>, vector<32x32xf32>,
    } else {
    }
    %c16_i32_21 = arith.constant 16 : i32
    %66 = arith.addi %61, %c16_i32_21 : i32
    %c16_i32_22 = arith.constant 16 : i32
    %67 = arith.cmpi sgt, %66, %c16_i32_22 : i32
    %68 = arith.extui %67 : i1 to i32
    %c0_i32_23 = arith.constant 0 : i32
    %69 = arith.cmpi ne, %68, %c0_i32_23 : i32
    scf.if %69 {
      %73 = tpu.iota {dimensions = array<i32: 0>} : vector<16x1x1xi32>
      %74 = vector.broadcast %61 : i32 to vector<16x1x1xi32>
      %75 = arith.addi %73, %74 : vector<16x1x1xi32>
      %c16_i32_26 = arith.constant 16 : i32
      %76 = vector.broadcast %c16_i32_26 : i32 to vector<16x1x1xi32>
      %77 = arith.cmpi slt, %75, %76 : vector<16x1x1xi32>
      %cst_27 = arith.constant 0.000000e+00 : f32
      %78 = vector.shape_cast %77 : vector<16x1x1xi1> to vector<16x1x1xi1>
      %79 = vector.broadcast %78 : vector<16x1x1xi1> to vector<16x32x32xi1>
      %80 = vector.broadcast %cst_27 : f32 to vector<16x32x32xf32>
      %81 = arith.select %79, %60, %80 : vector<16x32x32xi1>, vector<16x32x32xf32>
      %c0_28 = arith.constant 0 : index
      %c0_29 = arith.constant 0 : index
      %82 = vector.load %arg5[%c0_28, %c0_29] : memref<32x32xf32, #tpu.memory_space<vmem>>, vector<32x32xf32>
      %cst_30 = arith.constant dense<0.000000e+00> : vector<32x32xf32>
      %83 = vector.multi_reduction <add>, %81, %cst_30 [0] : vector<16x32x32xf32> to vector<32x32xf32>
      %84 = arith.addf %82, %83 : vector<32x32xf32>
      %c0_31 = arith.constant 0 : index
      %c0_32 = arith.constant 0 : index
      %85 = vector.load %arg5[%c0_31, %c0_32] : memref<32x32xf32, #tpu.memory_space<vmem>>, vector<32x32xf32>
      tpu.vector_store %arg5[%c0_31, %c0_32], %84 {strides = array<i32>} : memref<32x32xf32, #tpu.memory_space<vmem>>, vector<32x32xf32>,
    } else {
    }
    %c0_i32_24 = arith.constant 0 : i32
    %70 = arith.cmpi eq, %arg1, %c0_i32_24 : i32
    %71 = arith.extui %70 : i1 to i32
    %c0_i32_25 = arith.constant 0 : i32
    %72 = arith.cmpi ne, %71, %c0_i32_25 : i32
    scf.if %72 {
      %c0_26 = arith.constant 0 : index
      %c0_27 = arith.constant 0 : index
      %73 = vector.load %arg5[%c0_26, %c0_27] : memref<32x32xf32, #tpu.memory_space<vmem>>, vector<32x32xf32>
      %74 = vector.shape_cast %73 : vector<32x32xf32> to vector<1x32x32xf32>
      %cst_28 = arith.constant dense<0.000000e+00> : vector<1xf32>
      %75 = vector.multi_reduction <add>, %74, %cst_28 [1, 2] : vector<1x32x32xf32> to vector<1xf32>
      %76 = vector.shape_cast %75 : vector<1xf32> to vector<1x1x1xf32>
      %77 = vector.extract %76[0, 0, 0] : f32 from vector<1x1x1xf32>
      %78 = vector.broadcast %77 : f32 to vector<1x1xf32>
      %79 = vector.shape_cast %78 : vector<1x1xf32> to vector<1x1xf32>
      %80 = vector.broadcast %79 : vector<1x1xf32> to vector<1x128xf32>
      %c0_29 = arith.constant 0 : index
      %c0_30 = arith.constant 0 : index
      %81 = vector.load %arg4[%c0_29, %c0_30] : memref<1x128xf32, #tpu.memory_space<vmem>>, vector<1x128xf32>
      tpu.vector_store %arg4[%c0_29, %c0_30], %80 {strides = array<i32>} : memref<1x128xf32, #tpu.memory_space<vmem>>, vector<1x128xf32>,
    } else {
    }
    return
  }
  func.func @transform_0(%arg0: i32, %arg1: i32) -> (i32, i32) {
    %c1_i32 = arith.constant 1 : i32
    %0 = arith.muli %arg0, %c1_i32 : i32
    %1 = arith.addi %0, %arg1 : i32
    %c0_i32 = arith.constant 0 : i32
    %c0_i32_0 = arith.constant 0 : i32
    return %1, %c0_i32 : i32, i32
  }
  func.func @transform_1(%arg0: i32, %arg1: i32) -> (i32, i32) {
    %c1_i32 = arith.constant 1 : i32
    %0 = arith.muli %arg0, %c1_i32 : i32
    %1 = arith.addi %0, %arg1 : i32
    %c0_i32 = arith.constant 0 : i32
    %c0_i32_0 = arith.constant 0 : i32
    return %1, %c0_i32 : i32, i32
  }
  func.func @transform_2(%arg0: i32, %arg1: i32) -> (i32, i32) {
    %c0_i32 = arith.constant 0 : i32
    %c0_i32_0 = arith.constant 0 : i32
    return %c0_i32, %arg0 : i32, i32
  }
}

</mosaic_0001>

<bundles_post_ra>
// kernel: tpu_custom_call.1
= control target key start
LH: loop header
LB: loop body
LE: loop exit
PB: predicated region body
PF: predicated region fallthrough
CT: control target
= control target key end

     0   :  { %7 = vsyncpa [#allocation4], 0  ;;  %s6899_s0 = inlined_call_operand.hbm [shape: f32[16,125], index: 0, kind: input, shape index: {}]   ;;  %s6900_s1 = inlined_call_operand.hbm [shape: f32[16,125], index: 1, kind: input, shape index: {}]   ;;  %s6901_s2 = inlined_call_operand.hbm [shape: f32[1,128], index: 2, kind: output, shape index: {}]  }
   0x1   :  { %8 = vsyncpa [#allocation7], 0 }
   0x2   :  { %9 = vsyncpa [#allocation5], 0  ;;  %s5015_s9 = smov [#allocation3]   ;;  %s4943_s13 = scalar_lea.hbm %s6899_s0, 256 }
   0x3   :  { %s19_s10 = sshll.u32 %s5015_s9, 4  ;;  %p4944_p0 = scmp.ne.s32.totalorder %s6899_s0, %s4943_s13  ;;  %s20_s10 = int_to_ptr.vmem [resolvable:$true] %s19_s10 }
   0x4   :  { %p4947_p1 = scmp.lt.u32.totalorder %s4943_s13, %s6899_s0 }
   0x6   :  { %p4949_p2 = pnand %p4947_p1, %p4944_p0 }
   0x8   :  { %4952 = shalt.err (!%p4949_p2)
}
   0x9   :  { %s4953_s18 = scalar_lea.vmem %s20_s10, 256  ;;  %p4958_p4 = scmp.lt.s32.totalorder %s20_s10, %s20_s10 }
   0xa   :  { %p4954_p3 = scmp.ne.s32.totalorder %s20_s10, %s4953_s18  ;;  %p4959_p5 = scmp.lt.s32.totalorder %s4953_s18, %s4953_s18 }
   0xc   :  { %p4960_p6 = por %p4959_p5, %p4958_p4 }
   0xe   :  { %p4961_p7 = pnand %p4960_p6, %p4954_p3 }
  0x10   :  { %4964 = shalt.err (!%p4961_p7)
}
  0x11   :  { %s5016_s19 = smov 128   ;;  %s5017_s20 = smov 8  }
  0x12   :  { %25 = dma.hbm_to_vmem [thread:$0]  %s6899_s0, 256, %s20_s10, [#allocation4], %s5016_s19, %s5016_s19, %s5017_s20  }
  0x13   :  { %s5018_s23 = smov [#allocation6]   ;;  %s4965_s27 = scalar_lea.hbm %s6900_s1, 256 }
  0x14   :  { %s35_s24 = sshll.u32 %s5018_s23, 4  ;;  %p4966_p8 = scmp.ne.s32.totalorder %s6900_s1, %s4965_s27  ;;  %s36_s24 = int_to_ptr.vmem [resolvable:$true] %s35_s24 }
  0x15   :  { %p4969_p9 = scmp.lt.u32.totalorder %s4965_s27, %s6900_s1 }
  0x17   :  { %p4971_p10 = pnand %p4969_p9, %p4966_p8 }
  0x19   :  { %4974 = shalt.err (!%p4971_p10)
}
  0x1a   :  { %s4975_s4 = scalar_lea.vmem %s36_s24, 256  ;;  %p4980_p12 = scmp.lt.s32.totalorder %s36_s24, %s36_s24 }
  0x1b   :  { %p4976_p11 = scmp.ne.s32.totalorder %s36_s24, %s4975_s4  ;;  %p4981_p13 = scmp.lt.s32.totalorder %s4975_s4, %s4975_s4 }
  0x1d   :  { %p4982_p0 = por %p4981_p13, %p4980_p12 }
  0x1f   :  { %p4983_p1 = pnand %p4982_p0, %p4976_p11 }
  0x21   :  { %4986 = shalt.err (!%p4983_p1)
}
  0x22   :  { %41 = dma.hbm_to_vmem [thread:$0]  %s6900_s1, 256, %s36_s24, [#allocation7], %s5016_s19, %s5016_s19, %s5017_s20  }
  0x23   :  { %5009 = dma.done.wait [#allocation4], 256  }
  0x24   :  { %5010 = vsyncadd [#allocation4], 4294967040 }
  0x25   :  { %5011 = dma.done.wait [#allocation7], 256  }
  0x26   :  { %5012 = vsyncadd [#allocation7], 4294967040  ;;  %v63_v0 = vlaneseq  ;;  %v5019_v1 = vmov 1966171168   ;;  %v84_v13 = vld [vmem:[#allocation6] sm:$0xff]  ;;  %v82_v14 = vld [vmem:[#allocation3] sm:$0xff] }
  0x27   :  { %v90_v2 = vunpack.c.l.s4 %v5019_v1  ;;  %v893_v15 = vcombine.high %v84_v13, %v84_v13  ;;  %v88_v18 = vcombine.high %v82_v14, %v82_v14  ;;  %vm586_vm0 = vcmask 1022976   ;;  %s5021_s1 = smov [#allocation8]  }
  0x28   :  { %v64_v3 = vshrl.u32 %v63_v0, 7  ;;  %vm57_vm1 = vcmask 261120   ;;  %s4088_s6 = sshll.u32 %s5021_s1, 4  ;;  %s4089_s6 = int_to_ptr.vmem [resolvable:$true] %s4088_s6 }
  0x29   :  { %v91_v4 = vunpack.c.0.s8 %v90_v2  ;;  %s4987_s8 = scalar_lea.vmem %s4089_s6, 16  ;;  %s4991_s9 = scalar_lea.vmem %s4089_s6, 32 }
  0x2a   :  { %v65_v5 = vadd.s32 8, %v64_v3  ;;  %v66_v6 = vadd.s32 16, %v64_v3  ;;  %v67_v7 = vadd.s32 24, %v64_v3  ;;  %v68_v9 = vcvt.s32.f32 %v64_v3  ;;  %p4988_p2 = scmp.ne.s32.totalorder %s4089_s6, %s4987_s8  ;;  %p4992_p3 = scmp.lt.s32.totalorder %s4089_s6, %s4089_s6 }
  0x2b   :  { %v5061_v8 = vsub.s32 %v91_v4, %v64_v3  ;;  %v5063_v16 = vsub.s32 0, %v64_v3  ;;  %p4993_p4 = scmp.lt.s32.totalorder %s4991_s9, %s4987_s8 }
  0x2c   :  { %v69_v10 = vcvt.s32.f32 %v65_v5  ;;  %v70_v11 = vcvt.s32.f32 %v66_v6  ;;  %v71_v12 = vcvt.s32.f32 %v67_v7  ;;  %v5067_v20 = vmul.f32 0.032258064, %v68_v9 }
  0x2d   :  { %v900_v17 = vrot.slane %v84_v13, %v5061_v8  ;;  %v95_v19 = vrot.slane %v82_v14, %v5061_v8  ;;  %v907_v23 = vrot.slane %v893_v15, %v5061_v8  ;;  %v5083_v28 = vrot.slane %v88_v18, %v5061_v8  ;;  %p4994_p5 = por %p4993_p4, %p4992_p3 }
  0x2e   :  { %v5069_v21 = vmul.f32 0.032258064, %v69_v10  ;;  %v5071_v22 = vmul.f32 0.032258064, %v70_v11  ;;  %v5074_v24 = vmul.f32 0.032258064, %v71_v12 }
  0x2f   :  { %v5077_v25 = vrot.slane %v900_v17, %v5061_v8  ;;  %v908_v26 = vcombine.high %v900_v17, %v900_v17  ;;  %v5080_v27 = vrot.slane %v95_v19, %v5061_v8  ;;  %v103_v29 = vcombine.high %v95_v19, %v95_v19  ;;  %p4995_p6 = pnand %p4994_p5, %p4988_p2 }
  0x30   :  { %v5086_v30 = vrot.slane %v907_v23, %v5061_v8  ;;  %v909_v31 = vcombine.high %v907_v23, %v907_v23 }
  0x31   :  { %v938_v32 = vcombine.high %v5077_v25, %v5077_v25  ;;  %v994_v33 = vrot.slane %v5077_v25, %v5063_v16  ;;  %v5093_v34 = vrot.slane %v908_v26, %v5061_v8  ;;  %v133_v35 = vcombine.high %v5080_v27, %v5080_v27 }
  0x32   :  { %v189_v36 = vrot.slane %v5080_v27, %v5063_v16  ;;  %v5100_v37 = vrot.slane %v103_v29, %v5061_v8  ;;  %v5104_v38 = vrot.slane %v5086_v30, %v5063_v16  ;;  %v5107_v39 = vrot.slane %v909_v31, %v5061_v8 }
  0x33   :  { %v1071_v40 = vsub.f32 %v994_v33, %v5067_v20  ;;  %v1072_v41 = vsub.f32 %v994_v33, %v5069_v21  ;;  %v1073_v42 = vsub.f32 %v994_v33, %v5071_v22  ;;  %v1074_v43 = vsub.f32 %v994_v33, %v5074_v24 }
  0x34   :  { %v940_v44 = vcombine.high %v5093_v34, %v5093_v34  ;;  %v998_v45 = vrot.slane %v5093_v34, %v5063_v16  ;;  %v266_v46 = vsub.f32 %v189_v36, %v5067_v20  ;;  %v267_v47 = vsub.f32 %v189_v36, %v5069_v21 }
  0x35   :  { %v1135_v48 = vmul.f32 %v1071_v40, %v1071_v40  ;;  %v1136_v49 = vmul.f32 %v1072_v41, %v1072_v41  ;;  %v1137_v50 = vmul.f32 %v1073_v42, %v1073_v42  ;;  %v1138_v51 = vmul.f32 %v1074_v43, %v1074_v43 }
  0x36   :  { %v1075_v52 = vsub.f32 %v998_v45, %v5067_v20  ;;  %v1076_v53 = vsub.f32 %v998_v45, %v5069_v21  ;;  %v1077_v54 = vsub.f32 %v998_v45, %v5071_v22  ;;  %v1078_v55 = vsub.f32 %v998_v45, %v5074_v24 }
  0x37   :  { %v1199_v56 = vmul.f32 -480.5, %v1135_v48  ;;  %v1200_v57 = vmul.f32 -480.5, %v1136_v49  ;;  %v1201_v58 = vmul.f32 -480.5, %v1137_v50  ;;  %v1202_v59 = vmul.f32 -480.5, %v1138_v51 }
  0x38   :  { %v1139_v60 = vmul.f32 %v1075_v52, %v1075_v52  ;;  %v1140_v61 = vmul.f32 %v1076_v53, %v1076_v53  ;;  %v1141_v62 = vmul.f32 %v1077_v54, %v1077_v54  ;;  %v1142_v63 = vmul.f32 %v1078_v55, %v1078_v55 }
  0x39   :  { %v1263_v0 = vmul.f32 1.442695, %v1199_v56  ;;  %v1265_v1 = vmul.f32 1.442695, %v1200_v57  ;;  %v1267_v2 = vmul.f32 1.442695, %v1201_v58  ;;  %v268_v3 = vsub.f32 %v189_v36, %v5071_v22 }
  0x3a   :  { %v1269_v4 = vmul.f32 1.442695, %v1202_v59  ;;  %v1203_v5 = vmul.f32 -480.5, %v1139_v60  ;;  %v1204_v6 = vmul.f32 -480.5, %v1140_v61  ;;  %v1205_v7 = vmul.f32 -480.5, %v1141_v62 }
  0x3b   :  { %4367 = vpow2.f32 %v1263_v0  ;;  %v1206_v9 = vmul.f32 -480.5, %v1142_v63  ;;  %v269_v10 = vsub.f32 %v189_v36, %v5074_v24  ;;  %v330_v11 = vmul.f32 %v266_v46, %v266_v46 }
  0x3c   :  { %4369 = vpow2.f32 %v1265_v1  ;;  %v1271_v12 = vmul.f32 1.442695, %v1203_v5  ;;  %v1273_v13 = vmul.f32 1.442695, %v1204_v6  ;;  %v1275_v14 = vmul.f32 1.442695, %v1205_v7 }
  0x3d   :  { %4371 = vpow2.f32 %v1267_v2  ;;  %v1277_v15 = vmul.f32 1.442695, %v1206_v9  ;;  %v331_v17 = vmul.f32 %v267_v47, %v267_v47  ;;  %v332_v18 = vmul.f32 %v268_v3, %v268_v3 }
  0x3e   :  { %4373 = vpow2.f32 %v1269_v4  ;;  %v333_v19 = vmul.f32 %v269_v10, %v269_v10  ;;  %v394_v23 = vmul.f32 -480.5, %v330_v11  ;;  %v1002_v25 = vrot.slane %v938_v32, %v5063_v16 }
  0x3f   :  { %4375 = vpow2.f32 %v1271_v12  ;;  %v395_v26 = vmul.f32 -480.5, %v331_v17  ;;  %v396_v29 = vmul.f32 -480.5, %v332_v18  ;;  %v135_v31 = vcombine.high %v5100_v37, %v5100_v37 }
  0x40   :  { %4377 = vpow2.f32 %v1273_v13  ;;  %v397_v33 = vmul.f32 -480.5, %v333_v19  ;;  %v458_v36 = vmul.f32 1.442695, %v394_v23  ;;  %v1079_v40 = vsub.f32 %v1002_v25, %v5067_v20 }
  0x41   :  { %4379 = vpow2.f32 %v1275_v14  ;;  %v460_v41 = vmul.f32 1.442695, %v395_v26  ;;  %v462_v42 = vmul.f32 1.442695, %v396_v29  ;;  %v1080_v43 = vsub.f32 %v1002_v25, %v5069_v21 }
  0x42   :  { %4381 = vpow2.f32 %v1277_v15  ;;  %v464_v45 = vmul.f32 1.442695, %v397_v33  ;;  %v1081_v32 = vsub.f32 %v1002_v25, %v5071_v22  ;;  %v1082_v46 = vsub.f32 %v1002_v25, %v5074_v24 }
  0x43   :  { %4383 = vpow2.f32 %v458_v36  ;;  %v1143_v47 = vmul.f32 %v1079_v40, %v1079_v40  ;;  %v1144_v48 = vmul.f32 %v1080_v43, %v1080_v43  ;;  %v193_v49 = vrot.slane %v5100_v37, %v5063_v16 }
  0x44   :  { %4385 = vpow2.f32 %v460_v41  ;;  %v1145_v50 = vmul.f32 %v1081_v32, %v1081_v32  ;;  %v1146_v51 = vmul.f32 %v1082_v46, %v1082_v46  ;;  %v5138_v52 = vrot.slane %v940_v44, %v5063_v16 }
  0x45   :  { %v5140_v53 = vpop.eup %4367  ;;  %4387 = vpow2.f32 %v462_v42  ;;  %v1207_v54 = vmul.f32 -480.5, %v1143_v47  ;;  %v1208_v55 = vmul.f32 -480.5, %v1144_v48  ;;  %v270_v56 = vsub.f32 %v193_v49, %v5067_v20 }
  0x46   :  { %v5143_v57 = vpop.eup %4369  ;;  %v1391_v58 = vsel %vm586_vm0, %v5140_v53, 0.0  ;;  %4389 = vpow2.f32 %v464_v45  ;;  %v1209_v59 = vmul.f32 -480.5, %v1145_v50  ;;  %v1210_v60 = vmul.f32 -480.5, %v1146_v51 }
  0x47   :  { %v5147_v61 = vpop.eup %4371  ;;  %v1392_v34 = vsel %vm586_vm0, %v5143_v57, 0.0  ;;  %v1279_v44 = vmul.f32 1.442695, %v1207_v54  ;;  %v1281_v62 = vmul.f32 1.442695, %v1208_v55  ;;  %v271_v63 = vsub.f32 %v193_v49, %v5069_v21 }
  0x48   :  { %v5152_v0 = vpop.eup %4373  ;;  %v1393_v1 = vadd.f32 %v1392_v34, %v1391_v58  ;;  %v1394_v2 = vsel %vm586_vm0, %v5147_v61, 0.0  ;;  %v1283_v3 = vmul.f32 1.442695, %v1209_v59  ;;  %v1285_v4 = vmul.f32 1.442695, %v1210_v60 }
  0x49   :  { %v5156_v5 = vpop.eup %4375  ;;  %v1396_v6 = vsel %vm586_vm0, %v5152_v0, 0.0  ;;  %4391 = vpow2.f32 %v1279_v44  ;;  %v272_v7 = vsub.f32 %v193_v49, %v5071_v22  ;;  %v273_v9 = vsub.f32 %v193_v49, %v5074_v24 }
  0x4a   :  { %v5162_v10 = vpop.eup %4377  ;;  %v1395_v11 = vadd.f32 %v1394_v2, %v1393_v1  ;;  %v1404_v12 = vsel %vm586_vm0, %v5156_v5, 0.0  ;;  %4393 = vpow2.f32 %v1281_v62  ;;  %v334_v13 = vmul.f32 %v270_v56, %v270_v56 }
  0x4b   :  { %v5166_v14 = vpop.eup %4379  ;;  %v1405_v15 = vsel %vm586_vm0, %v5162_v10, 0.0  ;;  %4395 = vpow2.f32 %v1283_v3  ;;  %v335_v17 = vmul.f32 %v271_v63, %v271_v63  ;;  %v336_v18 = vmul.f32 %v272_v7, %v272_v7 }
  0x4c   :  { %v5170_v19 = vpop.eup %4381  ;;  %v1397_v23 = vadd.f32 %v1396_v6, %v1395_v11  ;;  %v1406_v25 = vadd.f32 %v1405_v15, %v1404_v12  ;;  %v1407_v26 = vsel %vm586_vm0, %v5166_v14, 0.0  ;;  %4397 = vpow2.f32 %v1285_v4 }
  0x4d   :  { %v5174_v29 = vpop.eup %4383  ;;  %v1409_v33 = vsel %vm586_vm0, %v5170_v19, 0.0  ;;  %v337_v36 = vmul.f32 %v273_v9, %v273_v9  ;;  %v398_v40 = vmul.f32 -480.5, %v334_v13  ;;  %v399_v41 = vmul.f32 -480.5, %v335_v17 }
  0x4e   :  { %v5178_v42 = vpop.eup %4385  ;;  %v1398_v43 = vrot.slane %v1397_v23, 4  ;;  %v1408_v45 = vadd.f32 %v1407_v26, %v1406_v25  ;;  %v587_v32 = vsel %vm586_vm0, %v5174_v29, 0.0  ;;  %v400_v46 = vmul.f32 -480.5, %v336_v18 }
  0x4f   :  { %v5182_v47 = vpop.eup %4387  ;;  %v588_v48 = vsel %vm586_vm0, %v5178_v42, 0.0  ;;  %v401_v49 = vmul.f32 -480.5, %v337_v36  ;;  %v466_v50 = vmul.f32 1.442695, %v398_v40  ;;  %v468_v51 = vmul.f32 1.442695, %v399_v41 }
  0x50   :  { %v5186_v54 = vpop.eup %4389  ;;  %v1399_v55 = vadd.f32 %v1398_v43, %v1397_v23  ;;  %v1410_v56 = vadd.f32 %v1409_v33, %v1408_v45  ;;  %v589_v58 = vadd.f32 %v588_v48, %v587_v32  ;;  %v590_v59 = vsel %vm586_vm0, %v5182_v47, 0.0 }
  0x51   :  { %v592_v60 = vsel %vm586_vm0, %v5186_v54, 0.0  ;;  %4399 = vpow2.f32 %v466_v50  ;;  %v470_v34 = vmul.f32 1.442695, %v400_v46  ;;  %v472_v44 = vmul.f32 1.442695, %v401_v49 }
  0x52   :  { %v1400_v62 = vrot.slane %v1399_v55, 2  ;;  %v1411_v63 = vrot.slane %v1410_v56, 4  ;;  %v591_v1 = vadd.f32 %v590_v59, %v589_v58  ;;  %4401 = vpow2.f32 %v468_v51 }
  0x53   :  { %v5192_v2 = vpop.eup %4391  ;;  %4403 = vpow2.f32 %v470_v34  ;;  %v1083_v3 = vsub.f32 %v5138_v52, %v5067_v20  ;;  %v1084_v4 = vsub.f32 %v5138_v52, %v5069_v21  ;;  %v1085_v6 = vsub.f32 %v5138_v52, %v5071_v22 }
  0x54   :  { %v5200_v7 = vpop.eup %4393  ;;  %v1401_v9 = vadd.f32 %v1400_v62, %v1399_v55  ;;  %v1412_v11 = vadd.f32 %v1411_v63, %v1410_v56  ;;  %v593_v12 = vadd.f32 %v592_v60, %v591_v1  ;;  %v1417_v13 = vsel %vm586_vm0, %v5192_v2, 0.0 }
  0x55   :  { %v5204_v15 = vpop.eup %4395  ;;  %v1418_v17 = vsel %vm586_vm0, %v5200_v7, 0.0  ;;  %4405 = vpow2.f32 %v472_v44  ;;  %v1086_v18 = vsub.f32 %v5138_v52, %v5074_v24  ;;  %v1147_v23 = vmul.f32 %v1083_v3, %v1083_v3 }
  0x56   :  { %v5210_v25 = vpop.eup %4397  ;;  %v1402_v26 = vrot.slane %v1401_v9, 1  ;;  %v1413_v33 = vrot.slane %v1412_v11, 2  ;;  %v594_v36 = vrot.slane %v593_v12, 4  ;;  %v1419_v40 = vadd.f32 %v1418_v17, %v1417_v13 }
  0x57   :  { %v1420_v41 = vsel %vm586_vm0, %v5204_v15, 0.0  ;;  %v1422_v43 = vsel %vm586_vm0, %v5210_v25, 0.0  ;;  %v1148_v45 = vmul.f32 %v1084_v4, %v1084_v4  ;;  %v1149_v32 = vmul.f32 %v1085_v6, %v1085_v6 }
  0x58   :  { %v1403_v46 = vadd.f32 %v1402_v26, %v1401_v9  ;;  %v1414_v48 = vadd.f32 %v1413_v33, %v1412_v11  ;;  %v595_v49 = vadd.f32 %v594_v36, %v593_v12  ;;  %v1421_v50 = vadd.f32 %v1420_v41, %v1419_v40 }
  0x59   :  { %v1150_v52 = vmul.f32 %v1086_v18, %v1086_v18  ;;  %v1211_v51 = vmul.f32 -480.5, %v1147_v23  ;;  %v1212_v55 = vmul.f32 -480.5, %v1148_v45  ;;  %v1213_v56 = vmul.f32 -480.5, %v1149_v32 }
  0x5a   :  { %4407 = vrcp.f32 %v1403_v46  ;;  %v1415_v58 = vrot.slane %v1414_v48, 1  ;;  %v596_v59 = vrot.slane %v595_v49, 2  ;;  %v1423_v60 = vadd.f32 %v1422_v43, %v1421_v50 }
  0x5b   :  { %v5216_v34 = vpop.eup %4399  ;;  %v1214_v44 = vmul.f32 -480.5, %v1150_v52  ;;  %v1287_v62 = vmul.f32 1.442695, %v1211_v51  ;;  %v1289_v63 = vmul.f32 1.442695, %v1212_v55  ;;  %v197_v1 = vrot.slane %v133_v35, %v5063_v16 }
  0x5c   :  { %v5222_v3 = vpop.eup %4401  ;;  %v1416_v4 = vadd.f32 %v1415_v58, %v1414_v48  ;;  %v597_v6 = vadd.f32 %v596_v59, %v595_v49  ;;  %v1424_v9 = vrot.slane %v1423_v60, 4  ;;  %v600_v11 = vsel %vm586_vm0, %v5216_v34, 0.0 }
  0x5d   :  { %v5226_v12 = vpop.eup %4403  ;;  %v601_v13 = vsel %vm586_vm0, %v5222_v3, 0.0  ;;  %4409 = vpow2.f32 %v1287_v62  ;;  %v1291_v17 = vmul.f32 1.442695, %v1213_v56  ;;  %v1293_v18 = vmul.f32 1.442695, %v1214_v44 }
  0x5e   :  { %4411 = vrcp.f32 %v1416_v4  ;;  %v598_v23 = vrot.slane %v597_v6, 1  ;;  %v1425_v27 = vadd.f32 %v1424_v9, %v1423_v60  ;;  %v602_v35 = vadd.f32 %v601_v13, %v600_v11 }
  0x5f   :  { %v5230_v26 = vpop.eup %4405  ;;  %v603_v33 = vsel %vm586_vm0, %v5226_v12, 0.0  ;;  %4413 = vpow2.f32 %v1289_v63  ;;  %v274_v36 = vsub.f32 %v197_v1, %v5067_v20  ;;  %v275_v40 = vsub.f32 %v197_v1, %v5069_v21 }
  0x60   :  { %v599_v41 = vadd.f32 %v598_v23, %v597_v6  ;;  %v1426_v43 = vrot.slane %v1425_v27, 2  ;;  %v604_v45 = vadd.f32 %v603_v33, %v602_v35  ;;  %v605_v32 = vsel %vm586_vm0, %v5230_v26, 0.0 }
  0x61   :  { %4415 = vpow2.f32 %v1291_v17  ;;  %v276_v46 = vsub.f32 %v197_v1, %v5071_v22  ;;  %v277_v48 = vsub.f32 %v197_v1, %v5074_v24  ;;  %v338_v49 = vmul.f32 %v274_v36, %v274_v36 }
  0x62   :  { %4417 = vrcp.f32 %v599_v41  ;;  %v1427_v50 = vadd.f32 %v1426_v43, %v1425_v27  ;;  %v606_v52 = vadd.f32 %v605_v32, %v604_v45  ;;  %v339_v51 = vmul.f32 %v275_v40, %v275_v40 }
  0x63   :  { %4419 = vpow2.f32 %v1293_v18  ;;  %v340_v55 = vmul.f32 %v276_v46, %v276_v46  ;;  %v341_v56 = vmul.f32 %v277_v48, %v277_v48  ;;  %v402_v58 = vmul.f32 -480.5, %v338_v49 }
  0x64   :  { %v4408_v59 = vpop.eup %4407  ;;  %v1428_v60 = vrot.slane %v1427_v50, 1  ;;  %v607_v44 = vrot.slane %v606_v52, 4  ;;  %v403_v62 = vmul.f32 -480.5, %v339_v51  ;;  %v5242_v63 = vsub.f32 %v5104_v38, %v5067_v20 }
  0x65   :  { %v1631_v4 = vmul.f32 %v4408_v59, %v5140_v53  ;;  %v1632_v1 = vmul.f32 %v4408_v59, %v5143_v57  ;;  %v1633_v6 = vmul.f32 %v4408_v59, %v5147_v61  ;;  %v1634_v9 = vmul.f32 %v4408_v59, %v5152_v0 }
  0x66   :  { %v1429_v11 = vadd.f32 %v1428_v60, %v1427_v50  ;;  %v608_v13 = vadd.f32 %v607_v44, %v606_v52  ;;  %v404_v17 = vmul.f32 -480.5, %v340_v55  ;;  %v405_v18 = vmul.f32 -480.5, %v341_v56 }
  0x67   :  { %v5248_v23 = vpop.eup %4409  ;;  %v1727_v27 = vpack.c.bf16 %v1632_v1, %v1631_v4  ;;  %v1728_v35 = vpack.c.bf16 %v1634_v9, %v1633_v6  ;;  %v474_v33 = vmul.f32 1.442695, %v402_v58  ;;  %v476_v36 = vmul.f32 1.442695, %v403_v62 }
  0x68   :  { %v4412_v40 = vpop.eup %4411  ;;  %4421 = vrcp.f32 %v1429_v11  ;;  %v609_v41 = vrot.slane %v608_v13, 2  ;;  %v1430_v53 = vsel %vm586_vm0, %v5248_v23, 0.0  ;;  %v478_v57 = vmul.f32 1.442695, %v404_v17 }
  0x69   :  { %v5252_v61 = vpop.eup %4413  ;;  %4322 = vmatprep.subr.msk.bf16.mxu0 %vm586_vm0, %v1727_v27  ;;  %v1766_v0 = vsel %vm586_vm0, %v1727_v27, 0  ;;  %v1635_v43 = vmul.f32 %v4412_v40, %v5156_v5  ;;  %v1636_v45 = vmul.f32 %v4412_v40, %v5162_v10  ;;  %v1769_v32 = vsel %vm586_vm0, %v1728_v35, 0 }
  0x6a   :  { %4195 = vmatpush3.bf16.xpose.msra.mxu0 %v1766_v0  ;;  %v1637_v46 = vmul.f32 %v4412_v40, %v5166_v14  ;;  %v1638_v48 = vmul.f32 %v4412_v40, %v5170_v19  ;;  %v610_v49 = vadd.f32 %v609_v41, %v608_v13  ;;  %v1431_v50 = vsel %vm586_vm0, %v5252_v61, 0.0 }
  0x6b   :  { %v5263_v52 = vpop.eup %4415  ;;  %v1729_v51 = vpack.c.bf16 %v1636_v45, %v1635_v43  ;;  %4323 = vmatprep.subr.msk.bf16.mxu0 %vm586_vm0, %v1728_v35  ;;  %v1432_v55 = vadd.f32 %v1431_v50, %v1430_v53  ;;  %4423 = vpow2.f32 %v474_v33  ;;  %v480_v5 = vmul.f32 1.442695, %v405_v18 }
  0x6c   :  { %v4418_v10 = vpop.eup %4417  ;;  %v1730_v56 = vpack.c.bf16 %v1638_v48, %v1637_v46  ;;  %v611_v58 = vrot.slane %v610_v49, 1  ;;  %v1433_v14 = vsel %vm586_vm0, %v5263_v52, 0.0  ;;  %4425 = vpow2.f32 %v476_v36 }
  0x6d   :  { %v5268_v19 = vpop.eup %4419  ;;  %4324 = vmatprep.subr.msk.bf16.mxu1 %vm586_vm0, %v1729_v51  ;;  %v1827_v59 = vsel %vm586_vm0, %v1729_v51, 0  ;;  %v827_v60 = vmul.f32 %v4418_v10, %v5174_v29  ;;  %v828_v44 = vmul.f32 %v4418_v10, %v5178_v42  ;;  %v829_v62 = vmul.f32 %v4418_v10, %v5182_v47 }
  0x6e   :  { %4203 = vmatpush3.bf16.xpose.msra.mxu1 %v1827_v59  ;;  %v1830_v4 = vsel %vm586_vm0, %v1730_v56, 0  ;;  %v830_v1 = vmul.f32 %v4418_v10, %v5186_v54  ;;  %v612_v6 = vadd.f32 %v611_v58, %v610_v49  ;;  %v1434_v9 = vadd.f32 %v1433_v14, %v1432_v55 }
  0x6f   :  { %4325 = vmatprep.subr.msk.bf16.mxu1 %vm586_vm0, %v1730_v56  ;;  %v1695_v11 = vpack.c.bf16 %v828_v44, %v827_v60  ;;  %v1435_v13 = vsel %vm586_vm0, %v5268_v19, 0.0  ;;  %4427 = vpow2.f32 %v478_v57  ;;  %v1088_v29 = vsub.f32 %v5104_v38, %v5069_v21 }
  0x70   :  { %v1696_v42 = vpack.c.bf16 %v830_v1, %v829_v62  ;;  %4429 = vrcp.f32 %v612_v6  ;;  %v1436_v47 = vadd.f32 %v1435_v13, %v1434_v9  ;;  %v1089_v17 = vsub.f32 %v5104_v38, %v5071_v22 }
  0x71   :  { %4198 = vmatprep.mubr.msk.bf16.mxu0 %vm586_vm0, %v1695_v11  ;;  %4431 = vpow2.f32 %v480_v5  ;;  %v1090_v54 = vsub.f32 %v5104_v38, %v5074_v24  ;;  %v1151_v18 = vmul.f32 %v5242_v63, %v5242_v63  ;;  %v1152_v27 = vmul.f32 %v1088_v29, %v1088_v29 }
  0x72   :  { %v4422_v35 = vpop.eup %4421  ;;  %4197 = vmatpush3.bf16.xpose.msra.mxu0 %v1769_v32  ;;  %v1437_v33 = vrot.slane %v1436_v47, 4  ;;  %v1153_v36 = vmul.f32 %v1089_v17, %v1089_v17  ;;  %v201_v40 = vrot.slane %v135_v31, %v5063_v16  ;;  %v5295_v41 = vrot.slane %v5107_v39, %v5063_v16 }
  0x73   :  { %v1639_v53 = vmul.f32 %v4422_v35, %v5192_v2  ;;  %v1640_v38 = vmul.f32 %v4422_v35, %v5200_v7  ;;  %v1641_v63 = vmul.f32 %v4422_v35, %v5204_v15  ;;  %v1642_v57 = vmul.f32 %v4422_v35, %v5210_v25 }
  0x74   :  { %v1438_v0 = vadd.f32 %v1437_v33, %v1436_v47  ;;  %v1154_v43 = vmul.f32 %v1090_v54, %v1090_v54  ;;  %v1215_v45 = vmul.f32 -480.5, %v1151_v18  ;;  %v1216_v32 = vmul.f32 -480.5, %v1152_v27 }
  0x75   :  { %v5301_v46 = vpop.eup %4423  ;;  %v1731_v37 = vpack.c.bf16 %v1640_v38, %v1639_v53  ;;  %v1732_v31 = vpack.c.bf16 %v1642_v57, %v1641_v63  ;;  %v1217_v48 = vmul.f32 -480.5, %v1153_v36  ;;  %v278_v49 = vsub.f32 %v201_v40, %v5067_v20 }
  0x76   :  { %v5304_v50 = vpop.eup %4425  ;;  %4205 = vmatpush3.bf16.xpose.msra.mxu1 %v1830_v4  ;;  %v1439_v2 = vrot.slane %v1438_v0, 2  ;;  %v613_v7 = vsel %vm586_vm0, %v5301_v46, 0.0  ;;  %v1218_v15 = vmul.f32 -480.5, %v1154_v43  ;;  %v1295_v25 = vmul.f32 1.442695, %v1215_v45 }
  0x77   :  { %4326 = vmatprep.subr.msk.bf16.mxu0 %vm586_vm0, %v1731_v37  ;;  %v1888_v51 = vsel %vm586_vm0, %v1731_v37, 0  ;;  %v1891_v55 = vsel %vm586_vm0, %v1732_v31, 0  ;;  %v614_v5 = vsel %vm586_vm0, %v5304_v50, 0.0  ;;  %v1297_v10 = vmul.f32 1.442695, %v1216_v32 }
  0x78   :  { %v1440_v56 = vadd.f32 %v1439_v2, %v1438_v0  ;;  %v615_v58 = vadd.f32 %v614_v5, %v613_v7  ;;  %4433 = vpow2.f32 %v1295_v25  ;;  %v1299_v14 = vmul.f32 1.442695, %v1217_v48 }
  0x79   :  { %v5313_v59 = vpop.eup %4427  ;;  %4199 = vmatmul.mubr.msk.bf16.vlgmr.msra.gmra.mrb[0].mxu0 %vm586_vm0, %v1696_v42  ;;  %4435 = vpow2.f32 %v1297_v10  ;;  %v1301_v60 = vmul.f32 1.442695, %v1218_v15  ;;  %v279_v44 = vsub.f32 %v201_v40, %v5069_v21  ;;  %v280_v62 = vsub.f32 %v201_v40, %v5071_v22 }
  0x7a   :  { %v4430_v4 = vpop.eup %4429  ;;  %4211 = vmatpush3.bf16.xpose.msra.mxu0 %v1888_v51  ;;  %v1441_v1 = vrot.slane %v1440_v56, 1  ;;  %v616_v6 = vsel %vm586_vm0, %v5313_v59, 0.0  ;;  %4437 = vpow2.f32 %v1299_v14  ;;  %v281_v9 = vsub.f32 %v201_v40, %v5074_v24 }
  0x7b   :  { %v5321_v11 = vpop.eup %4431  ;;  %v831_v13 = vmul.f32 %v4430_v4, %v5216_v34  ;;  %v832_v29 = vmul.f32 %v4430_v4, %v5222_v3  ;;  %v833_v42 = vmul.f32 %v4430_v4, %v5226_v12  ;;  %v834_v47 = vmul.f32 %v4430_v4, %v5230_v26  ;;  %4327 = vmatprep.subr.msk.bf16.mxu0 %vm586_vm0, %v1732_v31 }
  0x7c   :  { %v1442_v17 = vadd.f32 %v1441_v1, %v1440_v56  ;;  %v617_v54 = vadd.f32 %v616_v6, %v615_v58  ;;  %v618_v18 = vsel %vm586_vm0, %v5321_v11, 0.0  ;;  %4439 = vpow2.f32 %v1301_v60 }
  0x7d   :  { %v1697_v27 = vpack.c.bf16 %v832_v29, %v831_v13  ;;  %v1698_v35 = vpack.c.bf16 %v834_v47, %v833_v42  ;;  %v342_v33 = vmul.f32 %v278_v49, %v278_v49  ;;  %v343_v36 = vmul.f32 %v279_v44, %v279_v44 }
  0x7e   :  { %4441 = vrcp.f32 %v1442_v17  ;;  %v619_v34 = vadd.f32 %v618_v18, %v617_v54  ;;  %v344_v40 = vmul.f32 %v280_v62, %v280_v62  ;;  %v345_v3 = vmul.f32 %v281_v9, %v281_v9 }
  0x7f   :  { %4206 = vmatprep.mubr.msk.bf16.mxu1 %vm586_vm0, %v1697_v27  ;;  %v406_v12 = vmul.f32 -480.5, %v342_v33  ;;  %v407_v26 = vmul.f32 -480.5, %v343_v36  ;;  %v1091_v53 = vsub.f32 %v5295_v41, %v5067_v20  ;;  %v1092_v38 = vsub.f32 %v5295_v41, %v5069_v21 }
  0x80   :  { %4207 = vmatmul.mubr.msk.bf16.vlgmr.msra.gmra.mrb[0].mxu1 %vm586_vm0, %v1698_v35  ;;  %v620_v63 = vrot.slane %v619_v34, 4  ;;  %v408_v57 = vmul.f32 -480.5, %v344_v40  ;;  %v409_v0 = vmul.f32 -480.5, %v345_v3  ;;  %v1093_v43 = vsub.f32 %v5295_v41, %v5071_v22 }
  0x81   :  { %v482_v45 = vmul.f32 1.442695, %v406_v12  ;;  %v484_v32 = vmul.f32 1.442695, %v407_v26  ;;  %v1094_v37 = vsub.f32 %v5295_v41, %v5074_v24  ;;  %v1155_v31 = vmul.f32 %v1091_v53, %v1091_v53 }
  0x82   :  { %v5340_v48 = vpop.eup %4433  ;;  %4213 = vmatpush3.bf16.xpose.msra.mxu0 %v1891_v55  ;;  %v621_v49 = vadd.f32 %v620_v63, %v619_v34  ;;  %v486_v2 = vmul.f32 1.442695, %v408_v57  ;;  %v488_v7 = vmul.f32 1.442695, %v409_v0  ;;  %v1156_v15 = vmul.f32 %v1092_v38, %v1092_v38 }
  0x83   :  { %v5342_v25 = vpop.eup %4435  ;;  %v1443_v51 = vsel %vm586_vm0, %v5340_v48, 0.0  ;;  %4443 = vpow2.f32 %v482_v45  ;;  %v1157_v5 = vmul.f32 %v1093_v43, %v1093_v43  ;;  %v1158_v10 = vmul.f32 %v1094_v37, %v1094_v37 }
  0x84   :  { %v5346_v56 = vpop.eup %4437  ;;  %v622_v58 = vrot.slane %v621_v49, 2  ;;  %v1444_v41 = vsel %vm586_vm0, %v5342_v25, 0.0  ;;  %4445 = vpow2.f32 %v484_v32  ;;  %v1219_v55 = vmul.f32 -480.5, %v1155_v31 }
  0x85   :  { %v1445_v14 = vadd.f32 %v1444_v41, %v1443_v51  ;;  %v1446_v60 = vsel %vm586_vm0, %v5346_v56, 0.0  ;;  %4447 = vpow2.f32 %v486_v2  ;;  %v1220_v44 = vmul.f32 -480.5, %v1156_v15 }
  0x86   :  { %v5352_v62 = vpop.eup %4439  ;;  %v623_v4 = vadd.f32 %v622_v58, %v621_v49  ;;  %4449 = vpow2.f32 %v488_v7  ;;  %v1221_v1 = vmul.f32 -480.5, %v1157_v5  ;;  %v1222_v6 = vmul.f32 -480.5, %v1158_v10 }
  0x87   :  { %v1447_v9 = vadd.f32 %v1446_v60, %v1445_v14  ;;  %v1448_v13 = vsel %vm586_vm0, %v5352_v62, 0.0  ;;  %v1303_v29 = vmul.f32 1.442695, %v1219_v55  ;;  %v1305_v42 = vmul.f32 1.442695, %v1220_v44 }
  0x88   :  { %v4442_v47 = vpop.eup %4441  ;;  %v624_v17 = vrot.slane %v623_v4, 1  ;;  %v1307_v54 = vmul.f32 1.442695, %v1221_v1  ;;  %v1309_v18 = vmul.f32 1.442695, %v1222_v6  ;;  %v5358_v27 = vrot.slane %v5083_v28, %v5061_v8 }
  0x89   :  { %v1643_v35 = vmul.f32 %v4442_v47, %v5248_v23  ;;  %v1644_v33 = vmul.f32 %v4442_v47, %v5252_v61  ;;  %v1645_v36 = vmul.f32 %v4442_v47, %v5263_v52  ;;  %v1646_v34 = vmul.f32 %v4442_v47, %v5268_v19 }
  0x8a   :  { %v625_v40 = vadd.f32 %v624_v17, %v623_v4  ;;  %v1449_v3 = vadd.f32 %v1448_v13, %v1447_v9  ;;  %4451 = vpow2.f32 %v1303_v29  ;;  %v205_v12 = vrot.slane %v5358_v27, %v5063_v16 }
  0x8b   :  { %v1733_v26 = vpack.c.bf16 %v1644_v33, %v1643_v35  ;;  %v1734_v53 = vpack.c.bf16 %v1646_v34, %v1645_v36  ;;  %4453 = vpow2.f32 %v1305_v42  ;;  %v939_v38 = vcombine.high %v5086_v30, %v5086_v30 }
  0x8c   :  { %4455 = vrcp.f32 %v625_v40  ;;  %v1450_v23 = vrot.slane %v1449_v3, 4  ;;  %v282_v61 = vsub.f32 %v205_v12, %v5067_v20  ;;  %v283_v52 = vsub.f32 %v205_v12, %v5069_v21 }
  0x8d   :  { %v5370_v63 = vpop.eup %4443  ;;  %4328 = vmatprep.subr.msk.bf16.mxu1 %vm586_vm0, %v1733_v26  ;;  %v1949_v19 = vsel %vm586_vm0, %v1733_v26, 0  ;;  %v1952_v57 = vsel %vm586_vm0, %v1734_v53, 0  ;;  %4457 = vpow2.f32 %v1307_v54  ;;  %v284_v0 = vsub.f32 %v205_v12, %v5071_v22 }
  0x8e   :  { %v5376_v43 = vpop.eup %4445  ;;  %4219 = vmatpush3.bf16.xpose.msra.mxu1 %v1949_v19  ;;  %v1451_v30 = vadd.f32 %v1450_v23, %v1449_v3  ;;  %v626_v45 = vsel %vm586_vm0, %v5370_v63, 0.0  ;;  %4459 = vpow2.f32 %v1309_v18  ;;  %v285_v32 = vsub.f32 %v205_v12, %v5074_v24 }
  0x8f   :  { %v5381_v37 = vpop.eup %4447  ;;  %4329 = vmatprep.subr.msk.bf16.mxu1 %vm586_vm0, %v1734_v53  ;;  %v627_v31 = vsel %vm586_vm0, %v5376_v43, 0.0  ;;  %v346_v49 = vmul.f32 %v282_v61, %v282_v61  ;;  %v347_v2 = vmul.f32 %v283_v52, %v283_v52  ;;  %v348_v7 = vmul.f32 %v284_v0, %v284_v0 }
  0x90   :  { %v5386_v15 = vpop.eup %4449  ;;  %v1452_v51 = vrot.slane %v1451_v30, 2  ;;  %v628_v5 = vadd.f32 %v627_v31, %v626_v45  ;;  %v629_v10 = vsel %vm586_vm0, %v5381_v37, 0.0  ;;  %v349_v58 = vmul.f32 %v285_v32, %v285_v32 }
  0x91   :  { %v631_v41 = vsel %vm586_vm0, %v5386_v15, 0.0  ;;  %v410_v55 = vmul.f32 -480.5, %v346_v49  ;;  %v411_v14 = vmul.f32 -480.5, %v347_v2  ;;  %v412_v60 = vmul.f32 -480.5, %v348_v7 }
  0x92   :  { %v1453_v44 = vadd.f32 %v1452_v51, %v1451_v30  ;;  %v630_v4 = vadd.f32 %v629_v10, %v628_v5  ;;  %v413_v1 = vmul.f32 -480.5, %v349_v58  ;;  %v1018_v6 = vrot.slane %v939_v38, %v5063_v16 }
  0x93   :  { %v490_v9 = vmul.f32 1.442695, %v410_v55  ;;  %v492_v13 = vmul.f32 1.442695, %v411_v14  ;;  %v494_v29 = vmul.f32 1.442695, %v412_v60  ;;  %v104_v42 = vcombine.high %v5083_v28, %v5083_v28 }
  0x94   :  { %v5395_v47 = vpop.eup %4451  ;;  %v1454_v17 = vrot.slane %v1453_v44, 1  ;;  %v632_v54 = vadd.f32 %v631_v41, %v630_v4  ;;  %v496_v18 = vmul.f32 1.442695, %v413_v1  ;;  %v1095_v35 = vsub.f32 %v1018_v6, %v5067_v20 }
  0x95   :  { %v5398_v33 = vpop.eup %4453  ;;  %v1456_v36 = vsel %vm586_vm0, %v5395_v47, 0.0  ;;  %4461 = vpow2.f32 %v490_v9  ;;  %v1096_v34 = vsub.f32 %v1018_v6, %v5069_v21  ;;  %v1097_v40 = vsub.f32 %v1018_v6, %v5071_v22 }
  0x96   :  { %v4456_v3 = vpop.eup %4455  ;;  %4221 = vmatpush3.bf16.xpose.msra.mxu1 %v1952_v57  ;;  %v1455_v28 = vadd.f32 %v1454_v17, %v1453_v44  ;;  %v633_v12 = vrot.slane %v632_v54, 4  ;;  %v1457_v26 = vsel %vm586_vm0, %v5398_v33, 0.0  ;;  %4463 = vpow2.f32 %v492_v13 }
  0x97   :  { %v5406_v53 = vpop.eup %4457  ;;  %v835_v38 = vmul.f32 %v4456_v3, %v5301_v46  ;;  %v836_v23 = vmul.f32 %v4456_v3, %v5304_v50  ;;  %v837_v61 = vmul.f32 %v4456_v3, %v5313_v59  ;;  %v838_v52 = vmul.f32 %v4456_v3, %v5321_v11 }
  0x98   :  { %v5412_v19 = vpop.eup %4459  ;;  %4465 = vrcp.f32 %v1455_v28  ;;  %v634_v57 = vadd.f32 %v633_v12, %v632_v54  ;;  %v1458_v0 = vadd.f32 %v1457_v26, %v1456_v36  ;;  %v1459_v30 = vsel %vm586_vm0, %v5406_v53, 0.0 }
  0x99   :  { %v1699_v45 = vpack.c.bf16 %v836_v23, %v835_v38  ;;  %v1700_v32 = vpack.c.bf16 %v838_v52, %v837_v61  ;;  %v1461_v31 = vsel %vm586_vm0, %v5412_v19, 0.0  ;;  %4467 = vpow2.f32 %v494_v29 }
  0x9a   :  { %v635_v46 = vrot.slane %v634_v57, 2  ;;  %v1460_v50 = vadd.f32 %v1459_v30, %v1458_v0  ;;  %4469 = vpow2.f32 %v496_v18  ;;  %v1098_v59 = vsub.f32 %v1018_v6, %v5074_v24 }
  0x9b   :  { %4214 = vmatprep.mubr.msk.bf16.mxu0 %vm586_vm0, %v1699_v45  ;;  %v1159_v11 = vmul.f32 %v1095_v35, %v1095_v35  ;;  %v1160_v49 = vmul.f32 %v1096_v34, %v1096_v34  ;;  %v1161_v2 = vmul.f32 %v1097_v40, %v1097_v40  ;;  %v5421_v7 = vrot.slane %v104_v42, %v5061_v8 }
  0x9c   :  { %4215 = vmatmul.mubr.msk.bf16.vlgmr.msra.gmra.mrb[4].mxu0 %vm586_vm0, %v1700_v32  ;;  %v636_v51 = vadd.f32 %v635_v46, %v634_v57  ;;  %v1462_v5 = vadd.f32 %v1461_v31, %v1460_v50  ;;  %v1162_v10 = vmul.f32 %v1098_v59, %v1098_v59  ;;  %v941_v58 = vcombine.high %v5107_v39, %v5107_v39 }
  0x9d   :  { %v1223_v41 = vmul.f32 -480.5, %v1159_v11  ;;  %v1224_v55 = vmul.f32 -480.5, %v1160_v49  ;;  %v1225_v14 = vmul.f32 -480.5, %v1161_v2  ;;  %v209_v60 = vrot.slane %v5421_v7, %v5063_v16 }
  0x9e   :  { %v637_v44 = vrot.slane %v636_v51, 1  ;;  %v1463_v4 = vrot.slane %v1462_v5, 4  ;;  %v1226_v1 = vmul.f32 -480.5, %v1162_v10  ;;  %v1022_v6 = vrot.slane %v941_v58, %v5063_v16 }
  0x9f   :  { %v5429_v9 = vpop.eup %4461  ;;  %v1311_v13 = vmul.f32 1.442695, %v1223_v41  ;;  %v1313_v29 = vmul.f32 1.442695, %v1224_v55  ;;  %v1315_v42 = vmul.f32 1.442695, %v1225_v14  ;;  %v286_v17 = vsub.f32 %v209_v60, %v5067_v20 }
  0xa0   :  { %v5432_v54 = vpop.eup %4463  ;;  %v638_v39 = vadd.f32 %v637_v44, %v636_v51  ;;  %v1464_v18 = vadd.f32 %v1463_v4, %v1462_v5  ;;  %v639_v35 = vsel %vm586_vm0, %v5429_v9, 0.0  ;;  %v1317_v36 = vmul.f32 1.442695, %v1226_v1 }
  0xa1   :  { %v640_v34 = vsel %vm586_vm0, %v5432_v54, 0.0  ;;  %4471 = vpow2.f32 %v1311_v13  ;;  %v287_v40 = vsub.f32 %v209_v60, %v5069_v21  ;;  %v288_v3 = vsub.f32 %v209_v60, %v5071_v22 }
  0xa2   :  { %v4466_v28 = vpop.eup %4465  ;;  %4473 = vrcp.f32 %v638_v39  ;;  %v1465_v12 = vrot.slane %v1464_v18, 2  ;;  %v641_v26 = vadd.f32 %v640_v34, %v639_v35  ;;  %v289_v38 = vsub.f32 %v209_v60, %v5074_v24 }
  0xa3   :  { %v5441_v23 = vpop.eup %4467  ;;  %v1647_v61 = vmul.f32 %v4466_v28, %v5340_v48  ;;  %v1648_v52 = vmul.f32 %v4466_v28, %v5342_v25  ;;  %v1649_v57 = vmul.f32 %v4466_v28, %v5346_v56  ;;  %v1650_v0 = vmul.f32 %v4466_v28, %v5352_v62 }
  0xa4   :  { %v5447_v30 = vpop.eup %4469  ;;  %v1466_v45 = vadd.f32 %v1465_v12, %v1464_v18  ;;  %v642_v32 = vsel %vm586_vm0, %v5441_v23, 0.0  ;;  %4475 = vpow2.f32 %v1313_v29  ;;  %v350_v31 = vmul.f32 %v286_v17, %v286_v17 }
  0xa5   :  { %v1735_v46 = vpack.c.bf16 %v1648_v52, %v1647_v61  ;;  %v1736_v50 = vpack.c.bf16 %v1650_v0, %v1649_v57  ;;  %v643_v59 = vadd.f32 %v642_v32, %v641_v26  ;;  %v644_v48 = vsel %vm586_vm0, %v5447_v30, 0.0 }
  0xa6   :  { %v1467_v11 = vrot.slane %v1466_v45, 1  ;;  %4477 = vpow2.f32 %v1315_v42  ;;  %v351_v25 = vmul.f32 %v287_v40, %v287_v40  ;;  %v352_v56 = vmul.f32 %v288_v3, %v288_v3 }
  0xa7   :  { %4330 = vmatprep.subr.msk.bf16.mxu0 %vm586_vm0, %v1735_v46  ;;  %v2010_v62 = vsel %vm586_vm0, %v1735_v46, 0  ;;  %v2013_v49 = vsel %vm586_vm0, %v1736_v50, 0  ;;  %v645_v2 = vadd.f32 %v644_v48, %v643_v59  ;;  %4479 = vpow2.f32 %v1317_v36  ;;  %v5480_v59 = vld [vmem:[#allocation6 + $0x8] sm:$0xff] }
  0xa8   :  { %4227 = vmatpush3.bf16.xpose.msra.mxu0 %v2010_v62  ;;  %v1468_v51 = vadd.f32 %v1467_v11, %v1466_v45  ;;  %v353_v5 = vmul.f32 %v289_v38, %v289_v38  ;;  %v414_v10 = vmul.f32 -480.5, %v350_v31  ;;  %v415_v58 = vmul.f32 -480.5, %v351_v25 }
  0xa9   :  { %4331 = vmatprep.subr.msk.bf16.mxu0 %vm586_vm0, %v1736_v50  ;;  %v646_v41 = vrot.slane %v645_v2, 4  ;;  %v416_v55 = vmul.f32 -480.5, %v352_v56  ;;  %v1099_v14 = vsub.f32 %v1022_v6, %v5067_v20  ;;  %v1100_v60 = vsub.f32 %v1022_v6, %v5069_v21 }
  0xaa   :  { %4481 = vrcp.f32 %v1468_v51  ;;  %v417_v44 = vmul.f32 -480.5, %v353_v5  ;;  %v498_v4 = vmul.f32 1.442695, %v414_v10  ;;  %v500_v1 = vmul.f32 1.442695, %v415_v58 }
  0xab   :  { %v5459_v13 = vpop.eup %4471  ;;  %v647_v29 = vadd.f32 %v646_v41, %v645_v2  ;;  %v502_v42 = vmul.f32 1.442695, %v416_v55  ;;  %v1101_v17 = vsub.f32 %v1022_v6, %v5071_v22  ;;  %v1102_v39 = vsub.f32 %v1022_v6, %v5074_v24 }
  0xac   :  { %v4474_v18 = vpop.eup %4473  ;;  %v1469_v35 = vsel %vm586_vm0, %v5459_v13, 0.0  ;;  %4483 = vpow2.f32 %v498_v4  ;;  %v504_v36 = vmul.f32 1.442695, %v417_v44  ;;  %v1163_v34 = vmul.f32 %v1099_v14, %v1099_v14 }
  0xad   :  { %v839_v40 = vmul.f32 %v4474_v18, %v5370_v63  ;;  %v840_v3 = vmul.f32 %v4474_v18, %v5376_v43  ;;  %v841_v28 = vmul.f32 %v4474_v18, %v5381_v37  ;;  %v842_v12 = vmul.f32 %v4474_v18, %v5386_v15 }
  0xae   :  { %v5469_v26 = vpop.eup %4475  ;;  %v648_v38 = vrot.slane %v647_v29, 2  ;;  %4485 = vpow2.f32 %v500_v1  ;;  %v1164_v6 = vmul.f32 %v1100_v60, %v1100_v60  ;;  %v1165_v61 = vmul.f32 %v1101_v17, %v1101_v17 }
  0xaf   :  { %v1701_v52 = vpack.c.bf16 %v840_v3, %v839_v40  ;;  %v1702_v57 = vpack.c.bf16 %v842_v12, %v841_v28  ;;  %v1470_v0 = vsel %vm586_vm0, %v5469_v26, 0.0  ;;  %4487 = vpow2.f32 %v502_v42 }
  0xb0   :  { %v5473_v45 = vpop.eup %4477  ;;  %4229 = vmatpush3.bf16.xpose.msra.mxu0 %v2013_v49  ;;  %v649_v63 = vadd.f32 %v648_v38, %v647_v29  ;;  %v1471_v43 = vadd.f32 %v1470_v0, %v1469_v35  ;;  %4489 = vpow2.f32 %v504_v36  ;;  %v1166_v37 = vmul.f32 %v1102_v39, %v1102_v39 }
  0xb1   :  { %v5475_v15 = vpop.eup %4479  ;;  %4222 = vmatprep.mubr.msk.bf16.mxu1 %vm586_vm0, %v1701_v52  ;;  %v1472_v32 = vsel %vm586_vm0, %v5473_v45, 0.0  ;;  %v1227_v31 = vmul.f32 -480.5, %v1163_v34  ;;  %v1228_v46 = vmul.f32 -480.5, %v1164_v6  ;;  %v1229_v50 = vmul.f32 -480.5, %v1165_v61 }
  0xb2   :  { %4223 = vmatmul.mubr.msk.bf16.vlgmr.msra.gmra.mrb[4].mxu1 %vm586_vm0, %v1702_v57  ;;  %v650_v48 = vrot.slane %v649_v63, 1  ;;  %v1473_v11 = vadd.f32 %v1472_v32, %v1471_v43  ;;  %v1474_v25 = vsel %vm586_vm0, %v5475_v15, 0.0  ;;  %v1230_v56 = vmul.f32 -480.5, %v1166_v37 }
  0xb3   :  { %v1319_v62 = vmul.f32 1.442695, %v1227_v31  ;;  %v1321_v49 = vmul.f32 1.442695, %v1228_v46  ;;  %v1323_v2 = vmul.f32 1.442695, %v1229_v50  ;;  %v134_v51 = vcombine.high %v5358_v27, %v5358_v27 }
  0xb4   :  { %v4482_v5 = vpop.eup %4481  ;;  %v651_v10 = vadd.f32 %v650_v48, %v649_v63  ;;  %v1475_v58 = vadd.f32 %v1474_v25, %v1473_v11  ;;  %v1325_v41 = vmul.f32 1.442695, %v1230_v56  ;;  %v5489_v55 = vrot.slane %v5480_v59, %v5061_v8 }
  0xb5   :  { %v1651_v14 = vmul.f32 %v4482_v5, %v5395_v47  ;;  %v1652_v60 = vmul.f32 %v4482_v5, %v5398_v33  ;;  %v1653_v44 = vmul.f32 %v4482_v5, %v5406_v53  ;;  %v1654_v4 = vmul.f32 %v4482_v5, %v5412_v19 }
  0xb6   :  { %v5495_v1 = vpop.eup %4483  ;;  %4491 = vrcp.f32 %v651_v10  ;;  %v1476_v27 = vrot.slane %v1475_v58, 4  ;;  %v213_v29 = vrot.slane %v134_v51, %v5063_v16  ;;  %v5500_v42 = vrot.slane %v5489_v55, %v5061_v8 }
  0xb7   :  { %v1737_v17 = vpack.c.bf16 %v1652_v60, %v1651_v14  ;;  %v1738_v39 = vpack.c.bf16 %v1654_v4, %v1653_v44  ;;  %v652_v47 = vsel %vm586_vm0, %v5495_v1, 0.0  ;;  %4493 = vpow2.f32 %v1319_v62 }
  0xb8   :  { %v5504_v33 = vpop.eup %4485  ;;  %v1477_v53 = vadd.f32 %v1476_v27, %v1475_v58  ;;  %4495 = vpow2.f32 %v1321_v49  ;;  %v290_v19 = vsub.f32 %v213_v29, %v5067_v20  ;;  %v291_v18 = vsub.f32 %v213_v29, %v5069_v21 }
  0xb9   :  { %v5508_v35 = vpop.eup %4487  ;;  %4332 = vmatprep.subr.msk.bf16.mxu1 %vm586_vm0, %v1737_v17  ;;  %v2071_v36 = vsel %vm586_vm0, %v1737_v17, 0  ;;  %v2074_v34 = vsel %vm586_vm0, %v1738_v39, 0  ;;  %v653_v40 = vsel %vm586_vm0, %v5504_v33, 0.0  ;;  %4497 = vpow2.f32 %v1323_v2 }
  0xba   :  { %v5515_v3 = vpop.eup %4489  ;;  %4235 = vmatpush3.bf16.xpose.msra.mxu1 %v2071_v36  ;;  %v1478_v28 = vrot.slane %v1477_v53, 2  ;;  %v654_v12 = vadd.f32 %v653_v40, %v652_v47  ;;  %v655_v38 = vsel %vm586_vm0, %v5508_v35, 0.0  ;;  %4499 = vpow2.f32 %v1325_v41 }
  0xbb   :  { %4333 = vmatprep.subr.msk.bf16.mxu1 %vm586_vm0, %v1738_v39  ;;  %v657_v6 = vsel %vm586_vm0, %v5515_v3, 0.0  ;;  %v292_v61 = vsub.f32 %v213_v29, %v5071_v22  ;;  %v293_v52 = vsub.f32 %v213_v29, %v5074_v24  ;;  %v354_v57 = vmul.f32 %v290_v19, %v290_v19 }
  0xbc   :  { %v1479_v0 = vadd.f32 %v1478_v28, %v1477_v53  ;;  %v656_v63 = vadd.f32 %v655_v38, %v654_v12  ;;  %v355_v43 = vmul.f32 %v291_v18, %v291_v18  ;;  %v1026_v37 = vrot.slane %v5500_v42, %v5063_v16 }
  0xbd   :  { %v356_v32 = vmul.f32 %v292_v61, %v292_v61  ;;  %v357_v31 = vmul.f32 %v293_v52, %v293_v52  ;;  %v418_v46 = vmul.f32 -480.5, %v354_v57  ;;  %v136_v50 = vcombine.high %v5421_v7, %v5421_v7 }
  0xbe   :  { %v1480_v48 = vrot.slane %v1479_v0, 1  ;;  %v658_v11 = vadd.f32 %v657_v6, %v656_v63  ;;  %v419_v25 = vmul.f32 -480.5, %v355_v43  ;;  %v1103_v56 = vsub.f32 %v1026_v37, %v5067_v20 }
  0xbf   :  { %v420_v62 = vmul.f32 -480.5, %v356_v32  ;;  %v421_v49 = vmul.f32 -480.5, %v357_v31  ;;  %v506_v2 = vmul.f32 1.442695, %v418_v46  ;;  %v1104_v51 = vsub.f32 %v1026_v37, %v5069_v21 }
  0xc0   :  { %v4492_v5 = vpop.eup %4491  ;;  %v1481_v10 = vadd.f32 %v1480_v48, %v1479_v0  ;;  %v659_v58 = vrot.slane %v658_v11, 4  ;;  %v508_v41 = vmul.f32 1.442695, %v419_v25  ;;  %v1105_v14 = vsub.f32 %v1026_v37, %v5071_v22 }
  0xc1   :  { %v5531_v60 = vpop.eup %4493  ;;  %v843_v7 = vmul.f32 %v4492_v5, %v5429_v9  ;;  %v844_v44 = vmul.f32 %v4492_v5, %v5432_v54  ;;  %v845_v4 = vmul.f32 %v4492_v5, %v5441_v23  ;;  %v846_v27 = vmul.f32 %v4492_v5, %v5447_v30 }
  0xc2   :  { %v5537_v29 = vpop.eup %4495  ;;  %4237 = vmatpush3.bf16.xpose.msra.mxu1 %v2074_v34  ;;  %4501 = vrcp.f32 %v1481_v10  ;;  %v660_v17 = vadd.f32 %v659_v58, %v658_v11  ;;  %v1482_v39 = vsel %vm586_vm0, %v5531_v60, 0.0  ;;  %v510_v47 = vmul.f32 1.442695, %v420_v62 }
  0xc3   :  { %v5541_v53 = vpop.eup %4497  ;;  %v1703_v19 = vpack.c.bf16 %v844_v44, %v843_v7  ;;  %v1704_v18 = vpack.c.bf16 %v846_v27, %v845_v4  ;;  %v1483_v9 = vsel %vm586_vm0, %v5537_v29, 0.0  ;;  %4503 = vpow2.f32 %v506_v2 }
  0xc4   :  { %v5545_v54 = vpop.eup %4499  ;;  %v661_v23 = vrot.slane %v660_v17, 2  ;;  %v1484_v30 = vadd.f32 %v1483_v9, %v1482_v39  ;;  %v1485_v36 = vsel %vm586_vm0, %v5541_v53, 0.0  ;;  %4505 = vpow2.f32 %v508_v41 }
  0xc5   :  { %4230 = vmatprep.mubr.msk.bf16.mxu0 %vm586_vm0, %v1703_v19  ;;  %v1487_v34 = vsel %vm586_vm0, %v5545_v54, 0.0  ;;  %4507 = vpow2.f32 %v510_v47  ;;  %v512_v40 = vmul.f32 1.442695, %v421_v49  ;;  %v1106_v28 = vsub.f32 %v1026_v37, %v5074_v24 }
  0xc6   :  { %4231 = vmatmul.mubr.msk.bf16.vlgmr.msra.gmra.mrb[8].mxu0 %vm586_vm0, %v1704_v18  ;;  %v662_v12 = vadd.f32 %v661_v23, %v660_v17  ;;  %v1486_v38 = vadd.f32 %v1485_v36, %v1484_v30  ;;  %v1167_v6 = vmul.f32 %v1103_v56, %v1103_v56  ;;  %v1168_v61 = vmul.f32 %v1104_v51, %v1104_v51 }
  0xc7   :  { %4509 = vpow2.f32 %v512_v40  ;;  %v1169_v52 = vmul.f32 %v1105_v14, %v1105_v14  ;;  %v1170_v57 = vmul.f32 %v1106_v28, %v1106_v28  ;;  %v217_v0 = vrot.slane %v136_v50, %v5063_v16 }
  0xc8   :  { %v663_v63 = vrot.slane %v662_v12, 1  ;;  %v1488_v43 = vadd.f32 %v1487_v34, %v1486_v38  ;;  %v1231_v32 = vmul.f32 -480.5, %v1167_v6  ;;  %v1232_v31 = vmul.f32 -480.5, %v1168_v61 }
  0xc9   :  { %v1233_v46 = vmul.f32 -480.5, %v1169_v52  ;;  %v1234_v48 = vmul.f32 -480.5, %v1170_v57  ;;  %v294_v11 = vsub.f32 %v217_v0, %v5067_v20  ;;  %v295_v37 = vsub.f32 %v217_v0, %v5069_v21 }
  0xca   :  { %v664_v25 = vadd.f32 %v663_v63, %v662_v12  ;;  %v1489_v62 = vrot.slane %v1488_v43, 4  ;;  %v1327_v49 = vmul.f32 1.442695, %v1231_v32  ;;  %v1329_v56 = vmul.f32 1.442695, %v1232_v31  ;;  %v5580_v12 = vld [vmem:[#allocation3 + $0x8] sm:$0xff] }
  0xcb   :  { %v1331_v2 = vmul.f32 1.442695, %v1233_v46  ;;  %v1333_v51 = vmul.f32 1.442695, %v1234_v48  ;;  %v296_v5 = vsub.f32 %v217_v0, %v5071_v22  ;;  %v297_v50 = vsub.f32 %v217_v0, %v5074_v24 }
  0xcc   :  { %v4502_v10 = vpop.eup %4501  ;;  %4511 = vrcp.f32 %v664_v25  ;;  %v1490_v58 = vadd.f32 %v1489_v62, %v1488_v43  ;;  %v358_v41 = vmul.f32 %v294_v11, %v294_v11  ;;  %v359_v14 = vmul.f32 %v295_v37, %v295_v37 }
  0xcd   :  { %v5559_v7 = vpop.eup %4503  ;;  %v1655_v44 = vmul.f32 %v4502_v10, %v5459_v13  ;;  %v1656_v4 = vmul.f32 %v4502_v10, %v5469_v26  ;;  %v1657_v27 = vmul.f32 %v4502_v10, %v5473_v45  ;;  %v1658_v17 = vmul.f32 %v4502_v10, %v5475_v15 }
  0xce   :  { %v5565_v39 = vpop.eup %4505  ;;  %v1491_v47 = vrot.slane %v1490_v58, 2  ;;  %v665_v19 = vsel %vm586_vm0, %v5559_v7, 0.0  ;;  %4513 = vpow2.f32 %v1327_v49  ;;  %v360_v18 = vmul.f32 %v296_v5, %v296_v5 }
  0xcf   :  { %v5569_v9 = vpop.eup %4507  ;;  %v1739_v23 = vpack.c.bf16 %v1656_v4, %v1655_v44  ;;  %v1740_v30 = vpack.c.bf16 %v1658_v17, %v1657_v27  ;;  %v666_v13 = vsel %vm586_vm0, %v5565_v39, 0.0  ;;  %4515 = vpow2.f32 %v1329_v56 }
  0xd0   :  { %v1492_v26 = vadd.f32 %v1491_v47, %v1490_v58  ;;  %v667_v45 = vadd.f32 %v666_v13, %v665_v19  ;;  %v668_v15 = vsel %vm586_vm0, %v5569_v9, 0.0  ;;  %4517 = vpow2.f32 %v1331_v2 }
  0xd1   :  { %v5575_v36 = vpop.eup %4509  ;;  %4334 = vmatprep.subr.msk.bf16.mxu0 %vm586_vm0, %v1739_v23  ;;  %v2132_v34 = vsel %vm586_vm0, %v1739_v23, 0  ;;  %v2135_v40 = vsel %vm586_vm0, %v1740_v30, 0  ;;  %4519 = vpow2.f32 %v1333_v51  ;;  %v361_v28 = vmul.f32 %v297_v50, %v297_v50 }
  0xd2   :  { %4243 = vmatpush3.bf16.xpose.msra.mxu0 %v2132_v34  ;;  %v1493_v38 = vrot.slane %v1492_v26, 1  ;;  %v669_v6 = vadd.f32 %v668_v15, %v667_v45  ;;  %v670_v61 = vsel %vm586_vm0, %v5575_v36, 0.0  ;;  %v422_v52 = vmul.f32 -480.5, %v358_v41 }
  0xd3   :  { %4335 = vmatprep.subr.msk.bf16.mxu0 %vm586_vm0, %v1740_v30  ;;  %v423_v57 = vmul.f32 -480.5, %v359_v14  ;;  %v424_v0 = vmul.f32 -480.5, %v360_v18  ;;  %v425_v63 = vmul.f32 -480.5, %v361_v28  ;;  %v957_v43 = vcombine.high %v5489_v55, %v5489_v55 }
  0xd4   :  { %v1494_v32 = vadd.f32 %v1493_v38, %v1492_v26  ;;  %v671_v31 = vadd.f32 %v670_v61, %v669_v6  ;;  %v514_v46 = vmul.f32 1.442695, %v422_v52  ;;  %v5589_v48 = vrot.slane %v5580_v12, %v5061_v8 }
  0xd5   :  { %v516_v11 = vmul.f32 1.442695, %v423_v57  ;;  %v518_v37 = vmul.f32 1.442695, %v424_v0  ;;  %v520_v25 = vmul.f32 1.442695, %v425_v63  ;;  %v5592_v62 = vrot.slane %v957_v43, %v5061_v8 }
  0xd6   :  { %v4512_v49 = vpop.eup %4511  ;;  %4521 = vrcp.f32 %v1494_v32  ;;  %v672_v56 = vrot.slane %v671_v31, 4  ;;  %v5596_v2 = vrot.slane %v5589_v48, %v5061_v8  ;;  %v987_v55 = vcombine.high %v5500_v42, %v5500_v42 }
  0xd7   :  { %v847_v51 = vmul.f32 %v4512_v49, %v5495_v1  ;;  %v848_v5 = vmul.f32 %v4512_v49, %v5504_v33  ;;  %v849_v50 = vmul.f32 %v4512_v49, %v5508_v35  ;;  %v850_v10 = vmul.f32 %v4512_v49, %v5515_v3 }
  0xd8   :  { %v5604_v58 = vpop.eup %4513  ;;  %v673_v41 = vadd.f32 %v672_v56, %v671_v31  ;;  %4523 = vpow2.f32 %v514_v46  ;;  %v1030_v14 = vrot.slane %v5592_v62, %v5063_v16  ;;  %v221_v44 = vrot.slane %v5596_v2, %v5063_v16 }
  0xd9   :  { %v5610_v4 = vpop.eup %4515  ;;  %v1705_v27 = vpack.c.bf16 %v848_v5, %v847_v51  ;;  %v1706_v1 = vpack.c.bf16 %v850_v10, %v849_v50  ;;  %v1495_v33 = vsel %vm586_vm0, %v5604_v58, 0.0  ;;  %4525 = vpow2.f32 %v516_v11 }
  0xda   :  { %v5614_v35 = vpop.eup %4517  ;;  %4245 = vmatpush3.bf16.xpose.msra.mxu0 %v2135_v40  ;;  %v674_v3 = vrot.slane %v673_v41, 2  ;;  %v1496_v17 = vsel %vm586_vm0, %v5610_v4, 0.0  ;;  %4527 = vpow2.f32 %v518_v37  ;;  %v1107_v47 = vsub.f32 %v1030_v14, %v5067_v20 }
  0xdb   :  { %v5619_v19 = vpop.eup %4519  ;;  %4238 = vmatprep.mubr.msk.bf16.mxu1 %vm586_vm0, %v1705_v27  ;;  %v1497_v18 = vadd.f32 %v1496_v17, %v1495_v33  ;;  %v1498_v23 = vsel %vm586_vm0, %v5614_v35, 0.0  ;;  %4529 = vpow2.f32 %v520_v25  ;;  %v1108_v30 = vsub.f32 %v1030_v14, %v5069_v21 }
  0xdc   :  { %4239 = vmatmul.mubr.msk.bf16.vlgmr.msra.gmra.mrb[8].mxu1 %vm586_vm0, %v1706_v1  ;;  %v675_v13 = vadd.f32 %v674_v3, %v673_v41  ;;  %v1500_v26 = vsel %vm586_vm0, %v5619_v19, 0.0  ;;  %v1109_v45 = vsub.f32 %v1030_v14, %v5071_v22  ;;  %v1110_v15 = vsub.f32 %v1030_v14, %v5074_v24 }
  0xdd   :  { %v1499_v34 = vadd.f32 %v1498_v23, %v1497_v18  ;;  %v1171_v40 = vmul.f32 %v1107_v47, %v1107_v47  ;;  %v1172_v28 = vmul.f32 %v1108_v30, %v1108_v30  ;;  %v298_v38 = vsub.f32 %v221_v44, %v5067_v20 }
  0xde   :  { %v676_v6 = vrot.slane %v675_v13, 1  ;;  %v1173_v61 = vmul.f32 %v1109_v45, %v1109_v45  ;;  %v1174_v52 = vmul.f32 %v1110_v15, %v1110_v15  ;;  %v299_v57 = vsub.f32 %v221_v44, %v5069_v21 }
  0xdf   :  { %v1501_v0 = vadd.f32 %v1500_v26, %v1499_v34  ;;  %v1235_v63 = vmul.f32 -480.5, %v1171_v40  ;;  %v1236_v43 = vmul.f32 -480.5, %v1172_v28  ;;  %v300_v32 = vsub.f32 %v221_v44, %v5071_v22 }
  0xe0   :  { %v4522_v31 = vpop.eup %4521  ;;  %v677_v46 = vadd.f32 %v676_v6, %v675_v13  ;;  %v1237_v11 = vmul.f32 -480.5, %v1173_v61  ;;  %v1238_v37 = vmul.f32 -480.5, %v1174_v52  ;;  %v301_v25 = vsub.f32 %v221_v44, %v5074_v24 }
  0xe1   :  { %v1659_v49 = vmul.f32 %v4522_v31, %v5531_v60  ;;  %v1660_v56 = vmul.f32 %v4522_v31, %v5537_v29  ;;  %v1661_v51 = vmul.f32 %v4522_v31, %v5541_v53  ;;  %v1662_v5 = vmul.f32 %v4522_v31, %v5545_v54 }
  0xe2   :  { %v5638_v50 = vpop.eup %4523  ;;  %4531 = vrcp.f32 %v677_v46  ;;  %v1502_v10 = vrot.slane %v1501_v0, 4  ;;  %v1335_v41 = vmul.f32 1.442695, %v1235_v63  ;;  %v1337_v14 = vmul.f32 1.442695, %v1236_v43 }
  0xe3   :  { %v5640_v27 = vpop.eup %4525  ;;  %v1741_v1 = vpack.c.bf16 %v1660_v56, %v1659_v49  ;;  %v1742_v33 = vpack.c.bf16 %v1662_v5, %v1661_v51  ;;  %v678_v44 = vsel %vm586_vm0, %v5638_v50, 0.0  ;;  %v1339_v60 = vmul.f32 1.442695, %v1237_v11 }
  0xe4   :  { %v5644_v3 = vpop.eup %4527  ;;  %v1503_v29 = vadd.f32 %v1502_v10, %v1501_v0  ;;  %v679_v53 = vsel %vm586_vm0, %v5640_v27, 0.0  ;;  %4533 = vpow2.f32 %v1335_v41  ;;  %v1341_v54 = vmul.f32 1.442695, %v1238_v37 }
  0xe5   :  { %v5648_v17 = vpop.eup %4529  ;;  %4336 = vmatprep.subr.msk.bf16.mxu1 %vm586_vm0, %v1741_v1  ;;  %v2193_v47 = vsel %vm586_vm0, %v1741_v1, 0  ;;  %v2196_v18 = vsel %vm586_vm0, %v1742_v33, 0  ;;  %v680_v23 = vadd.f32 %v679_v53, %v678_v44  ;;  %v681_v30 = vsel %vm586_vm0, %v5644_v3, 0.0 }
  0xe6   :  { %4251 = vmatpush3.bf16.xpose.msra.mxu1 %v2193_v47  ;;  %v1504_v13 = vrot.slane %v1503_v29, 2  ;;  %v683_v26 = vsel %vm586_vm0, %v5648_v17, 0.0  ;;  %4535 = vpow2.f32 %v1337_v14  ;;  %v362_v45 = vmul.f32 %v298_v38, %v298_v38 }
  0xe7   :  { %4337 = vmatprep.subr.msk.bf16.mxu1 %vm586_vm0, %v1742_v33  ;;  %v682_v15 = vadd.f32 %v681_v30, %v680_v23  ;;  %4537 = vpow2.f32 %v1339_v60  ;;  %v363_v34 = vmul.f32 %v299_v57, %v299_v57  ;;  %v364_v40 = vmul.f32 %v300_v32, %v300_v32 }
  0xe8   :  { %v1505_v28 = vadd.f32 %v1504_v13, %v1503_v29  ;;  %4539 = vpow2.f32 %v1341_v54  ;;  %v365_v6 = vmul.f32 %v301_v25, %v301_v25  ;;  %v426_v61 = vmul.f32 -480.5, %v362_v45 }
  0xe9   :  { %v684_v52 = vadd.f32 %v683_v26, %v682_v15  ;;  %v427_v0 = vmul.f32 -480.5, %v363_v34  ;;  %v428_v63 = vmul.f32 -480.5, %v364_v40  ;;  %v1034_v43 = vrot.slane %v987_v55, %v5063_v16 }
  0xea   :  { %v1506_v31 = vrot.slane %v1505_v28, 1  ;;  %v429_v38 = vmul.f32 -480.5, %v365_v6  ;;  %v522_v46 = vmul.f32 1.442695, %v426_v61  ;;  %v152_v11 = vcombine.high %v5589_v48, %v5589_v48 }
  0xeb   :  { %v685_v57 = vrot.slane %v684_v52, 4  ;;  %v524_v32 = vmul.f32 1.442695, %v427_v0  ;;  %v526_v37 = vmul.f32 1.442695, %v428_v63  ;;  %v1111_v25 = vsub.f32 %v1034_v43, %v5067_v20 }
  0xec   :  { %v4532_v49 = vpop.eup %4531  ;;  %v1507_v56 = vadd.f32 %v1506_v31, %v1505_v28  ;;  %4541 = vpow2.f32 %v522_v46  ;;  %v528_v51 = vmul.f32 1.442695, %v429_v38  ;;  %v1112_v5 = vsub.f32 %v1034_v43, %v5069_v21 }
  0xed   :  { %v851_v42 = vmul.f32 %v4532_v49, %v5559_v7  ;;  %v852_v55 = vmul.f32 %v4532_v49, %v5565_v39  ;;  %v853_v10 = vmul.f32 %v4532_v49, %v5569_v9  ;;  %v854_v41 = vmul.f32 %v4532_v49, %v5575_v36 }
  0xee   :  { %v5670_v48 = vpop.eup %4533  ;;  %4253 = vmatpush3.bf16.xpose.msra.mxu1 %v2196_v18  ;;  %4543 = vrcp.f32 %v1507_v56  ;;  %v686_v14 = vadd.f32 %v685_v57, %v684_v52  ;;  %v1113_v1 = vsub.f32 %v1034_v43, %v5071_v22  ;;  %v1114_v33 = vsub.f32 %v1034_v43, %v5074_v24 }
  0xef   :  { %v1707_v44 = vpack.c.bf16 %v852_v55, %v851_v42  ;;  %v1708_v60 = vpack.c.bf16 %v854_v41, %v853_v10  ;;  %v1508_v7 = vsel %vm586_vm0, %v5670_v48, 0.0  ;;  %4545 = vpow2.f32 %v524_v32 }
  0xf0   :  { %v5676_v39 = vpop.eup %4535  ;;  %v687_v9 = vrot.slane %v686_v14, 2  ;;  %4547 = vpow2.f32 %v526_v37  ;;  %v1175_v36 = vmul.f32 %v1111_v25, %v1111_v25  ;;  %v1176_v29 = vmul.f32 %v1112_v5, %v1112_v5 }
  0xf1   :  { %v5678_v53 = vpop.eup %4537  ;;  %4246 = vmatprep.mubr.msk.bf16.mxu0 %vm586_vm0, %v1707_v44  ;;  %v1509_v54 = vsel %vm586_vm0, %v5676_v39, 0.0  ;;  %4549 = vpow2.f32 %v528_v51  ;;  %v1177_v47 = vmul.f32 %v1113_v1, %v1113_v1  ;;  %v1178_v18 = vmul.f32 %v1114_v33, %v1114_v33 }
  0xf2   :  { %v5683_v23 = vpop.eup %4539  ;;  %4247 = vmatmul.mubr.msk.bf16.vlgmr.msra.gmra.mrb[12].mxu0 %vm586_vm0, %v1708_v60  ;;  %v688_v30 = vadd.f32 %v687_v9, %v686_v14  ;;  %v1510_v13 = vadd.f32 %v1509_v54, %v1508_v7  ;;  %v1511_v26 = vsel %vm586_vm0, %v5678_v53, 0.0  ;;  %v1239_v45 = vmul.f32 -480.5, %v1175_v36 }
  0xf3   :  { %v1513_v15 = vsel %vm586_vm0, %v5683_v23, 0.0  ;;  %v1240_v34 = vmul.f32 -480.5, %v1176_v29  ;;  %v1241_v40 = vmul.f32 -480.5, %v1177_v47  ;;  %v1242_v28 = vmul.f32 -480.5, %v1178_v18 }
  0xf4   :  { %v689_v6 = vrot.slane %v688_v30, 1  ;;  %v1512_v61 = vadd.f32 %v1511_v26, %v1510_v13  ;;  %v1343_v52 = vmul.f32 1.442695, %v1239_v45  ;;  %v5691_v0 = vrot.slane %v152_v11, %v5061_v8 }
  0xf5   :  { %v1345_v63 = vmul.f32 1.442695, %v1240_v34  ;;  %v1347_v43 = vmul.f32 1.442695, %v1241_v40  ;;  %v1349_v31 = vmul.f32 1.442695, %v1242_v28  ;;  %v989_v38 = vcombine.high %v5592_v62, %v5592_v62 }
  0xf6   :  { %v5695_v46 = vpop.eup %4541  ;;  %v690_v57 = vadd.f32 %v689_v6, %v688_v30  ;;  %v1514_v32 = vadd.f32 %v1513_v15, %v1512_v61  ;;  %4551 = vpow2.f32 %v1343_v52  ;;  %v225_v37 = vrot.slane %v5691_v0, %v5063_v16 }
  0xf7   :  { %v691_v25 = vsel %vm586_vm0, %v5695_v46, 0.0  ;;  %4553 = vpow2.f32 %v1345_v63  ;;  %v5702_v11 = vrot.slane %v989_v38, %v5063_v16  ;;  %v182_v49 = vcombine.high %v5596_v2, %v5596_v2 }
  0xf8   :  { %v4544_v56 = vpop.eup %4543  ;;  %4555 = vrcp.f32 %v690_v57  ;;  %v1515_v62 = vrot.slane %v1514_v32, 4  ;;  %v302_v51 = vsub.f32 %v225_v37, %v5067_v20  ;;  %v303_v5 = vsub.f32 %v225_v37, %v5069_v21 }
  0xf9   :  { %v5708_v42 = vpop.eup %4545  ;;  %v1663_v55 = vmul.f32 %v4544_v56, %v5604_v58  ;;  %v1664_v10 = vmul.f32 %v4544_v56, %v5610_v4  ;;  %v1665_v41 = vmul.f32 %v4544_v56, %v5614_v35  ;;  %v1666_v14 = vmul.f32 %v4544_v56, %v5619_v19 }
  0xfa   :  { %v5714_v1 = vpop.eup %4547  ;;  %v1516_v33 = vadd.f32 %v1515_v62, %v1514_v32  ;;  %v692_v44 = vsel %vm586_vm0, %v5708_v42, 0.0  ;;  %4557 = vpow2.f32 %v1347_v43  ;;  %v304_v60 = vsub.f32 %v225_v37, %v5071_v22 }
  0xfb   :  { %v5719_v7 = vpop.eup %4549  ;;  %v1743_v9 = vpack.c.bf16 %v1664_v10, %v1663_v55  ;;  %v1744_v36 = vpack.c.bf16 %v1666_v14, %v1665_v41  ;;  %v693_v58 = vadd.f32 %v692_v44, %v691_v25  ;;  %v694_v4 = vsel %vm586_vm0, %v5714_v1, 0.0 }
  0xfc   :  { %v1517_v35 = vrot.slane %v1516_v33, 2  ;;  %v696_v19 = vsel %vm586_vm0, %v5719_v7, 0.0  ;;  %4559 = vpow2.f32 %v1349_v31  ;;  %v305_v29 = vsub.f32 %v225_v37, %v5074_v24 }
  0xfd   :  { %4338 = vmatprep.subr.msk.bf16.mxu0 %vm586_vm0, %v1743_v9  ;;  %v2254_v54 = vsel %vm586_vm0, %v1743_v9, 0  ;;  %v2257_v47 = vsel %vm586_vm0, %v1744_v36, 0  ;;  %v695_v18 = vadd.f32 %v694_v4, %v693_v58  ;;  %v366_v30 = vmul.f32 %v302_v51, %v302_v51 }
  0xfe   :  { %4259 = vmatpush3.bf16.xpose.msra.mxu0 %v2254_v54  ;;  %v1518_v13 = vadd.f32 %v1517_v35, %v1516_v33  ;;  %v367_v26 = vmul.f32 %v303_v5, %v303_v5  ;;  %v368_v45 = vmul.f32 %v304_v60, %v304_v60  ;;  %v369_v15 = vmul.f32 %v305_v29, %v305_v29 }
  0xff   :  { %4339 = vmatprep.subr.msk.bf16.mxu0 %vm586_vm0, %v1744_v36  ;;  %v697_v34 = vadd.f32 %v696_v19, %v695_v18  ;;  %v430_v40 = vmul.f32 -480.5, %v366_v30  ;;  %v1115_v28 = vsub.f32 %v5702_v11, %v5067_v20  ;;  %v1116_v6 = vsub.f32 %v5702_v11, %v5069_v21 }
 0x100   :  { %v5734_v61 = vpop.eup %4551  ;;  %v1519_v52 = vrot.slane %v1518_v13, 1  ;;  %v431_v63 = vmul.f32 -480.5, %v367_v26  ;;  %v432_v43 = vmul.f32 -480.5, %v368_v45  ;;  %v433_v31 = vmul.f32 -480.5, %v369_v15 }
 0x101   :  { %v5736_v38 = vpop.eup %4553  ;;  %v698_v57 = vrot.slane %v697_v34, 4  ;;  %v1521_v32 = vsel %vm586_vm0, %v5734_v61, 0.0  ;;  %v530_v37 = vmul.f32 1.442695, %v430_v40  ;;  %v1117_v25 = vsub.f32 %v5702_v11, %v5071_v22 }
 0x102   :  { %v4556_v56 = vpop.eup %4555  ;;  %v1520_v62 = vadd.f32 %v1519_v52, %v1518_v13  ;;  %v1522_v51 = vsel %vm586_vm0, %v5736_v38, 0.0  ;;  %v532_v5 = vmul.f32 1.442695, %v431_v63  ;;  %v534_v55 = vmul.f32 1.442695, %v432_v43 }
 0x103   :  { %v855_v10 = vmul.f32 %v4556_v56, %v5638_v50  ;;  %v856_v41 = vmul.f32 %v4556_v56, %v5640_v27  ;;  %v857_v14 = vmul.f32 %v4556_v56, %v5644_v3  ;;  %v858_v33 = vmul.f32 %v4556_v56, %v5648_v17 }
 0x104   :  { %v5748_v44 = vpop.eup %4557  ;;  %4561 = vrcp.f32 %v1520_v62  ;;  %v699_v60 = vadd.f32 %v698_v57, %v697_v34  ;;  %v1523_v9 = vadd.f32 %v1522_v51, %v1521_v32  ;;  %v536_v36 = vmul.f32 1.442695, %v433_v31 }
 0x105   :  { %v1709_v58 = vpack.c.bf16 %v856_v41, %v855_v10  ;;  %v1710_v4 = vpack.c.bf16 %v858_v33, %v857_v14  ;;  %v1524_v35 = vsel %vm586_vm0, %v5748_v44, 0.0  ;;  %4563 = vpow2.f32 %v530_v37 }
 0x106   :  { %v5752_v19 = vpop.eup %4559  ;;  %4261 = vmatpush3.bf16.xpose.msra.mxu0 %v2257_v47  ;;  %v700_v50 = vrot.slane %v699_v60, 2  ;;  %v1525_v27 = vadd.f32 %v1524_v35, %v1523_v9  ;;  %4565 = vpow2.f32 %v532_v5  ;;  %v1118_v3 = vsub.f32 %v5702_v11, %v5074_v24 }
 0x107   :  { %4254 = vmatprep.mubr.msk.bf16.mxu1 %vm586_vm0, %v1709_v58  ;;  %v1526_v17 = vsel %vm586_vm0, %v5752_v19, 0.0  ;;  %4567 = vpow2.f32 %v534_v55  ;;  %v1179_v29 = vmul.f32 %v1115_v28, %v1115_v28  ;;  %v1180_v54 = vmul.f32 %v1116_v6, %v1116_v6 }
 0x108   :  { %4255 = vmatmul.mubr.msk.bf16.vlgmr.msra.gmra.mrb[12].mxu1 %vm586_vm0, %v1710_v4  ;;  %v701_v18 = vadd.f32 %v700_v50, %v699_v60  ;;  %v1527_v30 = vadd.f32 %v1526_v17, %v1525_v27  ;;  %4569 = vpow2.f32 %v536_v36  ;;  %v1181_v47 = vmul.f32 %v1117_v25, %v1117_v25 }
 0x109   :  { %v1182_v13 = vmul.f32 %v1118_v3, %v1118_v3  ;;  %v1243_v26 = vmul.f32 -480.5, %v1179_v29  ;;  %v1244_v45 = vmul.f32 -480.5, %v1180_v54  ;;  %v229_v11 = vrot.slane %v182_v49, %v5063_v16 }
 0x10a   :  { %v702_v15 = vrot.slane %v701_v18, 1  ;;  %v1528_v34 = vrot.slane %v1527_v30, 4  ;;  %v1245_v40 = vmul.f32 -480.5, %v1181_v47  ;;  %v942_v28 = vcombine.high %v5480_v59, %v5480_v59 }
 0x10b   :  { %v1246_v6 = vmul.f32 -480.5, %v1182_v13  ;;  %v1351_v52 = vmul.f32 1.442695, %v1243_v26  ;;  %v1353_v63 = vmul.f32 1.442695, %v1244_v45  ;;  %v306_v43 = vsub.f32 %v229_v11, %v5067_v20 }
 0x10c   :  { %v703_v31 = vadd.f32 %v702_v15, %v701_v18  ;;  %v1529_v57 = vadd.f32 %v1528_v34, %v1527_v30  ;;  %v1355_v32 = vmul.f32 1.442695, %v1245_v40  ;;  %v307_v37 = vsub.f32 %v229_v11, %v5069_v21 }
 0x10d   :  { %4571 = vpow2.f32 %v1351_v52  ;;  %v1357_v25 = vmul.f32 1.442695, %v1246_v6  ;;  %v308_v2 = vsub.f32 %v229_v11, %v5071_v22  ;;  %v309_v49 = vsub.f32 %v229_v11, %v5074_v24 }
 0x10e   :  { %v4562_v56 = vpop.eup %4561  ;;  %4573 = vrcp.f32 %v703_v31  ;;  %v1530_v62 = vrot.slane %v1529_v57, 2  ;;  %v370_v59 = vmul.f32 %v306_v43, %v306_v43  ;;  %v371_v51 = vmul.f32 %v307_v37, %v307_v37 }
 0x10f   :  { %v5770_v5 = vpop.eup %4563  ;;  %v1667_v55 = vmul.f32 %v4562_v56, %v5670_v48  ;;  %v1668_v10 = vmul.f32 %v4562_v56, %v5676_v39  ;;  %v1669_v41 = vmul.f32 %v4562_v56, %v5678_v53  ;;  %v1670_v14 = vmul.f32 %v4562_v56, %v5683_v23 }
 0x110   :  { %v5776_v33 = vpop.eup %4565  ;;  %v1531_v60 = vadd.f32 %v1530_v62, %v1529_v57  ;;  %v704_v9 = vsel %vm586_vm0, %v5770_v5, 0.0  ;;  %4575 = vpow2.f32 %v1353_v63  ;;  %v372_v36 = vmul.f32 %v308_v2, %v308_v2 }
 0x111   :  { %v5780_v58 = vpop.eup %4567  ;;  %v1745_v4 = vpack.c.bf16 %v1668_v10, %v1667_v55  ;;  %v1746_v35 = vpack.c.bf16 %v1670_v14, %v1669_v41  ;;  %v705_v48 = vsel %vm586_vm0, %v5776_v33, 0.0  ;;  %4577 = vpow2.f32 %v1355_v32 }
 0x112   :  { %v5784_v39 = vpop.eup %4569  ;;  %v1532_v53 = vrot.slane %v1531_v60, 1  ;;  %v706_v23 = vadd.f32 %v705_v48, %v704_v9  ;;  %v707_v50 = vsel %vm586_vm0, %v5780_v58, 0.0  ;;  %4579 = vpow2.f32 %v1357_v25 }
 0x113   :  { %4340 = vmatprep.subr.msk.bf16.mxu1 %vm586_vm0, %v1745_v4  ;;  %v2315_v27 = vsel %vm586_vm0, %v1745_v4, 0  ;;  %v2318_v3 = vsel %vm586_vm0, %v1746_v35, 0  ;;  %v709_v17 = vsel %vm586_vm0, %v5784_v39, 0.0  ;;  %v373_v29 = vmul.f32 %v309_v49, %v309_v49 }
 0x114   :  { %4267 = vmatpush3.bf16.xpose.msra.mxu1 %v2315_v27  ;;  %v1533_v54 = vadd.f32 %v1532_v53, %v1531_v60  ;;  %v708_v18 = vadd.f32 %v707_v50, %v706_v23  ;;  %v434_v30 = vmul.f32 -480.5, %v370_v59  ;;  %v435_v47 = vmul.f32 -480.5, %v371_v51 }
 0x115   :  { %4341 = vmatprep.subr.msk.bf16.mxu1 %vm586_vm0, %v1746_v35  ;;  %v436_v13 = vmul.f32 -480.5, %v372_v36  ;;  %v437_v26 = vmul.f32 -480.5, %v373_v29  ;;  %v5795_v45 = vrot.slane %v942_v28, %v5061_v8  ;;  %v184_v11 = vcombine.high %v5691_v0, %v5691_v0 }
 0x116   :  { %4581 = vrcp.f32 %v1533_v54  ;;  %v710_v15 = vadd.f32 %v709_v17, %v708_v18  ;;  %v538_v34 = vmul.f32 1.442695, %v434_v30  ;;  %v540_v40 = vmul.f32 1.442695, %v435_v47 }
 0x117   :  { %v5799_v6 = vpop.eup %4571  ;;  %v542_v52 = vmul.f32 1.442695, %v436_v13  ;;  %v544_v63 = vmul.f32 1.442695, %v437_v26  ;;  %v5803_v43 = vrot.slane %v5795_v45, %v5061_v8  ;;  %v233_v31 = vrot.slane %v184_v11, %v5063_v16 }
 0x118   :  { %v4574_v57 = vpop.eup %4573  ;;  %v711_v28 = vrot.slane %v710_v15, 4  ;;  %v1534_v32 = vsel %vm586_vm0, %v5799_v6, 0.0  ;;  %4583 = vpow2.f32 %v538_v34  ;;  %v958_v0 = vcombine.high %v5795_v45, %v5795_v45 }
 0x119   :  { %v859_v37 = vmul.f32 %v4574_v57, %v5695_v46  ;;  %v860_v25 = vmul.f32 %v4574_v57, %v5708_v42  ;;  %v861_v2 = vmul.f32 %v4574_v57, %v5714_v1  ;;  %v862_v49 = vmul.f32 %v4574_v57, %v5719_v7 }
 0x11a   :  { %v5814_v56 = vpop.eup %4575  ;;  %v712_v62 = vadd.f32 %v711_v28, %v710_v15  ;;  %4585 = vpow2.f32 %v540_v40  ;;  %v1042_v59 = vrot.slane %v5803_v43, %v5063_v16  ;;  %v5819_v51 = vsub.f32 %v233_v31, %v5067_v20 }
 0x11b   :  { %v5821_v55 = vpop.eup %4577  ;;  %v1711_v10 = vpack.c.bf16 %v860_v25, %v859_v37  ;;  %v1712_v46 = vpack.c.bf16 %v862_v49, %v861_v2  ;;  %v1535_v42 = vsel %vm586_vm0, %v5814_v56, 0.0  ;;  %4587 = vpow2.f32 %v542_v52 }
 0x11c   :  { %v5825_v1 = vpop.eup %4579  ;;  %4269 = vmatpush3.bf16.xpose.msra.mxu1 %v2318_v3  ;;  %v713_v7 = vrot.slane %v712_v62, 2  ;;  %v1536_v41 = vadd.f32 %v1535_v42, %v1534_v32  ;;  %v1537_v14 = vsel %vm586_vm0, %v5821_v55, 0.0  ;;  %4589 = vpow2.f32 %v544_v63 }
 0x11d   :  { %4262 = vmatprep.mubr.msk.bf16.mxu0 %vm586_vm0, %v1711_v10  ;;  %v1539_v60 = vsel %vm586_vm0, %v5825_v1, 0.0  ;;  %v1119_v9 = vsub.f32 %v1042_v59, %v5067_v20  ;;  %v1120_v36 = vsub.f32 %v1042_v59, %v5069_v21  ;;  %v1121_v4 = vsub.f32 %v1042_v59, %v5071_v22 }
 0x11e   :  { %4263 = vmatmul.mubr.msk.bf16.vlgmr.msra.gmra.mrb[16].mxu0 %vm586_vm0, %v1712_v46  ;;  %v714_v35 = vadd.f32 %v713_v7, %v712_v62  ;;  %v1538_v48 = vadd.f32 %v1537_v14, %v1536_v41  ;;  %v1122_v53 = vsub.f32 %v1042_v59, %v5074_v24  ;;  %v311_v23 = vsub.f32 %v233_v31, %v5069_v21 }
 0x11f   :  { %v1183_v50 = vmul.f32 %v1119_v9, %v1119_v9  ;;  %v1184_v27 = vmul.f32 %v1120_v36, %v1120_v36  ;;  %v1185_v3 = vmul.f32 %v1121_v4, %v1121_v4  ;;  %v312_v17 = vsub.f32 %v233_v31, %v5071_v22 }
 0x120   :  { %v4582_v29 = vpop.eup %4581  ;;  %v715_v54 = vrot.slane %v714_v35, 1  ;;  %v1540_v18 = vadd.f32 %v1539_v60, %v1538_v48  ;;  %v1186_v30 = vmul.f32 %v1122_v53, %v1122_v53  ;;  %v313_v47 = vsub.f32 %v233_v31, %v5074_v24 }
 0x121   :  { %v1671_v13 = vmul.f32 %v4582_v29, %v5734_v61  ;;  %v1672_v26 = vmul.f32 %v4582_v29, %v5736_v38  ;;  %v1673_v11 = vmul.f32 %v4582_v29, %v5748_v44  ;;  %v1674_v15 = vmul.f32 %v4582_v29, %v5752_v19 }
 0x122   :  { %v5844_v34 = vpop.eup %4583  ;;  %v716_v40 = vadd.f32 %v715_v54, %v714_v35  ;;  %v1541_v52 = vrot.slane %v1540_v18, 4  ;;  %v1247_v63 = vmul.f32 -480.5, %v1183_v50  ;;  %v1248_v57 = vmul.f32 -480.5, %v1184_v27 }
 0x123   :  { %v1747_v28 = vpack.c.bf16 %v1672_v26, %v1671_v13  ;;  %v1748_v32 = vpack.c.bf16 %v1674_v15, %v1673_v11  ;;  %v717_v37 = vsel %vm586_vm0, %v5844_v34, 0.0  ;;  %v1249_v31 = vmul.f32 -480.5, %v1185_v3 }
 0x124   :  { %v5848_v25 = vpop.eup %4585  ;;  %4591 = vrcp.f32 %v716_v40  ;;  %v1542_v61 = vadd.f32 %v1541_v52, %v1540_v18  ;;  %v1250_v38 = vmul.f32 -480.5, %v1186_v30  ;;  %v1359_v44 = vmul.f32 1.442695, %v1247_v63 }
 0x125   :  { %v5850_v2 = vpop.eup %4587  ;;  %4342 = vmatprep.subr.msk.bf16.mxu0 %vm586_vm0, %v1747_v28  ;;  %v2376_v19 = vsel %vm586_vm0, %v1747_v28, 0  ;;  %v2379_v49 = vsel %vm586_vm0, %v1748_v32, 0  ;;  %v718_v62 = vsel %vm586_vm0, %v5848_v25, 0.0  ;;  %v1361_v59 = vmul.f32 1.442695, %v1248_v57 }
 0x126   :  { %v5857_v10 = vpop.eup %4589  ;;  %4275 = vmatpush3.bf16.xpose.msra.mxu0 %v2376_v19  ;;  %v1543_v46 = vrot.slane %v1542_v61, 2  ;;  %v719_v42 = vadd.f32 %v718_v62, %v717_v37  ;;  %v720_v7 = vsel %vm586_vm0, %v5850_v2, 0.0  ;;  %4593 = vpow2.f32 %v1359_v44 }
 0x127   :  { %4343 = vmatprep.subr.msk.bf16.mxu0 %vm586_vm0, %v1748_v32  ;;  %v722_v41 = vsel %vm586_vm0, %v5857_v10, 0.0  ;;  %4595 = vpow2.f32 %v1361_v59  ;;  %v1363_v14 = vmul.f32 1.442695, %v1249_v31  ;;  %v1365_v60 = vmul.f32 1.442695, %v1250_v38 }
 0x128   :  { %v1544_v9 = vadd.f32 %v1543_v46, %v1542_v61  ;;  %v721_v36 = vadd.f32 %v720_v7, %v719_v42  ;;  %v374_v4 = vmul.f32 %v5819_v51, %v5819_v51  ;;  %v375_v35 = vmul.f32 %v311_v23, %v311_v23 }
 0x129   :  { %4597 = vpow2.f32 %v1363_v14  ;;  %v376_v48 = vmul.f32 %v312_v17, %v312_v17  ;;  %v377_v53 = vmul.f32 %v313_v47, %v313_v47  ;;  %v5870_v50 = vrot.slane %v958_v0, %v5061_v8 }
 0x12a   :  { %v1545_v27 = vrot.slane %v1544_v9, 1  ;;  %v723_v3 = vadd.f32 %v722_v41, %v721_v36  ;;  %4599 = vpow2.f32 %v1365_v60  ;;  %v438_v29 = vmul.f32 -480.5, %v374_v4 }
 0x12b   :  { %v439_v54 = vmul.f32 -480.5, %v375_v35  ;;  %v440_v18 = vmul.f32 -480.5, %v376_v48  ;;  %v441_v30 = vmul.f32 -480.5, %v377_v53  ;;  %v1046_v51 = vrot.slane %v5870_v50, %v5063_v16 }
 0x12c   :  { %v1546_v23 = vadd.f32 %v1545_v27, %v1544_v9  ;;  %v724_v13 = vrot.slane %v723_v3, 4  ;;  %v546_v17 = vmul.f32 1.442695, %v438_v29  ;;  %v137_v47 = vcombine.high %v5580_v12, %v5580_v12 }
 0x12d   :  { %v548_v26 = vmul.f32 1.442695, %v439_v54  ;;  %v550_v45 = vmul.f32 1.442695, %v440_v18  ;;  %v552_v0 = vmul.f32 1.442695, %v441_v30  ;;  %v1123_v11 = vsub.f32 %v1046_v51, %v5067_v20 }
 0x12e   :  { %v4592_v15 = vpop.eup %4591  ;;  %4601 = vrcp.f32 %v1546_v23  ;;  %4277 = vmatpush3.bf16.xpose.msra.mxu0 %v2379_v49  ;;  %v725_v40 = vadd.f32 %v724_v13, %v723_v3  ;;  %v1124_v52 = vsub.f32 %v1046_v51, %v5069_v21  ;;  %v1125_v63 = vsub.f32 %v1046_v51, %v5071_v22 }
 0x12f   :  { %v863_v57 = vmul.f32 %v4592_v15, %v5770_v5  ;;  %v864_v28 = vmul.f32 %v4592_v15, %v5776_v33  ;;  %v865_v32 = vmul.f32 %v4592_v15, %v5780_v58  ;;  %v866_v12 = vmul.f32 %v4592_v15, %v5784_v39 }
 0x130   :  { %v5883_v37 = vpop.eup %4593  ;;  %v726_v31 = vrot.slane %v725_v40, 2  ;;  %4603 = vpow2.f32 %v546_v17  ;;  %v1126_v61 = vsub.f32 %v1046_v51, %v5074_v24  ;;  %v1187_v38 = vmul.f32 %v1123_v11, %v1123_v11 }
 0x131   :  { %v5886_v44 = vpop.eup %4595  ;;  %v1713_v19 = vpack.c.bf16 %v864_v28, %v863_v57  ;;  %v1714_v49 = vpack.c.bf16 %v866_v12, %v865_v32  ;;  %v1547_v5 = vsel %vm586_vm0, %v5883_v37, 0.0  ;;  %4605 = vpow2.f32 %v548_v26 }
 0x132   :  { %v727_v33 = vadd.f32 %v726_v31, %v725_v40  ;;  %v1548_v58 = vsel %vm586_vm0, %v5886_v44, 0.0  ;;  %4607 = vpow2.f32 %v550_v45  ;;  %v1188_v39 = vmul.f32 %v1124_v52, %v1124_v52 }
 0x133   :  { %v5892_v62 = vpop.eup %4597  ;;  %4270 = vmatprep.mubr.msk.bf16.mxu1 %vm586_vm0, %v1713_v19  ;;  %v1549_v59 = vadd.f32 %v1548_v58, %v1547_v5  ;;  %4609 = vpow2.f32 %v552_v0  ;;  %v1189_v46 = vmul.f32 %v1125_v63, %v1125_v63  ;;  %v1190_v42 = vmul.f32 %v1126_v61, %v1126_v61 }
 0x134   :  { %v5895_v7 = vpop.eup %4599  ;;  %4271 = vmatmul.mubr.msk.bf16.vlgmr.msra.gmra.mrb[16].mxu1 %vm586_vm0, %v1714_v49  ;;  %v728_v41 = vrot.slane %v727_v33, 1  ;;  %v1550_v14 = vsel %vm586_vm0, %v5892_v62, 0.0  ;;  %v1251_v60 = vmul.f32 -480.5, %v1187_v38  ;;  %v1252_v9 = vmul.f32 -480.5, %v1188_v39 }
 0x135   :  { %v1551_v36 = vadd.f32 %v1550_v14, %v1549_v59  ;;  %v1552_v4 = vsel %vm586_vm0, %v5895_v7, 0.0  ;;  %v1253_v35 = vmul.f32 -480.5, %v1189_v46  ;;  %v1254_v48 = vmul.f32 -480.5, %v1190_v42 }
 0x136   :  { %v729_v53 = vadd.f32 %v728_v41, %v727_v33  ;;  %v1367_v27 = vmul.f32 1.442695, %v1251_v60  ;;  %v1369_v3 = vmul.f32 1.442695, %v1252_v9  ;;  %v5903_v29 = vrot.slane %v137_v47, %v5061_v8 }
 0x137   :  { %v1553_v54 = vadd.f32 %v1552_v4, %v1551_v36  ;;  %v1371_v18 = vmul.f32 1.442695, %v1253_v35  ;;  %v1373_v30 = vmul.f32 1.442695, %v1254_v48  ;;  %v988_v51 = vcombine.high %v5803_v43, %v5803_v43 }
 0x138   :  { %v4602_v23 = vpop.eup %4601  ;;  %4611 = vrcp.f32 %v729_v53  ;;  %v5909_v13 = vrot.slane %v5903_v29, %v5061_v8  ;;  %v153_v17 = vcombine.high %v5903_v29, %v5903_v29  ;;  %v990_v26 = vcombine.high %v5870_v50, %v5870_v50 }
 0x139   :  { %v1675_v47 = vmul.f32 %v4602_v23, %v5799_v6  ;;  %v1676_v45 = vmul.f32 %v4602_v23, %v5814_v56  ;;  %v1677_v0 = vmul.f32 %v4602_v23, %v5821_v55  ;;  %v1678_v43 = vmul.f32 %v4602_v23, %v5825_v1 }
 0x13a   :  { %v5919_v11 = vpop.eup %4603  ;;  %v1554_v15 = vrot.slane %v1553_v54, 4  ;;  %4613 = vpow2.f32 %v1367_v27  ;;  %v237_v40 = vrot.slane %v5909_v13, %v5063_v16  ;;  %v1050_v52 = vrot.slane %v988_v51, %v5063_v16 }
 0x13b   :  { %v5924_v63 = vpop.eup %4605  ;;  %v1749_v57 = vpack.c.bf16 %v1676_v45, %v1675_v47  ;;  %v1750_v28 = vpack.c.bf16 %v1678_v43, %v1677_v0  ;;  %v730_v6 = vsel %vm586_vm0, %v5919_v11, 0.0  ;;  %4615 = vpow2.f32 %v1369_v3 }
 0x13c   :  { %v5928_v56 = vpop.eup %4607  ;;  %v1555_v55 = vadd.f32 %v1554_v15, %v1553_v54  ;;  %v731_v1 = vsel %vm586_vm0, %v5924_v63, 0.0  ;;  %4617 = vpow2.f32 %v1371_v18  ;;  %v314_v32 = vsub.f32 %v237_v40, %v5067_v20 }
 0x13d   :  { %v5933_v12 = vpop.eup %4609  ;;  %4344 = vmatprep.subr.msk.bf16.mxu1 %vm586_vm0, %v1749_v57  ;;  %v2437_v31 = vsel %vm586_vm0, %v1749_v57, 0  ;;  %v2440_v61 = vsel %vm586_vm0, %v1750_v28, 0  ;;  %v732_v38 = vadd.f32 %v731_v1, %v730_v6  ;;  %v733_v19 = vsel %vm586_vm0, %v5928_v56, 0.0 }
 0x13e   :  { %4283 = vmatpush3.bf16.xpose.msra.mxu1 %v2437_v31  ;;  %v1556_v49 = vrot.slane %v1555_v55, 2  ;;  %v735_v5 = vsel %vm586_vm0, %v5933_v12, 0.0  ;;  %4619 = vpow2.f32 %v1373_v30  ;;  %v315_v33 = vsub.f32 %v237_v40, %v5069_v21 }
 0x13f   :  { %4345 = vmatprep.subr.msk.bf16.mxu1 %vm586_vm0, %v1750_v28  ;;  %v734_v58 = vadd.f32 %v733_v19, %v732_v38  ;;  %v316_v39 = vsub.f32 %v237_v40, %v5071_v22  ;;  %v317_v59 = vsub.f32 %v237_v40, %v5074_v24  ;;  %v378_v46 = vmul.f32 %v314_v32, %v314_v32 }
 0x140   :  { %v1557_v42 = vadd.f32 %v1556_v49, %v1555_v55  ;;  %v379_v41 = vmul.f32 %v315_v33, %v315_v33  ;;  %v1127_v14 = vsub.f32 %v1050_v52, %v5067_v20  ;;  %v1128_v60 = vsub.f32 %v1050_v52, %v5069_v21 }
 0x141   :  { %v736_v9 = vadd.f32 %v735_v5, %v734_v58  ;;  %v380_v36 = vmul.f32 %v316_v39, %v316_v39  ;;  %v381_v4 = vmul.f32 %v317_v59, %v317_v59  ;;  %v442_v35 = vmul.f32 -480.5, %v378_v46 }
 0x142   :  { %v4612_v48 = vpop.eup %4611  ;;  %v1558_v53 = vrot.slane %v1557_v42, 1  ;;  %v443_v27 = vmul.f32 -480.5, %v379_v41  ;;  %v1129_v3 = vsub.f32 %v1050_v52, %v5071_v22  ;;  %v1130_v54 = vsub.f32 %v1050_v52, %v5074_v24 }
 0x143   :  { %v867_v18 = vmul.f32 %v4612_v48, %v5844_v34  ;;  %v868_v30 = vmul.f32 %v4612_v48, %v5848_v25  ;;  %v869_v51 = vmul.f32 %v4612_v48, %v5850_v2  ;;  %v870_v23 = vmul.f32 %v4612_v48, %v5857_v10 }
 0x144   :  { %v5954_v47 = vpop.eup %4613  ;;  %v1559_v45 = vadd.f32 %v1558_v53, %v1557_v42  ;;  %v737_v0 = vrot.slane %v736_v9, 4  ;;  %v444_v43 = vmul.f32 -480.5, %v380_v36  ;;  %v445_v15 = vmul.f32 -480.5, %v381_v4 }
 0x145   :  { %v5956_v40 = vpop.eup %4615  ;;  %v1715_v57 = vpack.c.bf16 %v868_v30, %v867_v18  ;;  %v1716_v28 = vpack.c.bf16 %v870_v23, %v869_v51  ;;  %v1560_v52 = vsel %vm586_vm0, %v5954_v47, 0.0  ;;  %v554_v34 = vmul.f32 1.442695, %v442_v35 }
 0x146   :  { %v5960_v6 = vpop.eup %4617  ;;  %4285 = vmatpush3.bf16.xpose.msra.mxu1 %v2440_v61  ;;  %4621 = vrcp.f32 %v1559_v45  ;;  %v738_v25 = vadd.f32 %v737_v0, %v736_v9  ;;  %v1561_v2 = vsel %vm586_vm0, %v5956_v40, 0.0  ;;  %v556_v10 = vmul.f32 1.442695, %v443_v27 }
 0x147   :  { %4278 = vmatprep.mubr.msk.bf16.mxu0 %vm586_vm0, %v1715_v57  ;;  %v1562_v55 = vadd.f32 %v1561_v2, %v1560_v52  ;;  %v1563_v1 = vsel %vm586_vm0, %v5960_v6, 0.0  ;;  %4623 = vpow2.f32 %v554_v34  ;;  %v558_v32 = vmul.f32 1.442695, %v444_v43 }
 0x148   :  { %v5967_v31 = vpop.eup %4619  ;;  %4279 = vmatmul.mubr.msk.bf16.vlgmr.msra.gmra.mrb[20].mxu0 %vm586_vm0, %v1716_v28  ;;  %v739_v38 = vrot.slane %v738_v25, 2  ;;  %4625 = vpow2.f32 %v556_v10  ;;  %v560_v61 = vmul.f32 1.442695, %v445_v15  ;;  %v1191_v19 = vmul.f32 %v1127_v14, %v1127_v14 }
 0x149   :  { %v1564_v49 = vadd.f32 %v1563_v1, %v1562_v55  ;;  %v1565_v5 = vsel %vm586_vm0, %v5967_v31, 0.0  ;;  %4627 = vpow2.f32 %v558_v32  ;;  %v1192_v33 = vmul.f32 %v1128_v60, %v1128_v60 }
 0x14a   :  { %v740_v58 = vadd.f32 %v739_v38, %v738_v25  ;;  %4629 = vpow2.f32 %v560_v61  ;;  %v1193_v39 = vmul.f32 %v1129_v3, %v1129_v3  ;;  %v1194_v59 = vmul.f32 %v1130_v54, %v1130_v54 }
 0x14b   :  { %v1566_v46 = vadd.f32 %v1565_v5, %v1564_v49  ;;  %v1255_v42 = vmul.f32 -480.5, %v1191_v19  ;;  %v1256_v41 = vmul.f32 -480.5, %v1192_v33  ;;  %v5976_v9 = vrot.slane %v153_v17, %v5061_v8 }
 0x14c   :  { %v741_v14 = vrot.slane %v740_v58, 1  ;;  %v1257_v36 = vmul.f32 -480.5, %v1193_v39  ;;  %v1258_v4 = vmul.f32 -480.5, %v1194_v59  ;;  %v5982_v60 = vrot.slane %v990_v26, %v5063_v16  ;;  %v5984_v35 = vpop.f32.mrb[0].mxu0 }
 0x14d   :  { %v1567_v48 = vrot.slane %v1566_v46, 4  ;;  %v1375_v53 = vmul.f32 1.442695, %v1255_v42  ;;  %v1377_v27 = vmul.f32 1.442695, %v1256_v41  ;;  %v241_v3 = vrot.slane %v5976_v9, %v5063_v16  ;;  %v5988_v29 = vpop.f32.mrb[1].mxu0 }
 0x14e   :  { %v742_v8 = vadd.f32 %v741_v14, %v740_v58  ;;  %v1379_v17 = vmul.f32 1.442695, %v1257_v36  ;;  %v1381_v54 = vmul.f32 1.442695, %v1258_v4  ;;  %v1131_v18 = vsub.f32 %v5982_v60, %v5067_v20  ;;  %v5992_v30 = vpop.f32.mrb[2].mxu0 }
 0x14f   :  { %v1568_v50 = vadd.f32 %v1567_v48, %v1566_v46  ;;  %4631 = vpow2.f32 %v1375_v53  ;;  %v318_v26 = vsub.f32 %v241_v3, %v5067_v20  ;;  %v319_v51 = vsub.f32 %v241_v3, %v5069_v21  ;;  %v5996_v23 = vpop.f32.mrb[3].mxu0 }
 0x150   :  { %v4622_v45 = vpop.eup %4621  ;;  %4633 = vrcp.f32 %v742_v8  ;;  %v320_v0 = vsub.f32 %v241_v3, %v5071_v22  ;;  %v321_v43 = vsub.f32 %v241_v3, %v5074_v24  ;;  %v1132_v15 = vsub.f32 %v5982_v60, %v5069_v21 }
 0x151   :  { %v6002_v57 = vpop.eup %4623  ;;  %v1679_v28 = vmul.f32 %v4622_v45, %v5883_v37  ;;  %v1680_v52 = vmul.f32 %v4622_v45, %v5886_v44  ;;  %v1569_v34 = vrot.slane %v1568_v50, 2  ;;  %v1681_v25 = vmul.f32 %v4622_v45, %v5892_v62 }
 0x152   :  { %v6007_v2 = vpop.eup %4625  ;;  %v1682_v10 = vmul.f32 %v4622_v45, %v5895_v7  ;;  %v743_v55 = vsel %vm586_vm0, %v6002_v57, 0.0  ;;  %4635 = vpow2.f32 %v1377_v27  ;;  %v382_v1 = vmul.f32 %v318_v26, %v318_v26 }
 0x153   :  { %v6012_v32 = vpop.eup %4627  ;;  %v1751_v38 = vpack.c.bf16 %v1680_v52, %v1679_v28  ;;  %v1570_v61 = vadd.f32 %v1569_v34, %v1568_v50  ;;  %v744_v37 = vsel %vm586_vm0, %v6007_v2, 0.0  ;;  %4637 = vpow2.f32 %v1379_v17  ;;  %v6016_v44 = vpop.f32.mrb[0].mxu1 }
 0x154   :  { %v6018_v62 = vpop.eup %4629  ;;  %v1752_v19 = vpack.c.bf16 %v1682_v10, %v1681_v25  ;;  %v745_v49 = vadd.f32 %v744_v37, %v743_v55  ;;  %v746_v7 = vsel %vm586_vm0, %v6012_v32, 0.0  ;;  %4639 = vpow2.f32 %v1381_v54  ;;  %v6022_v5 = vpop.f32.mrb[1].mxu1 }
 0x155   :  { %4346 = vmatprep.subr.msk.bf16.mxu0 %vm586_vm0, %v1751_v38  ;;  %v2498_v33 = vsel %vm586_vm0, %v1751_v38, 0  ;;  %v1571_v58 = vrot.slane %v1570_v61, 1  ;;  %v748_v39 = vsel %vm586_vm0, %v6018_v62, 0.0  ;;  %v383_v59 = vmul.f32 %v319_v51, %v319_v51  ;;  %v6028_v46 = vpop.f32.mrb[2].mxu1 }
 0x156   :  { %4291 = vmatpush3.bf16.xpose.msra.mxu0 %v2498_v33  ;;  %v2501_v42 = vsel %vm586_vm0, %v1752_v19, 0  ;;  %v747_v41 = vadd.f32 %v746_v7, %v745_v49  ;;  %v384_v14 = vmul.f32 %v320_v0, %v320_v0  ;;  %v385_v36 = vmul.f32 %v321_v43, %v321_v43  ;;  %v6031_v4 = vpop.f32.mrb[3].mxu1 }
 0x157   :  { %v1572_v48 = vadd.f32 %v1571_v58, %v1570_v61  ;;  %4347 = vmatprep.subr.msk.bf16.mxu0 %vm586_vm0, %v1752_v19  ;;  %v446_v53 = vmul.f32 -480.5, %v382_v1  ;;  %v447_v27 = vmul.f32 -480.5, %v383_v59  ;;  %v1133_v3 = vsub.f32 %v5982_v60, %v5071_v22 }
 0x158   :  { %v749_v8 = vadd.f32 %v748_v39, %v747_v41  ;;  %v448_v17 = vmul.f32 -480.5, %v384_v14  ;;  %v449_v54 = vmul.f32 -480.5, %v385_v36  ;;  %v1134_v50 = vsub.f32 %v5982_v60, %v5074_v24 }
 0x159   :  { %v6038_v26 = vpop.eup %4631  ;;  %4641 = vrcp.f32 %v1572_v48  ;;  %v562_v51 = vmul.f32 1.442695, %v446_v53  ;;  %v564_v45 = vmul.f32 1.442695, %v447_v27  ;;  %v1195_v0 = vmul.f32 %v1131_v18, %v1131_v18 }
 0x15a   :  { %v4634_v43 = vpop.eup %4633  ;;  %v750_v28 = vrot.slane %v749_v8, 4  ;;  %v1573_v52 = vsel %vm586_vm0, %v6038_v26, 0.0  ;;  %v566_v34 = vmul.f32 1.442695, %v448_v17  ;;  %v568_v25 = vmul.f32 1.442695, %v449_v54 }
 0x15b   :  { %v871_v10 = vmul.f32 %v4634_v43, %v5919_v11  ;;  %v872_v55 = vmul.f32 %v4634_v43, %v5924_v63  ;;  %v873_v1 = vmul.f32 %v4634_v43, %v5928_v56  ;;  %v874_v60 = vmul.f32 %v4634_v43, %v5933_v12 }
 0x15c   :  { %v6046_v38 = vpop.eup %4635  ;;  %v751_v61 = vadd.f32 %v750_v28, %v749_v8  ;;  %4643 = vpow2.f32 %v562_v51  ;;  %v1196_v18 = vmul.f32 %v1132_v15, %v1132_v15  ;;  %v1197_v37 = vmul.f32 %v1133_v3, %v1133_v3 }
 0x15d   :  { %v6048_v19 = vpop.eup %4637  ;;  %v1717_v49 = vpack.c.bf16 %v872_v55, %v871_v10  ;;  %v1718_v7 = vpack.c.bf16 %v874_v60, %v873_v1  ;;  %v1574_v33 = vsel %vm586_vm0, %v6046_v38, 0.0  ;;  %4645 = vpow2.f32 %v564_v45 }
 0x15e   :  { %v6052_v11 = vpop.eup %4639  ;;  %4293 = vmatpush3.bf16.xpose.msra.mxu0 %v2501_v42  ;;  %v752_v63 = vrot.slane %v751_v61, 2  ;;  %v1575_v56 = vadd.f32 %v1574_v33, %v1573_v52  ;;  %v1576_v12 = vsel %vm586_vm0, %v6048_v19, 0.0  ;;  %4647 = vpow2.f32 %v566_v34 }
 0x15f   :  { %4286 = vmatprep.mubr.msk.bf16.mxu1 %vm586_vm0, %v1717_v49  ;;  %v1578_v15 = vsel %vm586_vm0, %v6052_v11, 0.0  ;;  %4649 = vpow2.f32 %v568_v25  ;;  %v1198_v58 = vmul.f32 %v1134_v50, %v1134_v50  ;;  %v1259_v39 = vmul.f32 -480.5, %v1195_v0 }
 0x160   :  { %4287 = vmatmul.mubr.msk.bf16.vlgmr.msra.gmra.mrb[20].mxu1 %vm586_vm0, %v1718_v7  ;;  %v753_v59 = vadd.f32 %v752_v63, %v751_v61  ;;  %v1577_v41 = vadd.f32 %v1576_v12, %v1575_v56  ;;  %v1260_v14 = vmul.f32 -480.5, %v1196_v18  ;;  %v1261_v42 = vmul.f32 -480.5, %v1197_v37 }
 0x161   :  { %v1262_v36 = vmul.f32 -480.5, %v1198_v58  ;;  %v1383_v48 = vmul.f32 1.442695, %v1259_v39  ;;  %v183_v53 = vcombine.high %v5909_v13, %v5909_v13  ;;  %v185_v27 = vcombine.high %v5976_v9, %v5976_v9 }
 0x162   :  { %v754_v3 = vrot.slane %v753_v59, 1  ;;  %v1579_v8 = vadd.f32 %v1578_v15, %v1577_v41  ;;  %v1385_v17 = vmul.f32 1.442695, %v1260_v14  ;;  %v1387_v54 = vmul.f32 1.442695, %v1261_v42 }
 0x163   :  { %v4642_v50 = vpop.eup %4641  ;;  %4651 = vpow2.f32 %v1383_v48  ;;  %v1389_v51 = vmul.f32 1.442695, %v1262_v36  ;;  %v245_v45 = vrot.slane %v183_v53, %v5063_v16  ;;  %v249_v0 = vrot.slane %v185_v27, %v5063_v16 }
 0x164   :  { %v1683_v43 = vmul.f32 %v4642_v50, %v5954_v47  ;;  %v1684_v28 = vmul.f32 %v4642_v50, %v5956_v40  ;;  %v1685_v13 = vmul.f32 %v4642_v50, %v5960_v6  ;;  %v1686_v52 = vmul.f32 %v4642_v50, %v5967_v31 }
 0x165   :  { %v755_v9 = vadd.f32 %v754_v3, %v753_v59  ;;  %v1580_v34 = vrot.slane %v1579_v8, 4  ;;  %4653 = vpow2.f32 %v1385_v17  ;;  %v322_v25 = vsub.f32 %v245_v45, %v5067_v20 }
 0x166   :  { %v6071_v10 = vpop.eup %4643  ;;  %v1753_v55 = vpack.c.bf16 %v1684_v28, %v1683_v43  ;;  %v1754_v1 = vpack.c.bf16 %v1686_v52, %v1685_v13  ;;  %4655 = vpow2.f32 %v1387_v54  ;;  %v323_v16 = vsub.f32 %v245_v45, %v5069_v21 }
 0x167   :  { %v6074_v60 = vpop.eup %4645  ;;  %4657 = vrcp.f32 %v755_v9  ;;  %v1581_v47 = vadd.f32 %v1580_v34, %v1579_v8  ;;  %v756_v40 = vsel %vm586_vm0, %v6071_v10, 0.0  ;;  %v324_v6 = vsub.f32 %v245_v45, %v5071_v22 }
 0x168   :  { %v6079_v31 = vpop.eup %4647  ;;  %4348 = vmatprep.subr.msk.bf16.mxu1 %vm586_vm0, %v1753_v55  ;;  %v2559_v61 = vsel %vm586_vm0, %v1753_v55, 0  ;;  %v2562_v18 = vsel %vm586_vm0, %v1754_v1, 0  ;;  %v757_v37 = vsel %vm586_vm0, %v6074_v60, 0.0  ;;  %4659 = vpow2.f32 %v1389_v51 }
 0x169   :  { %v6086_v49 = vpop.eup %4649  ;;  %4299 = vmatpush3.bf16.xpose.msra.mxu1 %v2559_v61  ;;  %v1582_v7 = vrot.slane %v1581_v47, 2  ;;  %v758_v33 = vadd.f32 %v757_v37, %v756_v40  ;;  %v759_v63 = vsel %vm586_vm0, %v6079_v31, 0.0  ;;  %v325_v56 = vsub.f32 %v245_v45, %v5074_v24 }
 0x16a   :  { %4349 = vmatprep.subr.msk.bf16.mxu1 %vm586_vm0, %v1754_v1  ;;  %v761_v12 = vsel %vm586_vm0, %v6086_v49, 0.0  ;;  %v386_v15 = vmul.f32 %v322_v25, %v322_v25  ;;  %v387_v58 = vmul.f32 %v323_v16, %v323_v16  ;;  %v388_v39 = vmul.f32 %v324_v6, %v324_v6 }
 0x16b   :  { %v1583_v59 = vadd.f32 %v1582_v7, %v1581_v47  ;;  %v760_v41 = vadd.f32 %v759_v63, %v758_v33  ;;  %v389_v14 = vmul.f32 %v325_v56, %v325_v56  ;;  %v326_v42 = vsub.f32 %v249_v0, %v5067_v20 }
 0x16c   :  { %v450_v36 = vmul.f32 -480.5, %v386_v15  ;;  %v451_v48 = vmul.f32 -480.5, %v387_v58  ;;  %v452_v53 = vmul.f32 -480.5, %v388_v39  ;;  %v327_v27 = vsub.f32 %v249_v0, %v5069_v21 }
 0x16d   :  { %v6096_v3 = vpop.eup %4651  ;;  %v1584_v8 = vrot.slane %v1583_v59, 1  ;;  %v762_v17 = vadd.f32 %v761_v12, %v760_v41  ;;  %v453_v54 = vmul.f32 -480.5, %v389_v14  ;;  %v328_v50 = vsub.f32 %v249_v0, %v5071_v22 }
 0x16e   :  { %v1586_v51 = vsel %vm586_vm0, %v6096_v3, 0.0  ;;  %v570_v45 = vmul.f32 1.442695, %v450_v36  ;;  %v572_v43 = vmul.f32 1.442695, %v451_v48  ;;  %v329_v28 = vsub.f32 %v249_v0, %v5074_v24 }
 0x16f   :  { %v6102_v20 = vpop.eup %4653  ;;  %v1585_v13 = vadd.f32 %v1584_v8, %v1583_v59  ;;  %v763_v52 = vrot.slane %v762_v17, 4  ;;  %v574_v9 = vmul.f32 1.442695, %v452_v53  ;;  %v576_v21 = vmul.f32 1.442695, %v453_v54  ;;  %v6104_v34 = vpop.f32.mrb[4].mxu0 }
 0x170   :  { %v6106_v25 = vpop.eup %4655  ;;  %v1587_v22 = vsel %vm586_vm0, %v6102_v20, 0.0  ;;  %4661 = vpow2.f32 %v570_v45  ;;  %v390_v55 = vmul.f32 %v326_v42, %v326_v42  ;;  %v391_v1 = vmul.f32 %v327_v27, %v327_v27  ;;  %v6110_v16 = vpop.f32.mrb[5].mxu0 }
 0x171   :  { %v4658_v47 = vpop.eup %4657  ;;  %4301 = vmatpush3.bf16.xpose.msra.mxu1 %v2562_v18  ;;  %4663 = vrcp.f32 %v1585_v13  ;;  %v764_v24 = vadd.f32 %v763_v52, %v762_v17  ;;  %v1588_v0 = vadd.f32 %v1587_v22, %v1586_v51  ;;  %v1589_v40 = vsel %vm586_vm0, %v6106_v25, 0.0  ;;  %v6114_v6 = vpop.f32.mrb[6].mxu0 }
 0x172   :  { %v6116_v61 = vpop.eup %4659  ;;  %v875_v37 = vmul.f32 %v4658_v47, %v6002_v57  ;;  %v876_v7 = vmul.f32 %v4658_v47, %v6007_v2  ;;  %v877_v33 = vmul.f32 %v4658_v47, %v6012_v32  ;;  %v878_v63 = vmul.f32 %v4658_v47, %v6018_v62  ;;  %v6122_v56 = vpop.f32.mrb[7].mxu0 }
 0x173   :  { %v765_v18 = vrot.slane %v764_v24, 2  ;;  %v1590_v12 = vadd.f32 %v1589_v40, %v1588_v0  ;;  %v1591_v15 = vsel %vm586_vm0, %v6116_v61, 0.0  ;;  %4665 = vpow2.f32 %v572_v43 }
 0x174   :  { %v1719_v58 = vpack.c.bf16 %v876_v7, %v875_v37  ;;  %v1720_v39 = vpack.c.bf16 %v878_v63, %v877_v33  ;;  %4667 = vpow2.f32 %v574_v9  ;;  %v392_v59 = vmul.f32 %v328_v50, %v328_v50 }
 0x175   :  { %v766_v41 = vadd.f32 %v765_v18, %v764_v24  ;;  %v1592_v57 = vadd.f32 %v1591_v15, %v1590_v12  ;;  %4669 = vpow2.f32 %v576_v21  ;;  %v393_v2 = vmul.f32 %v329_v28, %v329_v28 }
 0x176   :  { %4294 = vmatprep.mubr.msk.bf16.mxu0 %vm586_vm0, %v1719_v58  ;;  %v454_v32 = vmul.f32 -480.5, %v390_v55  ;;  %v455_v62 = vmul.f32 -480.5, %v391_v1  ;;  %v456_v14 = vmul.f32 -480.5, %v392_v59  ;;  %v6129_v27 = vmul.f32 0.008, %v5984_v35 }
 0x177   :  { %4295 = vmatmul.mubr.msk.bf16.vlgmr.msra.gmra.mrb[24].mxu0 %vm586_vm0, %v1720_v39  ;;  %v767_v42 = vrot.slane %v766_v41, 1  ;;  %v1593_v36 = vrot.slane %v1592_v57, 4  ;;  %v457_v48 = vmul.f32 -480.5, %v393_v2  ;;  %v6132_v8 = vmul.f32 0.008, %v5988_v29 }
 0x178   :  { %v578_v53 = vmul.f32 1.442695, %v454_v32  ;;  %v580_v50 = vmul.f32 1.442695, %v455_v62  ;;  %v582_v51 = vmul.f32 1.442695, %v456_v14 }
 0x179   :  { %v768_v17 = vadd.f32 %v767_v42, %v766_v41  ;;  %v1594_v54 = vadd.f32 %v1593_v36, %v1592_v57  ;;  %v584_v43 = vmul.f32 1.442695, %v457_v48  ;;  %v6137_v28 = vmul.f32 0.008, %v5992_v30 }
 0x17a   :  { %v6134_v45 = vpop.eup %4661  ;;  %4671 = vpow2.f32 %v578_v53  ;;  %v6140_v13 = vmul.f32 0.008, %v6016_v44  ;;  %v6151_v44 = vmul.f32 0.008, %v5996_v23  ;;  %v2806_v47 = vsel %vm57_vm1, %v6129_v27, 0.0 }
 0x17b   :  { %v4664_v52 = vpop.eup %4663  ;;  %4673 = vrcp.f32 %v768_v17  ;;  %v1595_v35 = vrot.slane %v1594_v54, 2  ;;  %v769_v29 = vsel %vm586_vm0, %v6134_v45, 0.0  ;;  %2807 = vadd.xlane.f32.xlu0 %v2806_v47  ;;  %v6168_v33 = vmul.f32 0.008, %v6022_v5 }
 0x17c   :  { %v1687_v9 = vmul.f32 %v4664_v52, %v6038_v26  ;;  %v1688_v21 = vmul.f32 %v4664_v52, %v6046_v38  ;;  %v1689_v22 = vmul.f32 %v4664_v52, %v6048_v19  ;;  %v1690_v55 = vmul.f32 %v4664_v52, %v6052_v11 }
 0x17d   :  { %v6148_v30 = vpop.eup %4665  ;;  %v1596_v1 = vadd.f32 %v1595_v35, %v1594_v54  ;;  %4675 = vpow2.f32 %v580_v50  ;;  %v6171_v63 = vmul.f32 0.008, %v6031_v4  ;;  %v2818_v15 = vsel %vm57_vm1, %v6140_v13, 0.0 }
 0x17e   :  { %v6155_v24 = vpop.eup %4667  ;;  %v1755_v0 = vpack.c.bf16 %v1688_v21, %v1687_v9  ;;  %v1756_v26 = vpack.c.bf16 %v1690_v55, %v1689_v22  ;;  %v770_v38 = vsel %vm586_vm0, %v6148_v30, 0.0  ;;  %4677 = vpow2.f32 %v582_v51  ;;  %2819 = vadd.xlane.f32.xlu1 %v2818_v15 }
 0x17f   :  { %v6159_v19 = vpop.eup %4669  ;;  %v1597_v11 = vrot.slane %v1596_v1, 1  ;;  %v771_v40 = vadd.f32 %v770_v38, %v769_v29  ;;  %v772_v23 = vsel %vm586_vm0, %v6155_v24, 0.0  ;;  %4679 = vpow2.f32 %v584_v43 }
 0x180   :  { %4350 = vmatprep.subr.msk.bf16.mxu0 %vm586_vm0, %v1755_v0  ;;  %v2620_v37 = vsel %vm586_vm0, %v1755_v0, 0  ;;  %v774_v7 = vsel %vm586_vm0, %v6159_v19, 0.0  ;;  %v2800_v58 = vsel %vm57_vm1, %v6132_v8, 0.0  ;;  %v2803_v39 = vsel %vm57_vm1, %v6151_v44, 0.0 }
 0x181   :  { %4307 = vmatpush3.bf16.xpose.msra.mxu0 %v2620_v37  ;;  %v1598_v18 = vadd.f32 %v1597_v11, %v1596_v1  ;;  %v773_v12 = vadd.f32 %v772_v23, %v771_v40  ;;  %v6181_v4 = vmul.f32 0.008, %v6028_v46  ;;  %2801 = vadd.xlane.f32.xlu0 %v2800_v58  ;;  %v2992_v59 = vadd.f32 %v2803_v39, %v2800_v58 }
 0x182   :  { %4351 = vmatprep.subr.msk.bf16.mxu0 %vm586_vm0, %v1756_v26  ;;  %v2623_v57 = vsel %vm586_vm0, %v1756_v26, 0  ;;  %v2812_v2 = vsel %vm57_vm1, %v6168_v33, 0.0  ;;  %v2809_v32 = vsel %vm57_vm1, %v6137_v28, 0.0  ;;  %v2815_v62 = vsel %vm57_vm1, %v6171_v63, 0.0 }
 0x183   :  { %4681 = vrcp.f32 %v1598_v18  ;;  %v775_v5 = vadd.f32 %v774_v7, %v773_v12  ;;  %v2993_v36 = vadd.f32 %v2992_v59, %v2806_v47  ;;  %v3001_v48 = vadd.f32 %v2815_v62, %v2812_v2  ;;  %2813 = vadd.xlane.f32.xlu1 %v2812_v2 }
 0x184   :  { %v6183_v41 = vpop.eup %4671  ;;  %v2821_v29 = vsel %vm57_vm1, %v6181_v4, 0.0  ;;  %v6216_v11 = vmul.f32 0.008, %v6122_v56  ;;  %v6225_v7 = vmul.f32 0.008, %v6110_v16 }
 0x185   :  { %v4674_v14 = vpop.eup %4673  ;;  %v776_v42 = vrot.slane %v775_v5, 4  ;;  %v782_v46 = vsel %vm586_vm0, %v6183_v41, 0.0  ;;  %v4224_v53 = vpop.f32.mrb[4].mxu1  ;;  %2810 = vadd.xlane.f32.xlu0 %v2809_v32  ;;  %v6202_v9 = vadd.f32 %v2993_v36, %v2809_v32  ;;  %v3002_v21 = vadd.f32 %v3001_v48, %v2818_v15 }
 0x186   :  { %v879_v17 = vmul.f32 %v4674_v14, %v6071_v10  ;;  %v880_v54 = vmul.f32 %v4674_v14, %v6074_v60  ;;  %v881_v50 = vmul.f32 %v4674_v14, %v6079_v31  ;;  %v882_v51 = vmul.f32 %v4674_v14, %v6086_v49  ;;  %v1988_v43 = vpop.f32.mrb[5].mxu1 }
 0x187   :  { %v6198_v52 = vpop.eup %4675  ;;  %v777_v35 = vadd.f32 %v776_v42, %v775_v5  ;;  %v4225_v22 = vpop.f32.mrb[6].mxu1  ;;  %v6209_v49 = vmul.f32 0.008, %v6104_v34  ;;  %2822 = vadd.xlane.f32.xlu1 %v2821_v29  ;;  %v6221_v34 = vadd.f32 %v3002_v21, %v2821_v29  ;;  %v6228_v18 = vmul.f32 0.008, %v6114_v6 }
 0x188   :  { %v6204_v10 = vpop.eup %4677  ;;  %v1721_v60 = vpack.c.bf16 %v880_v54, %v879_v17  ;;  %v1722_v55 = vpack.c.bf16 %v882_v51, %v881_v50  ;;  %v783_v31 = vsel %vm586_vm0, %v6198_v52, 0.0  ;;  %v1991_v1 = vpop.f32.mrb[7].mxu1  ;;  %v6230_v56 = vmul.f32 0.008, %v1988_v43 }
 0x189   :  { %v6211_v47 = vpop.eup %4679  ;;  %4309 = vmatpush3.bf16.xpose.msra.mxu0 %v2623_v57  ;;  %v778_v0 = vrot.slane %v777_v35, 2  ;;  %v784_v26 = vadd.f32 %v783_v31, %v782_v46  ;;  %v785_v38 = vsel %vm586_vm0, %v6204_v10, 0.0  ;;  %2804 = vadd.xlane.f32.xlu0 %v2803_v39  ;;  %v2830_v12 = vsel %vm57_vm1, %v6209_v49, 0.0 }
 0x18a   :  { %4302 = vmatprep.mubr.msk.bf16.mxu1 %vm586_vm0, %v1721_v60  ;;  %v787_v40 = vsel %vm586_vm0, %v6211_v47, 0.0  ;;  %v6234_v59 = vmul.f32 0.008, %v1991_v1  ;;  %v2827_v57 = vsel %vm57_vm1, %v6216_v11, 0.0  ;;  %v2833_v42 = vsel %vm57_vm1, %v6228_v18, 0.0 }
 0x18b   :  { %4303 = vmatmul.mubr.msk.bf16.vlgmr.msra.gmra.mrb[24].mxu1 %vm586_vm0, %v1722_v55  ;;  %v779_v23 = vadd.f32 %v778_v0, %v777_v35  ;;  %v786_v37 = vadd.f32 %v785_v38, %v784_v26  ;;  %2816 = vadd.xlane.f32.xlu1 %v2815_v62  ;;  %v2824_v46 = vsel %vm57_vm1, %v6225_v7, 0.0  ;;  %v6246_v17 = vmul.f32 0.008, %v4224_v53 }
 0x18c   :  { %v6252_v62 = vmul.f32 0.008, %v4225_v22  ;;  %v2839_v50 = vsel %vm57_vm1, %v6234_v59, 0.0 }
 0x18d   :  { %v4682_v15 = vpop.eup %4681  ;;  %v780_v58 = vrot.slane %v779_v23, 1  ;;  %v788_v5 = vadd.f32 %v787_v40, %v786_v37  ;;  %2831 = vadd.xlane.f32.xlu0 %v2830_v12  ;;  %v2842_v35 = vsel %vm57_vm1, %v6246_v17, 0.0 }
 0x18e   :  { %v1691_v39 = vmul.f32 %v4682_v15, %v6096_v3  ;;  %v1692_v16 = vmul.f32 %v4682_v15, %v6102_v20  ;;  %v1693_v6 = vmul.f32 %v4682_v15, %v6106_v25  ;;  %v1694_v2 = vmul.f32 %v4682_v15, %v6116_v61 }
 0x18f   :  { %v781_v32 = vadd.f32 %v780_v58, %v779_v23  ;;  %v789_v14 = vrot.slane %v788_v5, 4  ;;  %v3010_v3 = vadd.f32 %v2827_v57, %v2824_v46  ;;  %v2836_v25 = vsel %vm57_vm1, %v6230_v56, 0.0  ;;  %2834 = vadd.xlane.f32.xlu1 %v2833_v42 }
 0x190   :  { %v1757_v36 = vpack.c.bf16 %v1692_v16, %v1691_v39  ;;  %v1758_v48 = vpack.c.bf16 %v1694_v2, %v1693_v6  ;;  %v3019_v51 = vadd.f32 %v2839_v50, %v2836_v25  ;;  %v2845_v22 = vsel %vm57_vm1, %v6252_v62, 0.0 }
 0x191   :  { %4683 = vrcp.f32 %v781_v32  ;;  %v790_v20 = vadd.f32 %v789_v14, %v788_v5  ;;  %v3011_v54 = vadd.f32 %v3010_v3, %v2830_v12  ;;  %2825 = vadd.xlane.f32.xlu0 %v2824_v46 }
 0x192   :  { %4352 = vmatprep.subr.msk.bf16.mxu1 %vm586_vm0, %v1757_v36  ;;  %v2681_v61 = vsel %vm586_vm0, %v1757_v36, 0  ;;  %v3020_v21 = vadd.f32 %v3019_v51, %v2842_v35  ;;  %v2684_v31 = vsel %vm586_vm0, %v1758_v48, 0 }
 0x193   :  { %4315 = vmatpush3.bf16.xpose.msra.mxu1 %v2681_v61  ;;  %v791_v53 = vrot.slane %v790_v20, 2  ;;  %v6257_v43 = vadd.f32 %v3011_v54, %v2833_v42  ;;  %2828 = vadd.xlane.f32.xlu1 %v2827_v57 }
 0x194   :  { %4353 = vmatprep.subr.msk.bf16.mxu1 %vm586_vm0, %v1758_v48  ;;  %v6263_v55 = vadd.f32 %v3020_v21, %v2845_v22 }
 0x195   :  { %v792_v29 = vadd.f32 %v791_v53, %v790_v20  ;;  %2843 = vadd.xlane.f32.xlu0 %v2842_v35 }
 0x197   :  { %v793_v60 = vrot.slane %v792_v29, 1  ;;  %2837 = vadd.xlane.f32.xlu1 %v2836_v25 }
 0x199   :  { %v794_v1 = vadd.f32 %v793_v60, %v792_v29  ;;  %v4232_v0 = vpop.f32.mrb[8].mxu0  ;;  %2840 = vadd.xlane.f32.xlu0 %v2839_v50 }
 0x19a   :  { %v6266_v26 = vmul.f32 0.008, %v4232_v0  ;;  %v2049_v38 = vpop.f32.mrb[9].mxu0 }
 0x19b   :  { %v4684_v40 = vpop.eup %4683  ;;  %4317 = vmatpush3.bf16.xpose.msra.mxu1 %v2684_v31  ;;  %4685 = vrcp.f32 %v794_v1  ;;  %v6268_v23 = vmul.f32 0.008, %v2049_v38  ;;  %v4233_v37 = vpop.f32.mrb[10].mxu0  ;;  %2846 = vadd.xlane.f32.xlu1 %v2845_v22 }
 0x19c   :  { %v883_v12 = vmul.f32 %v4684_v40, %v6134_v45  ;;  %v884_v15 = vmul.f32 %v4684_v40, %v6148_v30  ;;  %v885_v58 = vmul.f32 %v4684_v40, %v6155_v24  ;;  %v886_v5 = vmul.f32 %v4684_v40, %v6159_v19  ;;  %v2052_v57 = vpop.f32.mrb[11].mxu0 }
 0x19d   :  { %v6274_v39 = vmul.f32 0.008, %v2052_v57  ;;  %v2854_v2 = vsel %vm57_vm1, %v6266_v26, 0.0  ;;  %v6278_v32 = vmul.f32 0.008, %v4233_v37  ;;  %v2848_v45 = vsel %vm57_vm1, %v6268_v23, 0.0 }
 0x19e   :  { %v1723_v16 = vpack.c.bf16 %v884_v15, %v883_v12  ;;  %v1724_v6 = vpack.c.bf16 %v886_v5, %v885_v58  ;;  %2855 = vadd.xlane.f32.xlu0 %v2854_v2 }
 0x19f   :  { %v2851_v30 = vsel %vm57_vm1, %v6274_v39, 0.0  ;;  %2849 = vadd.xlane.f32.xlu1 %v2848_v45  ;;  %v2857_v14 = vsel %vm57_vm1, %v6278_v32, 0.0 }
 0x1a0   :  { %4310 = vmatprep.mubr.msk.bf16.mxu0 %vm586_vm0, %v1723_v16  ;;  %v3028_v24 = vadd.f32 %v2851_v30, %v2848_v45 }
 0x1a1   :  { %4311 = vmatmul.mubr.msk.bf16.vlgmr.msra.gmra.mrb[28].mxu0 %vm586_vm0, %v1724_v6 }
 0x1a2   :  { %v3029_v19 = vadd.f32 %v3028_v24, %v2854_v2 }
 0x1a3   :  { %2858 = vadd.xlane.f32.xlu1 %v2857_v14 }
 0x1a4   :  { %v6288_v42 = vadd.f32 %v3029_v19, %v2857_v14 }
 0x1a5   :  { %v4686_v46 = vpop.eup %4685 }
 0x1a6   :  { %v887_v36 = vmul.f32 %v4686_v46, %v6183_v41  ;;  %v888_v48 = vmul.f32 %v4686_v46, %v6198_v52  ;;  %v889_v3 = vmul.f32 %v4686_v46, %v6204_v10  ;;  %v890_v20 = vmul.f32 %v4686_v46, %v6211_v47 }
 0x1a8   :  { %v1725_v25 = vpack.c.bf16 %v888_v48, %v887_v36  ;;  %v1726_v61 = vpack.c.bf16 %v890_v20, %v889_v3 }
 0x1aa   :  { %4318 = vmatprep.mubr.msk.bf16.mxu1 %vm586_vm0, %v1725_v25 }
 0x1ab   :  { %4319 = vmatmul.mubr.msk.bf16.vlgmr.msra.gmra.mrb[28].mxu1 %vm586_vm0, %v1726_v61 }
 0x1af   :  { %v4240_v54 = vpop.f32.mrb[8].mxu1 }
 0x1b0   :  { %v6296_v50 = vmul.f32 0.008, %v4240_v54  ;;  %v2110_v53 = vpop.f32.mrb[9].mxu1 }
 0x1b1   :  { %v6298_v51 = vmul.f32 0.008, %v2110_v53  ;;  %v4241_v41 = vpop.f32.mrb[10].mxu1 }
 0x1b2   :  { %v2113_v35 = vpop.f32.mrb[11].mxu1  ;;  %v2866_v52 = vsel %vm57_vm1, %v6296_v50, 0.0  ;;  %v6302_v10 = vmul.f32 0.008, %v4241_v41 }
 0x1b3   :  { %v6304_v47 = vmul.f32 0.008, %v2113_v35  ;;  %2867 = vadd.xlane.f32.xlu0 %v2866_v52  ;;  %v2860_v29 = vsel %vm57_vm1, %v6298_v51, 0.0 }
 0x1b4   :  { %2861 = vadd.xlane.f32.xlu1 %v2860_v29  ;;  %v2869_v60 = vsel %vm57_vm1, %v6302_v10, 0.0 }
 0x1b5   :  { %v2863_v21 = vsel %vm57_vm1, %v6304_v47, 0.0 }
 0x1b6   :  { %v3037_v22 = vadd.f32 %v2863_v21, %v2860_v29 }
 0x1b7   :  { %2852 = vadd.xlane.f32.xlu0 %v2851_v30 }
 0x1b8   :  { %2870 = vadd.xlane.f32.xlu1 %v2869_v60  ;;  %v3038_v31 = vadd.f32 %v3037_v22, %v2866_v52 }
 0x1ba   :  { %v6312_v1 = vadd.f32 %v3038_v31, %v2869_v60 }
 0x1bb   :  { %2864 = vadd.xlane.f32.xlu0 %v2863_v21 }
 0x1c5   :  { %v4248_v0 = vpop.f32.mrb[12].mxu0 }
 0x1c6   :  { %v6314_v38 = vmul.f32 0.008, %v4248_v0  ;;  %v2171_v40 = vpop.f32.mrb[13].mxu0 }
 0x1c7   :  { %v6316_v37 = vmul.f32 0.008, %v2171_v40  ;;  %v4249_v12 = vpop.f32.mrb[14].mxu0 }
 0x1c8   :  { %v2174_v15 = vpop.f32.mrb[15].mxu0  ;;  %v2878_v58 = vsel %vm57_vm1, %v6314_v38, 0.0  ;;  %v6320_v5 = vmul.f32 0.008, %v4249_v12 }
 0x1c9   :  { %v6322_v57 = vmul.f32 0.008, %v2174_v15  ;;  %2879 = vadd.xlane.f32.xlu0 %v2878_v58  ;;  %v2872_v16 = vsel %vm57_vm1, %v6316_v37, 0.0 }
 0x1ca   :  { %2873 = vadd.xlane.f32.xlu1 %v2872_v16  ;;  %v2881_v45 = vsel %vm57_vm1, %v6320_v5, 0.0 }
 0x1cb   :  { %v2875_v6 = vsel %vm57_vm1, %v6322_v57, 0.0 }
 0x1cc   :  { %v3046_v2 = vadd.f32 %v2875_v6, %v2872_v16 }
 0x1ce   :  { %2882 = vadd.xlane.f32.xlu1 %v2881_v45  ;;  %v3047_v30 = vadd.f32 %v3046_v2, %v2878_v58 }
 0x1d0   :  { %v6330_v24 = vadd.f32 %v3047_v30, %v2881_v45 }
 0x1db   :  { %v4256_v19 = vpop.f32.mrb[12].mxu1 }
 0x1dc   :  { %v6332_v14 = vmul.f32 0.008, %v4256_v19  ;;  %v2232_v46 = vpop.f32.mrb[13].mxu1 }
 0x1dd   :  { %v6334_v36 = vmul.f32 0.008, %v2232_v46  ;;  %v4257_v48 = vpop.f32.mrb[14].mxu1  ;;  %v2995_v46 = vrot.slane %v6202_v9, 4 }
 0x1de   :  { %v2235_v3 = vpop.f32.mrb[15].mxu1  ;;  %v2890_v20 = vsel %vm57_vm1, %v6332_v14, 0.0  ;;  %v6338_v25 = vmul.f32 0.008, %v4257_v48  ;;  %v3004_v48 = vrot.slane %v6221_v34, 4 }
 0x1df   :  { %v6340_v61 = vmul.f32 0.008, %v2235_v3  ;;  %2891 = vadd.xlane.f32.xlu0 %v2890_v20  ;;  %v2884_v54 = vsel %vm57_vm1, %v6334_v36, 0.0  ;;  %v2996_v3 = vadd.f32 %v2995_v46, %v6202_v9 }
 0x1e0   :  { %2885 = vadd.xlane.f32.xlu1 %v2884_v54  ;;  %v2893_v35 = vsel %vm57_vm1, %v6338_v25, 0.0 }
 0x1e1   :  { %6935 = vst [vmem:[#allocation12_spill] sm:$0xff] %v6340_v61  ;;  %v2887_v53 = vsel %vm57_vm1, %v6340_v61, 0.0 }
 0x1e2   :  { %v3055_v41 = vadd.f32 %v2887_v53, %v2884_v54 }
 0x1e3   :  { %2876 = vadd.xlane.f32.xlu0 %v2875_v6 }
 0x1e4   :  { %2894 = vadd.xlane.f32.xlu1 %v2893_v35  ;;  %v3056_v52 = vadd.f32 %v3055_v41, %v2890_v20  ;;  %v3005_v20 = vadd.f32 %v3004_v48, %v6221_v34 }
 0x1e6   :  { %v6348_v29 = vadd.f32 %v3056_v52, %v2893_v35  ;;  %v3006_v41 = vrot.slane %v3005_v20, 2 }
 0x1e7   :  { %2888 = vadd.xlane.f32.xlu0 %v2887_v53  ;;  %v2997_v53 = vrot.slane %v2996_v3, 2 }
 0x1e9   :  { %v2998_v34 = vadd.f32 %v2997_v53, %v2996_v3  ;;  %v3022_v3 = vrot.slane %v6263_v55, 4 }
 0x1f1   :  { %v4264_v21 = vpop.f32.mrb[16].mxu0 }
 0x1f2   :  { %v6350_v22 = vmul.f32 0.008, %v4264_v21  ;;  %v2293_v60 = vpop.f32.mrb[17].mxu0 }
 0x1f3   :  { %v6352_v31 = vmul.f32 0.008, %v2293_v60  ;;  %v4265_v0 = vpop.f32.mrb[18].mxu0 }
 0x1f4   :  { %6936 = vst [vmem:[#allocation13_spill] sm:$0xff] %v6350_v22  ;;  %v2296_v40 = vpop.f32.mrb[19].mxu0  ;;  %v2902_v12 = vsel %vm57_vm1, %v6350_v22, 0.0  ;;  %v6356_v15 = vmul.f32 0.008, %v4265_v0 }
 0x1f5   :  { %6937 = vst [vmem:[#allocation14_spill] sm:$0xff] %v6352_v31  ;;  %v6358_v58 = vmul.f32 0.008, %v2296_v40  ;;  %2903 = vadd.xlane.f32.xlu0 %v2902_v12  ;;  %v2896_v16 = vsel %vm57_vm1, %v6352_v31, 0.0 }
 0x1f6   :  { %6938 = vst [vmem:[#allocation15_spill] sm:$0xff] %v6356_v15  ;;  %2897 = vadd.xlane.f32.xlu1 %v2896_v16  ;;  %v2905_v45 = vsel %vm57_vm1, %v6356_v15, 0.0 }
 0x1f7   :  { %6939 = vst [vmem:[#allocation16_spill] sm:$0xff] %v6358_v58  ;;  %v2899_v6 = vsel %vm57_vm1, %v6358_v58, 0.0 }
 0x1f8   :  { %v3064_v2 = vadd.f32 %v2899_v6, %v2896_v16 }
 0x1fa   :  { %2906 = vadd.xlane.f32.xlu1 %v2905_v45  ;;  %v3065_v30 = vadd.f32 %v3064_v2, %v2902_v12  ;;  %v3007_v2 = vadd.f32 %v3006_v41, %v3005_v20 }
 0x1fc   :  { %v6366_v19 = vadd.f32 %v3065_v30, %v2905_v45  ;;  %v3013_v30 = vrot.slane %v6257_v43, 4 }
 0x207   :  { %v4272_v54 = vpop.f32.mrb[16].mxu1 }
 0x208   :  { %v6372_v35 = vmul.f32 0.008, %v4272_v54  ;;  %v2354_v52 = vpop.f32.mrb[17].mxu1  ;;  %v2808_v41 = vpop.xlane.xlu0 %2807 }
 0x209   :  { %v6374_v21 = vmul.f32 0.008, %v2354_v52  ;;  %v4273_v60 = vpop.f32.mrb[18].mxu1  ;;  %v2999_v52 = vrot.slane %v2998_v34, 1 }
 0x20a   :  { %6940 = vst [vmem:[#allocation17_spill] sm:$0xff] %v6372_v35  ;;  %v2357_v0 = vpop.f32.mrb[19].mxu1  ;;  %v2914_v40 = vsel %vm57_vm1, %v6372_v35, 0.0  ;;  %v6378_v12 = vmul.f32 0.008, %v4273_v60  ;;  %v3008_v60 = vrot.slane %v3007_v2, 1 }
 0x20b   :  { %6941 = vst [vmem:[#allocation18_spill] sm:$0xff] %v6374_v21  ;;  %v6380_v16 = vmul.f32 0.008, %v2357_v0  ;;  %2915 = vadd.xlane.f32.xlu0 %v2914_v40  ;;  %v2908_v9 = vsel %vm57_vm1, %v6374_v21, 0.0  ;;  %v3014_v0 = vadd.f32 %v3013_v30, %v6257_v43  ;;  %v3000_v20 = vadd.f32 %v2999_v52, %v2998_v34 }
 0x20c   :  { %6942 = vst [vmem:[#allocation19_spill] sm:$0xff] %v6378_v12  ;;  %2909 = vadd.xlane.f32.xlu1 %v2908_v9  ;;  %v2917_v48 = vsel %vm57_vm1, %v6378_v12, 0.0  ;;  %v3009_v53 = vadd.f32 %v3008_v60, %v3007_v2  ;;  %v3023_v12 = vadd.f32 %v3022_v3, %v6263_v55  ;;  %v3031_v52 = vrot.slane %v6288_v42, 4 }
 0x20d   :  { %6943 = vst [vmem:[#allocation20_spill] sm:$0xff] %v6380_v16  ;;  %v2911_v45 = vsel %vm57_vm1, %v6380_v16, 0.0  ;;  %v2820_v16 = vpop.xlane.xlu1 %2819 }
 0x20e   :  { %v3073_v46 = vadd.f32 %v2911_v45, %v2908_v9  ;;  %v3015_v9 = vrot.slane %v3014_v0, 2  ;;  %v3142_v21 = vmul.f32 %v3009_v53, %v2820_v16 }
 0x20f   :  { %2900 = vadd.xlane.f32.xlu0 %v2899_v6  ;;  %v3138_v6 = vmul.f32 %v3000_v20, %v2808_v41 }
 0x210   :  { %2918 = vadd.xlane.f32.xlu1 %v2917_v48  ;;  %v3074_v54 = vadd.f32 %v3073_v46, %v2914_v40  ;;  %v3206_v40 = vadd.f32 1e-06, %v3142_v21  ;;  %v2802_v46 = vpop.xlane.xlu0 %2801  ;;  %v3016_v31 = vadd.f32 %v3015_v9, %v3014_v0 }
 0x211   :  { %v3202_v35 = vadd.f32 1e-06, %v3138_v6  ;;  %v2814_v15 = vpop.xlane.xlu1 %2813  ;;  %v3136_v43 = vmul.f32 %v3000_v20, %v2802_v46 }
 0x212   :  { %v6390_v58 = vadd.f32 %v3074_v54, %v2917_v48  ;;  %v3140_v30 = vmul.f32 %v3009_v53, %v2814_v15  ;;  %v3024_v48 = vrot.slane %v3023_v12, 2  ;;  %v3017_v41 = vrot.slane %v3016_v31, 1 }
 0x213   :  { %2912 = vadd.xlane.f32.xlu0 %v2911_v45  ;;  %4687 = vrcp.f32 %v3202_v35  ;;  %v3200_v54 = vadd.f32 1e-06, %v3136_v43  ;;  %v3032_v43 = vadd.f32 %v3031_v52, %v6288_v42  ;;  %v3040_v42 = vrot.slane %v6312_v1, 4 }
 0x214   :  { %4689 = vrcp.f32 %v3206_v40  ;;  %v3204_v60 = vadd.f32 1e-06, %v3140_v30  ;;  %v2811_v21 = vpop.xlane.xlu0 %2810 }
 0x215   :  { %4691 = vrcp.f32 %v3200_v54  ;;  %v2823_v35 = vpop.xlane.xlu1 %2822  ;;  %v3139_v40 = vmul.f32 %v3000_v20, %v2811_v21  ;;  %v3025_v54 = vadd.f32 %v3024_v48, %v3023_v12  ;;  %v3033_v12 = vrot.slane %v3032_v43, 2 }
 0x216   :  { %4693 = vrcp.f32 %v3204_v60  ;;  %v3143_v46 = vmul.f32 %v3009_v53, %v2823_v35  ;;  %v3018_v35 = vadd.f32 %v3017_v41, %v3016_v31 }
 0x219   :  { %v2817_v22 = vpop.xlane.xlu1 %2816 }
 0x21a   :  { %v3141_v21 = vmul.f32 %v3009_v53, %v2817_v22  ;;  %v3026_v53 = vrot.slane %v3025_v54, 1 }
 0x21b   :  { %v4280_v45 = vpop.f32.mrb[20].mxu0 }
 0x21c   :  { %v6394_v34 = vmul.f32 0.008, %v4280_v45  ;;  %v2415_v2 = vpop.f32.mrb[21].mxu0  ;;  %v3203_v45 = vadd.f32 1e-06, %v3139_v40 }
 0x21d   :  { %v6397_v16 = vmul.f32 0.008, %v2415_v2  ;;  %v4281_v55 = vpop.f32.mrb[22].mxu0  ;;  %v2805_v2 = vpop.xlane.xlu0 %2804 }
 0x21e   :  { %6944 = vst [vmem:[#allocation21_spill] sm:$0xff] %v6394_v34  ;;  %v6399_v3 = vmul.f32 0.008, %v4281_v55  ;;  %v2418_v0 = vpop.f32.mrb[23].mxu0  ;;  %v2926_v15 = vsel %vm57_vm1, %v6394_v34, 0.0  ;;  %v3137_v34 = vmul.f32 %v3000_v20, %v2805_v2  ;;  %4695 = vrcp.f32 %v3203_v45  ;;  %v2835_v31 = vpop.xlane.xlu1 %2834 }
 0x21f   :  { %6945 = vst [vmem:[#allocation22_spill] sm:$0xff] %v6397_v16  ;;  %v6403_v9 = vmul.f32 0.008, %v2418_v0  ;;  %2927 = vadd.xlane.f32.xlu0 %v2926_v15  ;;  %v2920_v6 = vsel %vm57_vm1, %v6397_v16, 0.0  ;;  %v3207_v0 = vadd.f32 1e-06, %v3143_v46  ;;  %v4688_v16 = vpop.eup %4687  ;;  %v3147_v45 = vmul.f32 %v3018_v35, %v2835_v31 }
 0x220   :  { %6946 = vst [vmem:[#allocation23_spill] sm:$0xff] %v6399_v3  ;;  %2921 = vadd.xlane.f32.xlu1 %v2920_v6  ;;  %v2929_v60 = vsel %vm57_vm1, %v6399_v3, 0.0  ;;  %v3201_v40 = vadd.f32 1e-06, %v3137_v34  ;;  %v3269_v48 = vmul.f32 %v4688_v16, %v6129_v27  ;;  %v3041_v34 = vadd.f32 %v3040_v42, %v6312_v1 }
 0x221   :  { %6947 = vst [vmem:[#allocation24_spill] sm:$0xff] %v6403_v9  ;;  %v6410_v30 = vsel %vm57_vm1, %v6403_v9, 0.0  ;;  %4697 = vrcp.f32 %v3207_v0  ;;  %v4690_v9 = vpop.eup %4689  ;;  %v2832_v20 = vpop.xlane.xlu0 %2831 }
 0x222   :  { %v3082_v55 = vadd.f32 %v6410_v30, %v2920_v6  ;;  %v3205_v6 = vadd.f32 1e-06, %v3141_v21  ;;  %v3277_v2 = vmul.f32 %v4690_v9, %v6140_v13  ;;  %4699 = vrcp.f32 %v3201_v40 }
 0x223   :  { %v3146_v22 = vmul.f32 %v3018_v35, %v2832_v20  ;;  %v3394_v41 = vadd.f32 1e-06, %v3269_v48  ;;  %v2829_v20 = vpop.xlane.xlu1 %2828  ;;  %v3027_v48 = vadd.f32 %v3026_v53, %v3025_v54 }
 0x224   :  { %2930 = vadd.xlane.f32.xlu1 %v2929_v60  ;;  %v3083_v52 = vadd.f32 %v3082_v55, %v2926_v15  ;;  %4701 = vrcp.f32 %v3205_v6  ;;  %v4692_v15 = vpop.eup %4691  ;;  %v3398_v55 = vadd.f32 1e-06, %v3277_v2  ;;  %v3145_v31 = vmul.f32 %v3018_v35, %v2829_v20 }
 0x225   :  { %v3210_v0 = vadd.f32 1e-06, %v3146_v22  ;;  %v4694_v3 = vpop.eup %4693  ;;  %4703 = vlog2.f32 %v3394_v41  ;;  %v3265_v16 = vmul.f32 %v4692_v15, %v6132_v8  ;;  %v2826_v21 = vpop.xlane.xlu0 %2825  ;;  %v3049_v22 = vrot.slane %v6330_v24, 4 }
 0x226   :  { %v6417_v46 = vadd.f32 %v3083_v52, %v2929_v60  ;;  %v3211_v60 = vadd.f32 1e-06, %v3147_v45  ;;  %v3034_v52 = vadd.f32 %v3033_v12, %v3032_v43  ;;  %4705 = vlog2.f32 %v3398_v55 }
 0x227   :  { %v3273_v9 = vmul.f32 %v4694_v3, %v6168_v33  ;;  %v3144_v40 = vmul.f32 %v3018_v35, %v2826_v21  ;;  %v3392_v6 = vadd.f32 1e-06, %v3265_v16  ;;  %4707 = vrcp.f32 %v3210_v0  ;;  %v2838_v15 = vpop.xlane.xlu1 %2837 }
 0x228   :  { %6948 = vst [vmem:[#allocation25_spill] sm:$0xff] %v6417_v46  ;;  %v3042_v46 = vrot.slane %v3041_v34, 2  ;;  %4709 = vrcp.f32 %v3211_v60  ;;  %v4696_v2 = vpop.eup %4695  ;;  %v3209_v41 = vadd.f32 1e-06, %v3145_v31  ;;  %v3035_v54 = vrot.slane %v3034_v52, 1 }
 0x229   :  { %v3396_v1 = vadd.f32 1e-06, %v3273_v9  ;;  %v3208_v42 = vadd.f32 1e-06, %v3144_v40  ;;  %4711 = vlog2.f32 %v3392_v6  ;;  %v2844_v45 = vpop.xlane.xlu0 %2843  ;;  %v3271_v3 = vmul.f32 %v4696_v2, %v6137_v28 }
 0x22a   :  { %v3150_v12 = vmul.f32 %v3027_v48, %v2844_v45  ;;  %v3148_v35 = vmul.f32 %v3027_v48, %v2838_v15  ;;  %v6426_v0 = vadd.f32 %v3042_v46, %v3041_v34  ;;  %v6429_v9 = vadd.f32 %v3049_v22, %v6330_v24 }
 0x22b   :  { %v4698_v43 = vpop.eup %4697  ;;  %4713 = vlog2.f32 %v3396_v1  ;;  %v3395_v16 = vadd.f32 1e-06, %v3271_v3  ;;  %v6435_v2 = vadd.f32 %v3035_v54, %v3034_v52 }
 0x22c   :  { %v3279_v53 = vmul.f32 %v4698_v43, %v6181_v4  ;;  %4715 = vrcp.f32 %v3208_v42  ;;  %v4700_v55 = vpop.eup %4699  ;;  %v3214_v60 = vadd.f32 1e-06, %v3150_v12  ;;  %v2847_v42 = vpop.xlane.xlu1 %2846  ;;  %v3212_v45 = vadd.f32 1e-06, %v3148_v35 }
 0x22d   :  { %4717 = vrcp.f32 %v3209_v41  ;;  %v3267_v20 = vmul.f32 %v4700_v55, %v6151_v44  ;;  %v2841_v6 = vpop.xlane.xlu0 %2840  ;;  %v6437_v43 = vmul.f32 %v3027_v48, %v2847_v42  ;;  %v3051_v55 = vrot.slane %v6429_v9, 2 }
 0x22e   :  { %v4702_v21 = vpop.eup %4701  ;;  %v3399_v40 = vadd.f32 1e-06, %v3279_v53  ;;  %4719 = vlog2.f32 %v3395_v16  ;;  %v6433_v1 = vmul.f32 %v3027_v48, %v2841_v6 }
 0x22f   :  { %v3275_v31 = vmul.f32 %v4702_v21, %v6171_v63  ;;  %v4704_v46 = vpop.eup %4703  ;;  %v3393_v41 = vadd.f32 1e-06, %v3267_v20 }
 0x230   :  { %4721 = vlog2.f32 %v3399_v40  ;;  %v4706_v24 = vpop.eup %4705  ;;  %v3461_v15 = vmul.f32 0.6931472, %v4704_v46 }
 0x231   :  { %4723 = vrcp.f32 %v3214_v60  ;;  %v4708_v53 = vpop.eup %4707  ;;  %v3469_v16 = vmul.f32 0.6931472, %v4706_v24  ;;  %v3397_v6 = vadd.f32 1e-06, %v3275_v31  ;;  %v2856_v61 = vpop.xlane.xlu0 %2855 }
 0x232   :  { %4725 = vlog2.f32 %v3393_v41  ;;  %v4710_v21 = vpop.eup %4709  ;;  %v3586_v20 = vmul.f32 %v3461_v15, %v6129_v27  ;;  %v3285_v41 = vmul.f32 %v4708_v53, %v6209_v49 }
 0x233   :  { %v4288_v34 = vpop.f32.mrb[20].mxu1  ;;  %v4712_v42 = vpop.eup %4711  ;;  %4727 = vlog2.f32 %v3397_v6 }
 0x234   :  { %v6440_v3 = vmul.f32 0.008, %v4288_v34  ;;  %v2476_v12 = vpop.f32.mrb[21].mxu1  ;;  %v3590_v34 = vmul.f32 %v3469_v16, %v6140_v13  ;;  %v3457_v27 = vmul.f32 0.6931472, %v4712_v42 }
 0x235   :  { %v6443_v52 = vmul.f32 0.008, %v2476_v12  ;;  %v4289_v54 = vpop.f32.mrb[22].mxu1  ;;  %v4714_v24 = vpop.eup %4713 }
 0x236   :  { %6949 = vst [vmem:[#allocation26_spill] sm:$0xff] %v6440_v3  ;;  %v6445_v35 = vmul.f32 0.008, %v4289_v54  ;;  %v2479_v48 = vpop.f32.mrb[23].mxu1  ;;  %v2938_v40 = vsel %vm57_vm1, %v6440_v3, 0.0  ;;  %v3719_v54 = vsel %vm57_vm1, %v3586_v20, 0.0  ;;  %v4716_v31 = vpop.eup %4715  ;;  %v3584_v3 = vmul.f32 %v3457_v27, %v6132_v8 }
 0x237   :  { %6950 = vst [vmem:[#allocation27_spill] sm:$0xff] %v6443_v52  ;;  %v6450_v60 = vmul.f32 0.008, %v2479_v48  ;;  %2939 = vadd.xlane.f32.xlu0 %v2938_v40  ;;  %v2932_v46 = vsel %vm57_vm1, %v6443_v52, 0.0  ;;  %v3720_v48 = vsel %vm57_vm1, %v3590_v34, 0.0  ;;  %v4718_v13 = vpop.eup %4717  ;;  %v3281_v6 = vmul.f32 %v4716_v31, %v6225_v7  ;;  %v2850_v8 = vpop.xlane.xlu1 %2849 }
 0x238   :  { %6951 = vst [vmem:[#allocation28_spill] sm:$0xff] %v6445_v35  ;;  %2933 = vadd.xlane.f32.xlu1 %v2932_v46  ;;  %v2941_v12 = vsel %vm57_vm1, %v6445_v35, 0.0  ;;  %v3465_v22 = vmul.f32 0.6931472, %v4714_v24  ;;  %v3402_v52 = vadd.f32 1e-06, %v3285_v41  ;;  %v6462_v53 = vadd.f32 %v3720_v48, %v3719_v54  ;;  %v4720_v34 = vpop.eup %4719 }
 0x239   :  { %v2935_v15 = vsel %vm57_vm1, %v6450_v60, 0.0  ;;  %v3287_v35 = vmul.f32 %v4710_v21, %v6228_v18  ;;  %v3283_v42 = vmul.f32 %v4718_v13, %v6216_v11  ;;  %v3463_v27 = vmul.f32 0.6931472, %v4720_v34 }
 0x23a   :  { %v3091_v16 = vadd.f32 %v2935_v15, %v2932_v46  ;;  %v3588_v20 = vmul.f32 %v3465_v22, %v6168_v33  ;;  %4729 = vlog2.f32 %v3402_v52  ;;  %v3657_v46 = vsel %vm57_vm1, %v3584_v3, 0.0  ;;  %v4722_v54 = vpop.eup %4721 }
 0x23b   :  { %2924 = vadd.xlane.f32.xlu0 %v6410_v30  ;;  %v3403_v24 = vadd.f32 1e-06, %v3287_v35  ;;  %4731 = vrcp.f32 %v3212_v45  ;;  %v3400_v30 = vadd.f32 1e-06, %v3281_v6  ;;  %v3154_v33 = vmul.f32 %v6435_v2, %v2856_v61  ;;  %v4724_v22 = vpop.eup %4723 }
 0x23c   :  { %2942 = vadd.xlane.f32.xlu1 %v2941_v12  ;;  %v3092_v41 = vadd.f32 %v3091_v16, %v2938_v40  ;;  %v3658_v21 = vsel %vm57_vm1, %v3588_v20, 0.0  ;;  %v3471_v48 = vmul.f32 0.6931472, %v4722_v54  ;;  %v4726_v40 = vpop.eup %4725  ;;  %v3587_v3 = vmul.f32 %v3463_v27, %v6137_v28 }
 0x23d   :  { %v6475_v31 = vadd.f32 %v3658_v21, %v3657_v46  ;;  %4733 = vlog2.f32 %v3403_v24  ;;  %v3401_v45 = vadd.f32 1e-06, %v3283_v42  ;;  %v3293_v35 = vmul.f32 %v4724_v22, %v6246_v17  ;;  %v4728_v42 = vpop.eup %4727 }
 0x23e   :  { %v6473_v52 = vadd.f32 %v3092_v41, %v2941_v12  ;;  %4735 = vlog2.f32 %v3400_v30  ;;  %v3052_v13 = vadd.f32 %v3051_v55, %v6429_v9  ;;  %v3591_v16 = vmul.f32 %v3471_v48, %v6181_v4  ;;  %v2859_v55 = vpop.xlane.xlu1 %2858 }
 0x23f   :  { %2936 = vadd.xlane.f32.xlu0 %v2935_v15  ;;  %v3459_v61 = vmul.f32 0.6931472, %v4726_v40  ;;  %v3213_v12 = vadd.f32 1e-06, %v6433_v1  ;;  %v6952_v6 = vrot.slane %v6426_v0, 1  ;;  %4737 = vlog2.f32 %v3401_v45 }
 0x240   :  { %v2868_v20 = vpop.xlane.xlu0 %2867  ;;  %v3406_v15 = vadd.f32 1e-06, %v3293_v35  ;;  %v3215_v28 = vadd.f32 1e-06, %v6437_v43  ;;  %v3750_v41 = vsel %vm57_vm1, %v3587_v3, 0.0  ;;  %v3751_v9 = vsel %vm57_vm1, %v3591_v16, 0.0 }
 0x241   :  { %v6485_v34 = vadd.f32 %v6952_v6, %v6426_v0  ;;  %v3585_v4 = vmul.f32 %v3459_v61, %v6151_v44  ;;  %4739 = vrcp.f32 %v3213_v12  ;;  %v3752_v1 = vadd.f32 %v3751_v9, %v3750_v41 }
 0x242   :  { %v3467_v46 = vmul.f32 0.6931472, %v4728_v42  ;;  %4741 = vlog2.f32 %v3406_v15  ;;  %v3218_v24 = vadd.f32 1e-06, %v3154_v33  ;;  %v3058_v0 = vrot.slane %v6348_v29, 4 }
 0x243   :  { %4743 = vrcp.f32 %v3215_v28  ;;  %v3152_v54 = vmul.f32 %v6435_v2, %v2850_v8  ;;  %v3053_v43 = vrot.slane %v3052_v13, 1  ;;  %v3158_v22 = vmul.f32 %v6485_v34, %v2868_v20 }
 0x244   :  { %v2853_v21 = vpop.xlane.xlu0 %2852  ;;  %v4730_v27 = vpop.eup %4729  ;;  %v3589_v30 = vmul.f32 %v3467_v46, %v6171_v63  ;;  %4745 = vrcp.f32 %v3218_v24  ;;  %v3155_v44 = vmul.f32 %v6435_v2, %v2859_v55  ;;  %v3688_v40 = vsel %vm57_vm1, %v3585_v4, 0.0 }
 0x245   :  { %v4732_v48 = vpop.eup %4731  ;;  %v3477_v3 = vmul.f32 0.6931472, %v4730_v27  ;;  %v3216_v33 = vadd.f32 1e-06, %v3152_v54  ;;  %v3153_v45 = vmul.f32 %v6435_v2, %v2853_v21  ;;  %v3222_v16 = vadd.f32 1e-06, %v3158_v22  ;;  %v2862_v21 = vpop.xlane.xlu1 %2861 }
 0x246   :  { %v3689_v35 = vsel %vm57_vm1, %v3589_v30, 0.0  ;;  %v3289_v8 = vmul.f32 %v4732_v48, %v6230_v56  ;;  %v3219_v61 = vadd.f32 1e-06, %v3155_v44  ;;  %v6501_v20 = vadd.f32 %v3053_v43, %v3052_v13 }
 0x247   :  { %v4734_v12 = vpop.eup %4733  ;;  %v3690_v63 = vadd.f32 %v3689_v35, %v3688_v40  ;;  %v3594_v6 = vmul.f32 %v3477_v3, %v6209_v49  ;;  %4747 = vrcp.f32 %v3216_v33  ;;  %v3217_v41 = vadd.f32 1e-06, %v3153_v45 }
 0x248   :  { %v4736_v15 = vpop.eup %4735  ;;  %v3479_v28 = vmul.f32 0.6931472, %v4734_v12  ;;  %v3404_v42 = vadd.f32 1e-06, %v3289_v8  ;;  %4749 = vrcp.f32 %v3222_v16  ;;  %v6504_v2 = vadd.f32 %v3058_v0, %v6348_v29 }
 0x249   :  { %v3722_v4 = vsel %vm57_vm1, %v3594_v6, 0.0  ;;  %v3473_v55 = vmul.f32 0.6931472, %v4736_v15  ;;  %4751 = vrcp.f32 %v3219_v61  ;;  %v4738_v46 = vpop.eup %4737 }
 0x24a   :  { %v4296_v9 = vpop.f32.mrb[24].mxu0  ;;  %v3723_v13 = vadd.f32 %v3722_v4, %v6462_v53  ;;  %v3595_v54 = vmul.f32 %v3479_v28, %v6228_v18  ;;  %4753 = vlog2.f32 %v3404_v42  ;;  %v3475_v30 = vmul.f32 0.6931472, %v4738_v46 }
 0x24b   :  { %v6507_v24 = vmul.f32 0.008, %v4296_v9  ;;  %v2537_v49 = vpop.f32.mrb[25].mxu0  ;;  %v4740_v43 = vpop.eup %4739  ;;  %v3592_v0 = vmul.f32 %v3473_v55, %v6225_v7  ;;  %4755 = vrcp.f32 %v3217_v41 }
 0x24c   :  { %v6511_v27 = vmul.f32 0.008, %v2537_v49  ;;  %v4297_v29 = vpop.f32.mrb[26].mxu0  ;;  %v4742_v22 = vpop.eup %4741  ;;  %v3753_v53 = vsel %vm57_vm1, %v3595_v54, 0.0  ;;  %v3291_v18 = vmul.f32 %v4740_v43, %v6234_v59  ;;  %v3593_v12 = vmul.f32 %v3475_v30, %v6216_v11 }
 0x24d   :  { %v6514_v44 = vmul.f32 0.008, %v4297_v29  ;;  %v2540_v48 = vpop.f32.mrb[27].mxu0  ;;  %v2950_v40 = vsel %vm57_vm1, %v6507_v24, 0.0  ;;  %v4744_v3 = vpop.eup %4743  ;;  %v6524_v45 = vadd.f32 %v3753_v53, %v3752_v1  ;;  %v3660_v35 = vsel %vm57_vm1, %v3592_v0, 0.0 }
 0x24e   :  { %v6520_v33 = vmul.f32 0.008, %v2540_v48  ;;  %2951 = vadd.xlane.f32.xlu0 %v2950_v40  ;;  %v2944_v7 = vsel %vm57_vm1, %v6511_v27, 0.0  ;;  %v4746_v8 = vpop.eup %4745  ;;  %v3661_v61 = vadd.f32 %v3660_v35, %v6475_v31  ;;  %v3485_v6 = vmul.f32 0.6931472, %v4742_v22  ;;  %v2865_v41 = vpop.xlane.xlu0 %2864 }
 0x24f   :  { %2945 = vadd.xlane.f32.xlu1 %v2944_v7  ;;  %v2953_v16 = vsel %vm57_vm1, %v6514_v44, 0.0  ;;  %v3405_v28 = vadd.f32 1e-06, %v3291_v18  ;;  %v3295_v1 = vmul.f32 %v4744_v3, %v6252_v62  ;;  %v3301_v42 = vmul.f32 %v4746_v8, %v6266_v26  ;;  %v2871_v11 = vpop.xlane.xlu1 %2870 }
 0x250   :  { %v6533_v15 = vsel %vm57_vm1, %v6520_v33, 0.0  ;;  %v3691_v4 = vsel %vm57_vm1, %v3593_v12, 0.0  ;;  %v3598_v55 = vmul.f32 %v3485_v6, %v6246_v17  ;;  %v3156_v31 = vmul.f32 %v6485_v34, %v2862_v21 }
 0x251   :  { %v3100_v9 = vadd.f32 %v6533_v15, %v2944_v7  ;;  %v4748_v46 = vpop.eup %4747  ;;  %v6541_v49 = vadd.f32 %v3691_v4, %v3690_v63  ;;  %4757 = vlog2.f32 %v3405_v28  ;;  %v3407_v54 = vadd.f32 1e-06, %v3295_v1 }
 0x252   :  { %v3410_v43 = vadd.f32 1e-06, %v3301_v42  ;;  %v4750_v29 = vpop.eup %4749  ;;  %v3724_v30 = vsel %vm57_vm1, %v3598_v55, 0.0  ;;  %v3297_v22 = vmul.f32 %v4748_v46, %v6268_v23  ;;  %v3220_v48 = vadd.f32 1e-06, %v3156_v31 }
 0x253   :  { %2954 = vadd.xlane.f32.xlu1 %v2953_v16  ;;  %v3101_v0 = vadd.f32 %v3100_v9, %v2950_v40  ;;  %v4752_v53 = vpop.eup %4751  ;;  %v6545_v18 = vadd.f32 %v3724_v30, %v3723_v13  ;;  %4759 = vlog2.f32 %v3407_v54  ;;  %v3309_v17 = vmul.f32 %v4750_v29, %v6296_v50 }
 0x254   :  { %v3157_v63 = vmul.f32 %v6485_v34, %v2865_v41  ;;  %v4754_v21 = vpop.eup %4753  ;;  %4761 = vlog2.f32 %v3410_v43  ;;  %v3408_v7 = vadd.f32 1e-06, %v3297_v22  ;;  %v3303_v40 = vmul.f32 %v4752_v53, %v6278_v32 }
 0x255   :  { %v6549_v3 = vadd.f32 %v3101_v0, %v2953_v16  ;;  %v4756_v35 = vpop.eup %4755  ;;  %v3481_v8 = vmul.f32 0.6931472, %v4754_v21  ;;  %v3414_v12 = vadd.f32 1e-06, %v3309_v17  ;;  %4763 = vrcp.f32 %v3220_v48 }
 0x256   :  { %v3221_v6 = vadd.f32 1e-06, %v3157_v63  ;;  %v2880_v28 = vpop.xlane.xlu0 %2879  ;;  %v3060_v13 = vrot.slane %v6504_v2, 2  ;;  %4765 = vlog2.f32 %v3408_v7  ;;  %v3411_v1 = vadd.f32 1e-06, %v3303_v40 }
 0x257   :  { %v3299_v42 = vmul.f32 %v4756_v35, %v6274_v39  ;;  %v2874_v41 = vpop.xlane.xlu1 %2873  ;;  %v3596_v16 = vmul.f32 %v3481_v8, %v6230_v56  ;;  %4767 = vlog2.f32 %v3414_v12  ;;  %v3159_v9 = vmul.f32 %v6485_v34, %v2871_v11 }
 0x258   :  { %v3162_v4 = vmul.f32 %v6501_v20, %v2880_v28  ;;  %4769 = vlog2.f32 %v3411_v1  ;;  %v3160_v31 = vmul.f32 %v6501_v20, %v2874_v41  ;;  %v6560_v29 = vadd.f32 %v3060_v13, %v6504_v2 }
 0x259   :  { %v3409_v55 = vadd.f32 1e-06, %v3299_v42  ;;  %v3662_v46 = vsel %vm57_vm1, %v3596_v16, 0.0  ;;  %4771 = vrcp.f32 %v3221_v6  ;;  %v3223_v54 = vadd.f32 1e-06, %v3159_v9 }
 0x25a   :  { %v3226_v43 = vadd.f32 1e-06, %v3162_v4  ;;  %v6562_v0 = vadd.f32 %v3662_v46, %v3661_v61  ;;  %v3224_v56 = vadd.f32 1e-06, %v3160_v31  ;;  %v3067_v11 = vrot.slane %v6366_v19, 4 }
 0x25b   :  { %4773 = vlog2.f32 %v3409_v55  ;;  %v2883_v30 = vpop.xlane.xlu1 %2882  ;;  %v4758_v34 = vpop.eup %4757  ;;  %v3062_v2 = vrot.slane %v6560_v29, 1 }
 0x25c   :  { %4775 = vrcp.f32 %v3223_v54  ;;  %v3163_v22 = vmul.f32 %v6501_v20, %v2883_v30  ;;  %v3483_v48 = vmul.f32 0.6931472, %v4758_v34  ;;  %v6571_v12 = vadd.f32 %v3067_v11, %v6366_v19 }
 0x25d   :  { %4777 = vrcp.f32 %v3226_v43  ;;  %v4760_v53 = vpop.eup %4759 }
 0x25e   :  { %v4304_v17 = vpop.f32.mrb[24].mxu1  ;;  %4779 = vrcp.f32 %v3224_v56  ;;  %v3227_v63 = vadd.f32 1e-06, %v3163_v22  ;;  %v4762_v21 = vpop.eup %4761  ;;  %v3597_v40 = vmul.f32 %v3483_v48, %v6234_v59  ;;  %v3487_v35 = vmul.f32 0.6931472, %v4760_v53 }
 0x25f   :  { %v6567_v61 = vmul.f32 0.008, %v4304_v17  ;;  %v2598_v7 = vpop.f32.mrb[25].mxu1  ;;  %v4764_v8 = vpop.eup %4763  ;;  %v3493_v13 = vmul.f32 0.6931472, %v4762_v21 }
 0x260   :  { %v6573_v6 = vmul.f32 0.008, %v2598_v7  ;;  %v4305_v28 = vpop.f32.mrb[26].mxu1  ;;  %4781 = vrcp.f32 %v3227_v63  ;;  %v4766_v1 = vpop.eup %4765  ;;  %v3693_v9 = vsel %vm57_vm1, %v3597_v40, 0.0  ;;  %v3599_v59 = vmul.f32 %v3487_v35, %v6252_v62 }
 0x261   :  { %v6575_v42 = vmul.f32 0.008, %v4305_v28  ;;  %v2601_v41 = vpop.f32.mrb[27].mxu1  ;;  %v2962_v16 = vsel %vm57_vm1, %v6567_v61, 0.0  ;;  %v4768_v4 = vpop.eup %4767  ;;  %v3694_v31 = vadd.f32 %v3693_v9, %v6541_v49  ;;  %v3602_v46 = vmul.f32 %v3493_v13, %v6266_v26 }
 0x262   :  { %v6581_v55 = vmul.f32 0.008, %v2601_v41  ;;  %2963 = vadd.xlane.f32.xlu0 %v2962_v16  ;;  %v2956_v19 = vsel %vm57_vm1, %v6573_v6, 0.0  ;;  %v4770_v54 = vpop.eup %4769  ;;  %v3755_v56 = vsel %vm57_vm1, %v3599_v59, 0.0  ;;  %v3489_v30 = vmul.f32 0.6931472, %v4766_v1 }
 0x263   :  { %2957 = vadd.xlane.f32.xlu1 %v2956_v19  ;;  %v2965_v43 = vsel %vm57_vm1, %v6575_v42, 0.0  ;;  %v3501_v62 = vmul.f32 0.6931472, %v4768_v4  ;;  %v4772_v34 = vpop.eup %4771  ;;  %v3756_v22 = vadd.f32 %v3755_v56, %v6524_v45  ;;  %v3726_v48 = vsel %vm57_vm1, %v3602_v46, 0.0 }
 0x264   :  { %v2959_v11 = vsel %vm57_vm1, %v6581_v55, 0.0  ;;  %v3495_v49 = vmul.f32 0.6931472, %v4770_v54  ;;  %v3727_v17 = vadd.f32 %v3726_v48, %v6545_v18  ;;  %v3600_v63 = vmul.f32 %v3489_v30, %v6268_v23 }
 0x265   :  { %v4774_v53 = vpop.eup %4773  ;;  %v3109_v26 = vadd.f32 %v2959_v11, %v2956_v19  ;;  %v3606_v21 = vmul.f32 %v3501_v62, %v6296_v50  ;;  %v3305_v28 = vmul.f32 %v4764_v8, %v6298_v51  ;;  %v3307_v45 = vmul.f32 %v4772_v34, %v6304_v47 }
 0x266   :  { %v4776_v7 = vpop.eup %4775  ;;  %2948 = vadd.xlane.f32.xlu0 %v6533_v15  ;;  %v3603_v40 = vmul.f32 %v3495_v49, %v6278_v32  ;;  %v3491_v35 = vmul.f32 0.6931472, %v4774_v53  ;;  %v3664_v41 = vsel %vm57_vm1, %v3600_v63, 0.0  ;;  %v3063_v62 = vadd.f32 %v3062_v2, %v6560_v29 }
 0x267   :  { %v4778_v13 = vpop.eup %4777  ;;  %2966 = vadd.xlane.f32.xlu1 %v2965_v43  ;;  %v3110_v1 = vadd.f32 %v3109_v26, %v2962_v16  ;;  %v3728_v18 = vsel %vm57_vm1, %v3606_v21, 0.0  ;;  %v3311_v23 = vmul.f32 %v4776_v7, %v6302_v10  ;;  %v6605_v9 = vadd.f32 %v3664_v41, %v6562_v0 }
 0x268   :  { %v4780_v50 = vpop.eup %4779  ;;  %v6607_v15 = vadd.f32 %v3728_v18, %v3727_v17  ;;  %v3757_v32 = vsel %vm57_vm1, %v3603_v40, 0.0  ;;  %v3601_v8 = vmul.f32 %v3491_v35, %v6274_v39  ;;  %v3412_v16 = vadd.f32 1e-06, %v3305_v28 }
 0x269   :  { %v6611_v59 = vadd.f32 %v3110_v1, %v2965_v43  ;;  %v6613_v4 = vadd.f32 %v3757_v32, %v3756_v22  ;;  %v3413_v19 = vadd.f32 1e-06, %v3307_v45  ;;  %v3415_v56 = vadd.f32 1e-06, %v3311_v23 }
 0x26a   :  { %v4782_v46 = vpop.eup %4781  ;;  %2960 = vadd.xlane.f32.xlu0 %v2959_v11  ;;  %v3695_v54 = vsel %vm57_vm1, %v3601_v8, 0.0  ;;  %v3317_v0 = vmul.f32 %v4778_v13, %v6314_v38  ;;  %v3313_v30 = vmul.f32 %v4780_v50, %v6316_v37  ;;  %4783 = vlog2.f32 %v3412_v16 }
 0x26b   :  { %v6621_v39 = vadd.f32 %v3695_v54, %v3694_v31  ;;  %v3319_v43 = vmul.f32 %v4782_v46, %v6320_v5  ;;  %4785 = vlog2.f32 %v3413_v19  ;;  %v3069_v48 = vrot.slane %v6571_v12, 2 }
 0x26c   :  { %v3418_v34 = vadd.f32 1e-06, %v3317_v0  ;;  %v3416_v22 = vadd.f32 1e-06, %v3313_v30  ;;  %v2892_v11 = vpop.xlane.xlu0 %2891  ;;  %4787 = vlog2.f32 %v3415_v56 }
 0x26d   :  { %v3166_v49 = vmul.f32 %v3063_v62, %v2892_v11  ;;  %v3419_v53 = vadd.f32 1e-06, %v3319_v43  ;;  %v2886_v26 = vpop.xlane.xlu1 %2885  ;;  %v6626_v31 = vadd.f32 %v3069_v48, %v6571_v12  ;;  %v3076_v12 = vrot.slane %v6390_v58, 4 }
 0x26e   :  { %4789 = vlog2.f32 %v3418_v34  ;;  %v3164_v17 = vmul.f32 %v3063_v62, %v2886_v26 }
 0x26f   :  { %4791 = vlog2.f32 %v3416_v22  ;;  %v3230_v63 = vadd.f32 1e-06, %v3166_v49  ;;  %v3071_v18 = vrot.slane %v6626_v31, 1 }
 0x270   :  { %4793 = vlog2.f32 %v3419_v53  ;;  %v2877_v29 = vpop.xlane.xlu0 %2876  ;;  %v3228_v2 = vadd.f32 1e-06, %v3164_v17 }
 0x271   :  { %4795 = vrcp.f32 %v3230_v63  ;;  %v3161_v21 = vmul.f32 %v6501_v20, %v2877_v29  ;;  %v2895_v7 = vpop.xlane.xlu1 %2894 }
 0x272   :  { %4797 = vrcp.f32 %v3228_v2  ;;  %v3167_v40 = vmul.f32 %v3063_v62, %v2895_v7 }
 0x273   :  { %v3225_v35 = vadd.f32 1e-06, %v3161_v21 }
 0x274   :  { %v4312_v28 = vpop.f32.mrb[28].mxu0  ;;  %v3231_v45 = vadd.f32 1e-06, %v3167_v40  ;;  %v4784_v13 = vpop.eup %4783 }
 0x275   :  { %v6629_v1 = vmul.f32 0.008, %v4312_v28  ;;  %v2659_v41 = vpop.f32.mrb[29].mxu0  ;;  %4799 = vrcp.f32 %v3225_v35  ;;  %v4786_v23 = vpop.eup %4785  ;;  %v3497_v20 = vmul.f32 0.6931472, %v4784_v13 }
 0x276   :  { %v6633_v50 = vmul.f32 0.008, %v2659_v41  ;;  %v4313_v32 = vpop.f32.mrb[30].mxu0  ;;  %v2889_v8 = vpop.xlane.xlu0 %2888  ;;  %4801 = vrcp.f32 %v3231_v45  ;;  %v3499_v56 = vmul.f32 0.6931472, %v4786_v23 }
 0x277   :  { %v4788_v16 = vpop.eup %4787  ;;  %v6635_v19 = vmul.f32 0.008, %v4313_v32  ;;  %v2662_v46 = vpop.f32.mrb[31].mxu0  ;;  %v2974_v54 = vsel %vm57_vm1, %v6629_v1, 0.0  ;;  %v3604_v34 = vmul.f32 %v3497_v20, %v6298_v51  ;;  %v3165_v26 = vmul.f32 %v3063_v62, %v2889_v8 }
 0x278   :  { %v4790_v0 = vpop.eup %4789  ;;  %v6639_v30 = vmul.f32 0.008, %v2662_v46  ;;  %2975 = vadd.xlane.f32.xlu0 %v2974_v54  ;;  %v2968_v43 = vsel %vm57_vm1, %v6633_v50, 0.0  ;;  %v3503_v22 = vmul.f32 0.6931472, %v4788_v16  ;;  %v3605_v49 = vmul.f32 %v3499_v56, %v6304_v47 }
 0x279   :  { %v4792_v11 = vpop.eup %4791  ;;  %2969 = vadd.xlane.f32.xlu1 %v2968_v43  ;;  %v2977_v48 = vsel %vm57_vm1, %v6635_v19, 0.0  ;;  %v3509_v53 = vmul.f32 0.6931472, %v4790_v0  ;;  %v3666_v29 = vsel %vm57_vm1, %v3604_v34, 0.0  ;;  %v3229_v0 = vadd.f32 1e-06, %v3165_v26 }
 0x27a   :  { %v4794_v17 = vpop.eup %4793  ;;  %v2971_v63 = vsel %vm57_vm1, %v6639_v30, 0.0  ;;  %v3607_v2 = vmul.f32 %v3503_v22, %v6302_v10  ;;  %v3505_v21 = vmul.f32 0.6931472, %v4792_v11  ;;  %v3667_v40 = vadd.f32 %v3666_v29, %v6605_v9 }
 0x27b   :  { %v4796_v51 = vpop.eup %4795  ;;  %v3118_v7 = vadd.f32 %v2971_v63, %v2968_v43  ;;  %v3697_v35 = vsel %vm57_vm1, %v3605_v49, 0.0  ;;  %v3610_v28 = vmul.f32 %v3509_v53, %v6314_v38  ;;  %v3511_v32 = vmul.f32 0.6931472, %v4794_v17 }
 0x27c   :  { %v4798_v47 = vpop.eup %4797  ;;  %2972 = vadd.xlane.f32.xlu0 %v2971_v63  ;;  %v6655_v62 = vadd.f32 %v3697_v35, %v6621_v39  ;;  %v3759_v45 = vsel %vm57_vm1, %v3607_v2, 0.0  ;;  %v3608_v13 = vmul.f32 %v3505_v21, %v6316_v37  ;;  %v3325_v10 = vmul.f32 %v4796_v51, %v6332_v14 }
 0x27d   :  { %v3119_v41 = vadd.f32 %v3118_v7, %v2974_v54  ;;  %2978 = vadd.xlane.f32.xlu1 %v2977_v48  ;;  %v3760_v23 = vadd.f32 %v3759_v45, %v6613_v4  ;;  %v3730_v9 = vsel %vm57_vm1, %v3610_v28, 0.0  ;;  %v3321_v16 = vmul.f32 %v4798_v47, %v6334_v36 }
 0x27e   :  { %v4320_v20 = vpop.f32.mrb[28].mxu1  ;;  %v6663_v38 = vadd.f32 %v3730_v9, %v6607_v15  ;;  %v3668_v39 = vsel %vm57_vm1, %v3608_v13, 0.0  ;;  %v3422_v8 = vadd.f32 1e-06, %v3325_v10  ;;  %v3611_v4 = vmul.f32 %v3511_v32, %v6320_v5 }
 0x27f   :  { %v4800_v46 = vpop.eup %4799  ;;  %v2720_v37 = vpop.f32.mrb[29].mxu1  ;;  %v6667_v56 = vadd.f32 %v3119_v41, %v2977_v48  ;;  %v6669_v54 = vadd.f32 %v3668_v39, %v3667_v40  ;;  %v3420_v11 = vadd.f32 1e-06, %v3321_v16  ;;  %v6675_v49 = vmul.f32 0.008, %v4320_v20 }
 0x280   :  { %v4802_v43 = vpop.eup %4801  ;;  %v6672_v34 = vmul.f32 0.008, %v2720_v37  ;;  %v4321_v22 = vpop.f32.mrb[30].mxu1  ;;  %4803 = vlog2.f32 %v3422_v8  ;;  %v3315_v15 = vmul.f32 %v4800_v46, %v6322_v57  ;;  %v3761_v48 = vsel %vm57_vm1, %v3611_v4, 0.0 }
 0x281   :  { %v6677_v53 = vmul.f32 0.008, %v4321_v22  ;;  %v2723_v17 = vpop.f32.mrb[31].mxu1  ;;  %v6683_v5 = vadd.f32 %v3071_v18, %v6626_v31  ;;  %v6689_v29 = vadd.f32 %v3761_v48, %v3760_v23  ;;  %4805 = vlog2.f32 %v3420_v11  ;;  %v6953_v48 = vld [vmem:[#allocation12_spill] sm:$0xff] }
 0x282   :  { %v6685_v26 = vmul.f32 0.008, %v2723_v17  ;;  %v2980_v63 = vsel %vm57_vm1, %v6672_v34, 0.0  ;;  %v3417_v2 = vadd.f32 1e-06, %v3315_v15  ;;  %v2904_v21 = vpop.xlane.xlu0 %2903  ;;  %v3327_v51 = vmul.f32 %v4802_v43, %v6338_v25 }
 0x283   :  { %2981 = vadd.xlane.f32.xlu1 %v2980_v63  ;;  %v2898_v7 = vpop.xlane.xlu1 %2897  ;;  %v3170_v31 = vmul.f32 %v6683_v5, %v2904_v21  ;;  %v3077_v35 = vadd.f32 %v3076_v12, %v6390_v58  ;;  %v2986_v45 = vsel %vm57_vm1, %v6675_v49, 0.0  ;;  %v2989_v13 = vsel %vm57_vm1, %v6677_v53, 0.0 }
 0x284   :  { %v2983_v40 = vsel %vm57_vm1, %v6685_v26, 0.0  ;;  %4807 = vlog2.f32 %v3417_v2  ;;  %v3168_v18 = vmul.f32 %v6683_v5, %v2898_v7  ;;  %v3423_v47 = vadd.f32 1e-06, %v3327_v51 }
 0x285   :  { %2984 = vadd.xlane.f32.xlu0 %v2983_v40  ;;  %v3127_v28 = vadd.f32 %v2983_v40, %v2980_v63  ;;  %4809 = vrcp.f32 %v3229_v0  ;;  %v3234_v10 = vadd.f32 1e-06, %v3170_v31  ;;  %v3078_v20 = vrot.slane %v3077_v35, 2 }
 0x286   :  { %v3232_v41 = vadd.f32 1e-06, %v3168_v18  ;;  %4811 = vlog2.f32 %v3423_v47 }
 0x287   :  { %v3128_v23 = vadd.f32 %v3127_v28, %v2986_v45  ;;  %2990 = vadd.xlane.f32.xlu1 %v2989_v13  ;;  %v2907_v9 = vpop.xlane.xlu1 %2906  ;;  %4813 = vrcp.f32 %v3234_v10  ;;  %v3079_v4 = vadd.f32 %v3078_v20, %v3077_v35 }
 0x288   :  { %v3171_v32 = vmul.f32 %v6683_v5, %v2907_v9  ;;  %4815 = vrcp.f32 %v3232_v41 }
 0x289   :  { %2987 = vadd.xlane.f32.xlu0 %v2986_v45  ;;  %v6704_v58 = vadd.f32 %v3128_v23, %v2989_v13  ;;  %v3080_v7 = vrot.slane %v3079_v4, 1  ;;  %v6955_v13 = vld [vmem:[#allocation14_spill] sm:$0xff] }
 0x28a   :  { %v4804_v12 = vpop.eup %4803  ;;  %v3235_v39 = vadd.f32 1e-06, %v3171_v32 }
 0x28b   :  { %v3517_v8 = vmul.f32 0.6931472, %v4804_v12  ;;  %v4806_v16 = vpop.eup %4805  ;;  %v3081_v23 = vadd.f32 %v3080_v7, %v3079_v4  ;;  %v6956_v12 = vld [vmem:[#allocation25_spill] sm:$0xff] }
 0x28c   :  { %4817 = vrcp.f32 %v3235_v39  ;;  %v3513_v0 = vmul.f32 0.6931472, %v4806_v16  ;;  %v3085_v20 = vrot.slane %v6956_v12, 4 }
 0x28d   :  { %v3614_v46 = vmul.f32 %v3517_v8, %v6332_v14 }
 0x28e   :  { %v4808_v37 = vpop.eup %4807  ;;  %v3612_v17 = vmul.f32 %v3513_v0, %v6334_v36  ;;  %v3086_v0 = vadd.f32 %v3085_v20, %v6956_v12 }
 0x28f   :  { %v4810_v43 = vpop.eup %4809  ;;  %v3732_v22 = vsel %vm57_vm1, %v3614_v46, 0.0  ;;  %v3507_v15 = vmul.f32 0.6931472, %v4808_v37 }
 0x290   :  { %v6709_v11 = vadd.f32 %v3732_v22, %v6663_v38  ;;  %v3323_v63 = vmul.f32 %v4810_v43, %v6953_v48  ;;  %v4812_v2 = vpop.eup %4811  ;;  %v3670_v14 = vsel %vm57_vm1, %v3612_v17, 0.0  ;;  %v6954_v38 = vld [vmem:[#allocation13_spill] sm:$0xff] }
 0x291   :  { %v3609_v21 = vmul.f32 %v3507_v15, %v6322_v57  ;;  %v4814_v51 = vpop.eup %4813  ;;  %v3519_v31 = vmul.f32 0.6931472, %v4812_v2  ;;  %v3671_v28 = vadd.f32 %v3670_v14, %v6669_v54  ;;  %v6957_v54 = vld [vmem:[#allocation15_spill] sm:$0xff]  ;;  %v3087_v2 = vrot.slane %v3086_v0, 2 }
 0x292   :  { %v3421_v40 = vadd.f32 1e-06, %v3323_v63  ;;  %v4816_v18 = vpop.eup %4815  ;;  %v3333_v47 = vmul.f32 %v4814_v51, %v6954_v38 }
 0x293   :  { %v3699_v35 = vsel %vm57_vm1, %v3609_v21, 0.0  ;;  %v3615_v45 = vmul.f32 %v3519_v31, %v6338_v25  ;;  %v3329_v57 = vmul.f32 %v4816_v18, %v6955_v13 }
 0x294   :  { %v3700_v36 = vadd.f32 %v3699_v35, %v6655_v62  ;;  %4819 = vlog2.f32 %v3421_v40  ;;  %v3426_v10 = vadd.f32 1e-06, %v3333_v47 }
 0x295   :  { %v3763_v9 = vsel %vm57_vm1, %v3615_v45, 0.0  ;;  %v3424_v32 = vadd.f32 1e-06, %v3329_v57  ;;  %v3088_v45 = vadd.f32 %v3087_v2, %v3086_v0 }
 0x296   :  { %v4818_v41 = vpop.eup %4817  ;;  %v3764_v39 = vadd.f32 %v3763_v9, %v6689_v29  ;;  %4821 = vlog2.f32 %v3426_v10 }
 0x297   :  { %v3335_v8 = vmul.f32 %v4818_v41, %v6957_v54  ;;  %4823 = vlog2.f32 %v3424_v32 }
 0x298   :  { %v2916_v62 = vpop.xlane.xlu0 %2915 }
 0x299   :  { %v3174_v16 = vmul.f32 %v3081_v23, %v2916_v62  ;;  %v3427_v46 = vadd.f32 1e-06, %v3335_v8  ;;  %v2910_v25 = vpop.xlane.xlu1 %2909 }
 0x29a   :  { %v3172_v37 = vmul.f32 %v3081_v23, %v2910_v25 }
 0x29b   :  { %v3238_v43 = vadd.f32 1e-06, %v3174_v16  ;;  %4825 = vlog2.f32 %v3427_v46  ;;  %v3089_v16 = vrot.slane %v3088_v45, 1 }
 0x29c   :  { %v2901_v4 = vpop.xlane.xlu0 %2900  ;;  %v3236_v22 = vadd.f32 1e-06, %v3172_v37  ;;  %v6958_v37 = vld [vmem:[#allocation17_spill] sm:$0xff] }
 0x29d   :  { %4827 = vrcp.f32 %v3238_v43  ;;  %v3169_v15 = vmul.f32 %v6683_v5, %v2901_v4  ;;  %v2919_v17 = vpop.xlane.xlu1 %2918 }
 0x29e   :  { %v4820_v29 = vpop.eup %4819  ;;  %4829 = vrcp.f32 %v3236_v22  ;;  %v3175_v63 = vmul.f32 %v3081_v23, %v2919_v17 }
 0x29f   :  { %v3515_v21 = vmul.f32 0.6931472, %v4820_v29  ;;  %v3233_v51 = vadd.f32 1e-06, %v3169_v15  ;;  %v6742_v29 = vadd.f32 %v3089_v16, %v3088_v45  ;;  %v6962_v45 = vld [vmem:[#allocation20_spill] sm:$0xff] }
 0x2a0   :  { %v2913_v7 = vpop.xlane.xlu0 %2912  ;;  %v3239_v14 = vadd.f32 1e-06, %v3175_v63  ;;  %v4822_v40 = vpop.eup %4821  ;;  %v6960_v63 = vld [vmem:[#allocation16_spill] sm:$0xff] }
 0x2a1   :  { %v3613_v31 = vmul.f32 %v3515_v21, %v6953_v48  ;;  %4831 = vrcp.f32 %v3233_v51  ;;  %v3173_v18 = vmul.f32 %v3081_v23, %v2913_v7  ;;  %v4824_v35 = vpop.eup %4823  ;;  %v3525_v47 = vmul.f32 0.6931472, %v4822_v40  ;;  %v6961_v21 = vld [vmem:[#allocation19_spill] sm:$0xff] }
 0x2a2   :  { %4833 = vrcp.f32 %v3239_v14  ;;  %v3521_v57 = vmul.f32 0.6931472, %v4824_v35 }
 0x2a3   :  { %v3701_v5 = vsel %vm57_vm1, %v3613_v31, 0.0  ;;  %v3237_v10 = vadd.f32 1e-06, %v3173_v18  ;;  %v3618_v9 = vmul.f32 %v3525_v47, %v6954_v38  ;;  %v6959_v38 = vld [vmem:[#allocation18_spill] sm:$0xff]  ;;  %v5020_v47 = vmov 0.0  }
 0x2a4   :  { %v6729_v41 = vadd.f32 %v3701_v5, %v3700_v36  ;;  %v3616_v12 = vmul.f32 %v3521_v57, %v6955_v13  ;;  %59 = vst.msk [vmem:[#allocation2 + $0x8] sm:$0xff] %vm57_vm1, %v5020_v47  ;;  %58 = vst.msk [vmem:[#allocation2] sm:$0xff] %vm57_vm1, %v5020_v47 }
 0x2a5   :  { %v4826_v32 = vpop.eup %4825  ;;  %4835 = vrcp.f32 %v3237_v10  ;;  %v3734_v48 = vsel %vm57_vm1, %v3618_v9, 0.0  ;;  %60 = vst.msk [vmem:[#allocation2 + $0x10] sm:$0xff] %vm57_vm1, %v5020_v47  ;;  %61 = vst.msk [vmem:[#allocation2 + $0x18] sm:$0xff] %vm57_vm1, %v5020_v47 }
 0x2a6   :  { %v3527_v20 = vmul.f32 0.6931472, %v4826_v32  ;;  %v3735_v8 = vadd.f32 %v3734_v48, %v6709_v11  ;;  %v3672_v62 = vsel %vm57_vm1, %v3616_v12, 0.0  ;;  %62 = vst [vmem:[#allocation8] sm:$0x1] %v5020_v47 }
 0x2a7   :  { %v4828_v23 = vpop.eup %4827  ;;  %v3673_v25 = vadd.f32 %v3672_v62, %v3671_v28 }
 0x2a8   :  { %v4830_v46 = vpop.eup %4829  ;;  %v3341_v36 = vmul.f32 %v4828_v23, %v6958_v37  ;;  %v3619_v0 = vmul.f32 %v3527_v20, %v6957_v54 }
 0x2a9   :  { %v3337_v43 = vmul.f32 %v4830_v46, %v6959_v38 }
 0x2aa   :  { %v3430_v4 = vadd.f32 1e-06, %v3341_v36  ;;  %v3765_v13 = vsel %vm57_vm1, %v3619_v0, 0.0 }
 0x2ab   :  { %v4832_v22 = vpop.eup %4831  ;;  %v6740_v15 = vadd.f32 %v3765_v13, %v3764_v39  ;;  %v3428_v17 = vadd.f32 1e-06, %v3337_v43  ;;  %v3094_v39 = vrot.slane %v6473_v52, 4 }
 0x2ac   :  { %v4834_v11 = vpop.eup %4833  ;;  %4837 = vlog2.f32 %v3430_v4  ;;  %v3331_v2 = vmul.f32 %v4832_v22, %v6960_v63  ;;  %v2928_v28 = vpop.xlane.xlu0 %2927 }
 0x2ad   :  { %4839 = vlog2.f32 %v3428_v17  ;;  %v3343_v51 = vmul.f32 %v4834_v11, %v6961_v21  ;;  %v3178_v54 = vmul.f32 %v6742_v29, %v2928_v28  ;;  %v2922_v7 = vpop.xlane.xlu1 %2921  ;;  %v3095_v12 = vadd.f32 %v3094_v39, %v6473_v52 }
 0x2ae   :  { %v3425_v14 = vadd.f32 1e-06, %v3331_v2  ;;  %v3176_v40 = vmul.f32 %v6742_v29, %v2922_v7 }
 0x2af   :  { %v4836_v31 = vpop.eup %4835  ;;  %v3431_v18 = vadd.f32 1e-06, %v3343_v51  ;;  %v3242_v35 = vadd.f32 1e-06, %v3178_v54  ;;  %v3096_v62 = vrot.slane %v3095_v12, 2 }
 0x2b0   :  { %4841 = vlog2.f32 %v3425_v14  ;;  %v3339_v5 = vmul.f32 %v4836_v31, %v6962_v45  ;;  %v3240_v57 = vadd.f32 1e-06, %v3176_v40  ;;  %v6963_v14 = vld [vmem:[#allocation21_spill] sm:$0xff] }
 0x2b1   :  { %4843 = vlog2.f32 %v3431_v18  ;;  %v2931_v10 = vpop.xlane.xlu1 %2930  ;;  %v3097_v13 = vadd.f32 %v3096_v62, %v3095_v12 }
 0x2b2   :  { %v3429_v9 = vadd.f32 1e-06, %v3339_v5  ;;  %4845 = vrcp.f32 %v3242_v35  ;;  %v3179_v32 = vmul.f32 %v6742_v29, %v2931_v10 }
 0x2b3   :  { %4847 = vrcp.f32 %v3240_v57  ;;  %v3098_v18 = vrot.slane %v3097_v13, 1 }
 0x2b4   :  { %4849 = vlog2.f32 %v3429_v9  ;;  %v3243_v48 = vadd.f32 1e-06, %v3179_v32  ;;  %v6965_v32 = vld [vmem:[#allocation23_spill] sm:$0xff] }
 0x2b5   :  { %v3099_v12 = vadd.f32 %v3098_v18, %v3097_v13 }
 0x2b6   :  { %v4838_v20 = vpop.eup %4837  ;;  %4851 = vrcp.f32 %v3243_v48 }
 0x2b7   :  { %v4840_v23 = vpop.eup %4839  ;;  %v3533_v16 = vmul.f32 0.6931472, %v4838_v20 }
 0x2b8   :  { %v3529_v46 = vmul.f32 0.6931472, %v4840_v23 }
 0x2b9   :  { %v3622_v36 = vmul.f32 %v3533_v16, %v6958_v37 }
 0x2ba   :  { %v4842_v0 = vpop.eup %4841  ;;  %v3620_v43 = vmul.f32 %v3529_v46, %v6959_v38  ;;  %v6964_v38 = vld [vmem:[#allocation22_spill] sm:$0xff]  ;;  %v3103_v46 = vrot.slane %v6549_v3, 4 }
 0x2bb   :  { %v4844_v4 = vpop.eup %4843  ;;  %v3736_v22 = vsel %vm57_vm1, %v3622_v36, 0.0  ;;  %v3523_v17 = vmul.f32 0.6931472, %v4842_v0 }
 0x2bc   :  { %v4846_v52 = vpop.eup %4845  ;;  %v3737_v11 = vadd.f32 %v3736_v22, %v3735_v8  ;;  %v3674_v2 = vsel %vm57_vm1, %v3620_v43, 0.0  ;;  %v3535_v28 = vmul.f32 0.6931472, %v4844_v4  ;;  %v3104_v13 = vadd.f32 %v3103_v46, %v6549_v3 }
 0x2bd   :  { %v4848_v51 = vpop.eup %4847  ;;  %v3617_v54 = vmul.f32 %v3523_v17, %v6960_v63  ;;  %v3675_v7 = vadd.f32 %v3674_v2, %v3673_v25  ;;  %v3349_v40 = vmul.f32 %v4846_v52, %v6963_v14 }
 0x2be   :  { %v4850_v37 = vpop.eup %4849  ;;  %v3623_v31 = vmul.f32 %v3535_v28, %v6961_v21  ;;  %v3345_v39 = vmul.f32 %v4848_v51, %v6964_v38 }
 0x2bf   :  { %v3703_v35 = vsel %vm57_vm1, %v3617_v54, 0.0  ;;  %v3531_v47 = vmul.f32 0.6931472, %v4850_v37  ;;  %v3434_v5 = vadd.f32 1e-06, %v3349_v40 }
 0x2c0   :  { %v4852_v8 = vpop.eup %4851  ;;  %v3704_v57 = vadd.f32 %v3703_v35, %v6729_v41  ;;  %v3767_v10 = vsel %vm57_vm1, %v3623_v31, 0.0  ;;  %v3432_v9 = vadd.f32 1e-06, %v3345_v39  ;;  %v3105_v31 = vrot.slane %v3104_v13, 2 }
 0x2c1   :  { %v3621_v25 = vmul.f32 %v3531_v47, %v6962_v45  ;;  %v3768_v63 = vadd.f32 %v3767_v10, %v6740_v15  ;;  %4853 = vlog2.f32 %v3434_v5  ;;  %v3351_v21 = vmul.f32 %v4852_v8, %v6965_v32 }
 0x2c2   :  { %4855 = vlog2.f32 %v3432_v9 }
 0x2c3   :  { %v3705_v48 = vsel %vm57_vm1, %v3621_v25, 0.0  ;;  %v3435_v20 = vadd.f32 1e-06, %v3351_v21 }
 0x2c4   :  { %v6771_v23 = vadd.f32 %v3705_v48, %v3704_v57  ;;  %v2940_v62 = vpop.xlane.xlu0 %2939  ;;  %v3106_v57 = vadd.f32 %v3105_v31, %v3104_v13 }
 0x2c5   :  { %v3182_v16 = vmul.f32 %v3099_v12, %v2940_v62  ;;  %4857 = vlog2.f32 %v3435_v20  ;;  %v2934_v41 = vpop.xlane.xlu1 %2933 }
 0x2c6   :  { %v3180_v36 = vmul.f32 %v3099_v12, %v2934_v41  ;;  %v3107_v41 = vrot.slane %v3106_v57, 1 }
 0x2c7   :  { %v3246_v45 = vadd.f32 1e-06, %v3182_v16 }
 0x2c8   :  { %v2925_v0 = vpop.xlane.xlu0 %2924  ;;  %v3244_v15 = vadd.f32 1e-06, %v3180_v36 }
 0x2c9   :  { %4859 = vrcp.f32 %v3246_v45  ;;  %v3177_v43 = vmul.f32 %v6742_v29, %v2925_v0  ;;  %v2943_v4 = vpop.xlane.xlu1 %2942  ;;  %v6968_v45 = vld [vmem:[#allocation24_spill] sm:$0xff] }
 0x2ca   :  { %4861 = vrcp.f32 %v3244_v15  ;;  %v3183_v22 = vmul.f32 %v3099_v12, %v2943_v4  ;;  %v3112_v15 = vrot.slane %v6611_v59, 4  ;;  %v6787_v4 = vadd.f32 %v3107_v41, %v3106_v57 }
 0x2cb   :  { %v4854_v17 = vpop.eup %4853  ;;  %v3241_v52 = vadd.f32 1e-06, %v3177_v43 }
 0x2cc   :  { %v4856_v2 = vpop.eup %4855  ;;  %v3541_v28 = vmul.f32 0.6931472, %v4854_v17  ;;  %v2937_v51 = vpop.xlane.xlu0 %2936  ;;  %v3247_v54 = vadd.f32 1e-06, %v3183_v22 }
 0x2cd   :  { %v3537_v40 = vmul.f32 0.6931472, %v4856_v2  ;;  %4863 = vrcp.f32 %v3241_v52  ;;  %v3181_v37 = vmul.f32 %v3099_v12, %v2937_v51  ;;  %v6966_v12 = vld [vmem:[#allocation26_spill] sm:$0xff]  ;;  %v3113_v51 = vadd.f32 %v3112_v15, %v6611_v59 }
 0x2ce   :  { %v3626_v39 = vmul.f32 %v3541_v28, %v6963_v14  ;;  %4865 = vrcp.f32 %v3247_v54 }
 0x2cf   :  { %v4858_v18 = vpop.eup %4857  ;;  %v3624_v29 = vmul.f32 %v3537_v40, %v6964_v38  ;;  %v3245_v35 = vadd.f32 1e-06, %v3181_v37  ;;  %v6967_v38 = vld [vmem:[#allocation27_spill] sm:$0xff] }
 0x2d0   :  { %v3738_v3 = vsel %vm57_vm1, %v3626_v39, 0.0  ;;  %v3543_v47 = vmul.f32 0.6931472, %v4858_v18 }
 0x2d1   :  { %v3739_v5 = vadd.f32 %v3738_v3, %v3737_v11  ;;  %v3676_v8 = vsel %vm57_vm1, %v3624_v29, 0.0  ;;  %4867 = vrcp.f32 %v3245_v35  ;;  %v3114_v29 = vrot.slane %v3113_v51, 2 }
 0x2d2   :  { %v3677_v10 = vadd.f32 %v3676_v8, %v3675_v7  ;;  %v3627_v9 = vmul.f32 %v3543_v47, %v6965_v32  ;;  %v6969_v7 = vld [vmem:[#allocation28_spill] sm:$0xff] }
 0x2d3   :  { %v4860_v25 = vpop.eup %4859  ;;  %v3115_v59 = vadd.f32 %v3114_v29, %v3113_v51 }
 0x2d4   :  { %v4862_v21 = vpop.eup %4861  ;;  %v3357_v14 = vmul.f32 %v4860_v25, %v6966_v12  ;;  %v3769_v48 = vsel %vm57_vm1, %v3627_v9, 0.0 }
 0x2d5   :  { %v3770_v20 = vadd.f32 %v3769_v48, %v3768_v63  ;;  %v3353_v62 = vmul.f32 %v4862_v21, %v6967_v38 }
 0x2d6   :  { %v3438_v16 = vadd.f32 1e-06, %v3357_v14 }
 0x2d7   :  { %v4864_v46 = vpop.eup %4863  ;;  %v3436_v11 = vadd.f32 1e-06, %v3353_v62 }
 0x2d8   :  { %v4866_v36 = vpop.eup %4865  ;;  %4869 = vlog2.f32 %v3438_v16  ;;  %v3347_v0 = vmul.f32 %v4864_v46, %v6968_v45 }
 0x2d9   :  { %4871 = vlog2.f32 %v3436_v11  ;;  %v3359_v32 = vmul.f32 %v4866_v36, %v6969_v7 }
 0x2da   :  { %v3433_v43 = vadd.f32 1e-06, %v3347_v0 }
 0x2db   :  { %v4868_v13 = vpop.eup %4867  ;;  %v3439_v63 = vadd.f32 1e-06, %v3359_v32  ;;  %v2952_v22 = vpop.xlane.xlu0 %2951 }
 0x2dc   :  { %4873 = vlog2.f32 %v3433_v43  ;;  %v3355_v17 = vmul.f32 %v4868_v13, %v6450_v60  ;;  %v3186_v52 = vmul.f32 %v6787_v4, %v2952_v22  ;;  %v2946_v2 = vpop.xlane.xlu1 %2945 }
 0x2dd   :  { %4875 = vlog2.f32 %v3439_v63  ;;  %v3184_v28 = vmul.f32 %v6787_v4, %v2946_v2  ;;  %v3121_v2 = vrot.slane %v6667_v56, 4 }
 0x2de   :  { %v3437_v54 = vadd.f32 1e-06, %v3355_v17  ;;  %v3250_v40 = vadd.f32 1e-06, %v3186_v52 }
 0x2df   :  { %v3248_v37 = vadd.f32 1e-06, %v3184_v28 }
 0x2e0   :  { %4877 = vlog2.f32 %v3437_v54  ;;  %v2955_v31 = vpop.xlane.xlu1 %2954 }
 0x2e1   :  { %4879 = vrcp.f32 %v3250_v40  ;;  %v3187_v39 = vmul.f32 %v6787_v4, %v2955_v31 }
 0x2e2   :  { %v4870_v18 = vpop.eup %4869  ;;  %4881 = vrcp.f32 %v3248_v37 }
 0x2e3   :  { %v4872_v35 = vpop.eup %4871  ;;  %v3549_v3 = vmul.f32 0.6931472, %v4870_v18  ;;  %v3251_v47 = vadd.f32 1e-06, %v3187_v39 }
 0x2e4   :  { %v3545_v8 = vmul.f32 0.6931472, %v4872_v35  ;;  %v3122_v35 = vadd.f32 %v3121_v2, %v6667_v56 }
 0x2e5   :  { %v3630_v57 = vmul.f32 %v3549_v3, %v6966_v12  ;;  %4883 = vrcp.f32 %v3251_v47  ;;  %v3116_v12 = vrot.slane %v3115_v59, 1 }
 0x2e6   :  { %v4874_v9 = vpop.eup %4873  ;;  %v3628_v25 = vmul.f32 %v3545_v8, %v6967_v38 }
 0x2e7   :  { %v4876_v21 = vpop.eup %4875  ;;  %v3740_v14 = vsel %vm57_vm1, %v3630_v57, 0.0  ;;  %v3539_v48 = vmul.f32 0.6931472, %v4874_v9  ;;  %v3117_v17 = vadd.f32 %v3116_v12, %v3115_v59 }
 0x2e8   :  { %v6797_v62 = vadd.f32 %v3740_v14, %v3739_v5  ;;  %v3678_v16 = vsel %vm57_vm1, %v3628_v25, 0.0  ;;  %v3551_v41 = vmul.f32 0.6931472, %v4876_v21  ;;  %v3123_v25 = vrot.slane %v3122_v35, 2 }
 0x2e9   :  { %v3625_v46 = vmul.f32 %v3539_v48, %v6968_v45  ;;  %v6801_v11 = vadd.f32 %v3678_v16, %v3677_v10 }
 0x2ea   :  { %v4878_v36 = vpop.eup %4877  ;;  %v3631_v0 = vmul.f32 %v3551_v41, %v6969_v7  ;;  %v3130_v41 = vrot.slane %v6704_v58, 4 }
 0x2eb   :  { %v4880_v32 = vpop.eup %4879  ;;  %v3707_v38 = vsel %vm57_vm1, %v3625_v46, 0.0  ;;  %v3547_v15 = vmul.f32 0.6931472, %v4878_v36  ;;  %v3124_v46 = vadd.f32 %v3123_v25, %v3122_v35 }
 0x2ec   :  { %v4882_v43 = vpop.eup %4881  ;;  %v3708_v13 = vadd.f32 %v3707_v38, %v6771_v23  ;;  %v3771_v5 = vsel %vm57_vm1, %v3631_v0, 0.0  ;;  %v3365_v63 = vmul.f32 %v4880_v32, %v6507_v24  ;;  %v3131_v38 = vadd.f32 %v3130_v41, %v6704_v58 }
 0x2ed   :  { %v3629_v22 = vmul.f32 %v3547_v15, %v6450_v60  ;;  %v6809_v45 = vadd.f32 %v3771_v5, %v3770_v20  ;;  %v3361_v10 = vmul.f32 %v4882_v43, %v6511_v27  ;;  %v3125_v5 = vrot.slane %v3124_v46, 1 }
 0x2ee   :  { %v3442_v52 = vadd.f32 1e-06, %v3365_v63  ;;  %v3132_v2 = vrot.slane %v3131_v38, 2 }
 0x2ef   :  { %v4884_v7 = vpop.eup %4883  ;;  %v3709_v28 = vsel %vm57_vm1, %v3629_v22, 0.0  ;;  %v3440_v51 = vadd.f32 1e-06, %v3361_v10  ;;  %v2964_v54 = vpop.xlane.xlu0 %2963 }
 0x2f0   :  { %v6814_v23 = vadd.f32 %v3709_v28, %v3708_v13  ;;  %4885 = vlog2.f32 %v3442_v52  ;;  %v3190_v40 = vmul.f32 %v3117_v17, %v2964_v54  ;;  %v3367_v37 = vmul.f32 %v4884_v7, %v6514_v44  ;;  %v2958_v60 = vpop.xlane.xlu1 %2957 }
 0x2f1   :  { %4887 = vlog2.f32 %v3440_v51  ;;  %v3188_v20 = vmul.f32 %v3117_v17, %v2958_v60  ;;  %v3126_v54 = vadd.f32 %v3125_v5, %v3124_v46 }
 0x2f2   :  { %v3254_v31 = vadd.f32 1e-06, %v3190_v40  ;;  %v3443_v39 = vadd.f32 1e-06, %v3367_v37 }
 0x2f3   :  { %v2949_v18 = vpop.xlane.xlu0 %2948  ;;  %v3252_v29 = vadd.f32 1e-06, %v3188_v20 }
 0x2f4   :  { %4889 = vrcp.f32 %v3254_v31  ;;  %v3185_v3 = vmul.f32 %v6787_v4, %v2949_v18  ;;  %v2967_v47 = vpop.xlane.xlu1 %2966  ;;  %v3133_v18 = vadd.f32 %v3132_v2, %v3131_v38 }
 0x2f5   :  { %4891 = vlog2.f32 %v3443_v39  ;;  %v3191_v8 = vmul.f32 %v3117_v17, %v2967_v47 }
 0x2f6   :  { %v3249_v57 = vadd.f32 1e-06, %v3185_v3  ;;  %4893 = vrcp.f32 %v3252_v29 }
 0x2f7   :  { %v2961_v9 = vpop.xlane.xlu0 %2960  ;;  %v3255_v59 = vadd.f32 1e-06, %v3191_v8 }
 0x2f8   :  { %4895 = vrcp.f32 %v3249_v57  ;;  %v3189_v21 = vmul.f32 %v3117_v17, %v2961_v9 }
 0x2f9   :  { %4897 = vrcp.f32 %v3255_v59  ;;  %v3134_v59 = vrot.slane %v3133_v18, 1 }
 0x2fa   :  { %v4886_v14 = vpop.eup %4885  ;;  %v3253_v48 = vadd.f32 1e-06, %v3189_v21 }
 0x2fb   :  { %v4888_v16 = vpop.eup %4887  ;;  %v3557_v56 = vmul.f32 0.6931472, %v4886_v14 }
 0x2fc   :  { %v3553_v36 = vmul.f32 0.6931472, %v4888_v16  ;;  %4899 = vrcp.f32 %v3253_v48 }
 0x2fd   :  { %v3634_v4 = vmul.f32 %v3557_v56, %v6507_v24  ;;  %v3135_v56 = vadd.f32 %v3134_v59, %v3133_v18 }
 0x2fe   :  { %v4890_v12 = vpop.eup %4889  ;;  %v3632_v0 = vmul.f32 %v3553_v36, %v6511_v27 }
 0x2ff   :  { %v4892_v32 = vpop.eup %4891  ;;  %v3742_v15 = vsel %vm57_vm1, %v3634_v4, 0.0  ;;  %v3373_v43 = vmul.f32 %v4890_v12, %v6567_v61 }
 0x300   :  { %v4894_v13 = vpop.eup %4893  ;;  %v3743_v63 = vadd.f32 %v3742_v15, %v6797_v62  ;;  %v3680_v22 = vsel %vm57_vm1, %v3632_v0, 0.0  ;;  %v3559_v10 = vmul.f32 0.6931472, %v4892_v32 }
 0x301   :  { %v6828_v17 = vadd.f32 %v3680_v22, %v6801_v11  ;;  %v3446_v24 = vadd.f32 1e-06, %v3373_v43  ;;  %v3369_v27 = vmul.f32 %v4894_v13, %v6573_v6 }
 0x302   :  { %v4896_v52 = vpop.eup %4895  ;;  %v3635_v58 = vmul.f32 %v3559_v10, %v6514_v44 }
 0x303   :  { %v4898_v7 = vpop.eup %4897  ;;  %4901 = vlog2.f32 %v3446_v24  ;;  %v3363_v28 = vmul.f32 %v4896_v52, %v6520_v33  ;;  %v3444_v51 = vadd.f32 1e-06, %v3369_v27 }
 0x304   :  { %v3773_v62 = vsel %vm57_vm1, %v3635_v58, 0.0  ;;  %v3375_v40 = vmul.f32 %v4898_v7, %v6575_v42 }
 0x305   :  { %v6836_v11 = vadd.f32 %v3773_v62, %v6809_v45  ;;  %v3441_v37 = vadd.f32 1e-06, %v3363_v28  ;;  %4903 = vlog2.f32 %v3444_v51  ;;  %v2976_v60 = vpop.xlane.xlu0 %2975 }
 0x306   :  { %v4900_v20 = vpop.eup %4899  ;;  %v3447_v31 = vadd.f32 1e-06, %v3375_v40  ;;  %v3194_v44 = vmul.f32 %v3126_v54, %v2976_v60  ;;  %v2970_v39 = vpop.xlane.xlu1 %2969 }
 0x307   :  { %4905 = vlog2.f32 %v3441_v37  ;;  %v3371_v29 = vmul.f32 %v4900_v20, %v6581_v55  ;;  %v3192_v35 = vmul.f32 %v3126_v54, %v2970_v39 }
 0x308   :  { %4907 = vlog2.f32 %v3447_v31  ;;  %v3258_v3 = vadd.f32 1e-06, %v3194_v44 }
 0x309   :  { %v3445_v47 = vadd.f32 1e-06, %v3371_v29  ;;  %v3256_v8 = vadd.f32 1e-06, %v3192_v35  ;;  %v2973_v57 = vpop.xlane.xlu0 %2972 }
 0x30a   :  { %4909 = vrcp.f32 %v3258_v3  ;;  %v3193_v45 = vmul.f32 %v3126_v54, %v2973_v57  ;;  %v2979_v9 = vpop.xlane.xlu1 %2978 }
 0x30b   :  { %4911 = vlog2.f32 %v3445_v47  ;;  %v3195_v25 = vmul.f32 %v3126_v54, %v2979_v9 }
 0x30c   :  { %4913 = vrcp.f32 %v3256_v8  ;;  %v3257_v21 = vadd.f32 1e-06, %v3193_v45 }
 0x30d   :  { %v4902_v14 = vpop.eup %4901  ;;  %v3259_v48 = vadd.f32 1e-06, %v3195_v25 }
 0x30e   :  { %v3565_v16 = vmul.f32 0.6931472, %v4902_v14  ;;  %4915 = vrcp.f32 %v3257_v21 }
 0x30f   :  { %v4904_v41 = vpop.eup %4903  ;;  %4917 = vrcp.f32 %v3259_v48 }
 0x310   :  { %v3638_v46 = vmul.f32 %v3565_v16, %v6567_v61  ;;  %v3561_v36 = vmul.f32 0.6931472, %v4904_v41  ;;  %v2982_v4 = vpop.xlane.xlu1 %2981 }
 0x311   :  { %v4906_v12 = vpop.eup %4905  ;;  %v3196_v0 = vmul.f32 %v3135_v56, %v2982_v4 }
 0x312   :  { %v4908_v32 = vpop.eup %4907  ;;  %v3744_v38 = vsel %vm57_vm1, %v3638_v46, 0.0  ;;  %v3555_v15 = vmul.f32 0.6931472, %v4906_v12  ;;  %v3636_v43 = vmul.f32 %v3561_v36, %v6573_v6  ;;  %v2985_v13 = vpop.xlane.xlu0 %2984 }
 0x313   :  { %v6842_v5 = vadd.f32 %v3744_v38, %v3743_v63  ;;  %v3567_v22 = vmul.f32 0.6931472, %v4908_v32  ;;  %v3197_v10 = vmul.f32 %v3135_v56, %v2985_v13  ;;  %v3260_v24 = vadd.f32 1e-06, %v3196_v0 }
 0x314   :  { %v4910_v27 = vpop.eup %4909  ;;  %v3633_v52 = vmul.f32 %v3555_v15, %v6520_v33  ;;  %v3682_v61 = vsel %vm57_vm1, %v3636_v43, 0.0  ;;  %v2991_v58 = vpop.xlane.xlu1 %2990 }
 0x315   :  { %v4912_v7 = vpop.eup %4911  ;;  %v3683_v2 = vadd.f32 %v3682_v61, %v6828_v17  ;;  %v3639_v28 = vmul.f32 %v3567_v22, %v6575_v42  ;;  %v3381_v51 = vmul.f32 %v4910_v27, %v6629_v1  ;;  %v3261_v6 = vadd.f32 1e-06, %v3197_v10 }
 0x316   :  { %v4914_v54 = vpop.eup %4913  ;;  %v3711_v63 = vsel %vm57_vm1, %v3633_v52, 0.0  ;;  %v3563_v62 = vmul.f32 0.6931472, %v4912_v7  ;;  %4919 = vrcp.f32 %v3260_v24  ;;  %v2988_v40 = vpop.xlane.xlu0 %2987  ;;  %v3199_v37 = vmul.f32 %v3135_v56, %v2991_v58 }
 0x317   :  { %v3712_v33 = vadd.f32 %v3711_v63, %v6814_v23  ;;  %v3775_v60 = vsel %vm57_vm1, %v3639_v28, 0.0  ;;  %v3450_v20 = vadd.f32 1e-06, %v3381_v51  ;;  %v3377_v31 = vmul.f32 %v4914_v54, %v6633_v50 }
 0x318   :  { %v4916_v17 = vpop.eup %4915  ;;  %v3637_v42 = vmul.f32 %v3563_v62, %v6581_v55  ;;  %v3776_v44 = vadd.f32 %v3775_v60, %v6836_v11  ;;  %4921 = vrcp.f32 %v3261_v6  ;;  %v3198_v39 = vmul.f32 %v3135_v56, %v2988_v40 }
 0x319   :  { %v4918_v18 = vpop.eup %4917  ;;  %4923 = vlog2.f32 %v3450_v20  ;;  %v3448_v29 = vadd.f32 1e-06, %v3377_v31  ;;  %v3379_v35 = vmul.f32 %v4916_v17, %v6639_v30  ;;  %v3263_v45 = vadd.f32 1e-06, %v3199_v37 }
 0x31a   :  { %v3713_v3 = vsel %vm57_vm1, %v3637_v42, 0.0  ;;  %v3383_v23 = vmul.f32 %v4918_v18, %v6635_v19  ;;  %v3262_v47 = vadd.f32 1e-06, %v3198_v39  ;;  %v3655_v18 = vld [vmem:[#allocation2 + $0x10] sm:$0xff] }
 0x31b   :  { %v3714_v8 = vadd.f32 %v3713_v3, %v3712_v33  ;;  %4925 = vlog2.f32 %v3448_v29  ;;  %v3449_v57 = vadd.f32 1e-06, %v3379_v35  ;;  %v3654_v33 = vld [vmem:[#allocation2 + $0x8] sm:$0xff] }
 0x31c   :  { %v3451_v9 = vadd.f32 1e-06, %v3383_v23  ;;  %4927 = vrcp.f32 %v3262_v47  ;;  %v3656_v23 = vld [vmem:[#allocation2 + $0x18] sm:$0xff] }
 0x31d   :  { %4929 = vlog2.f32 %v3449_v57 }
 0x31e   :  { %4931 = vlog2.f32 %v3451_v9 }
 0x31f   :  { %4933 = vrcp.f32 %v3263_v45 }
 0x320   :  { %v4920_v55 = vpop.eup %4919 }
 0x321   :  { %v3385_v11 = vmul.f32 %v4920_v55, %v6672_v34 }
 0x322   :  { %v4922_v59 = vpop.eup %4921 }
 0x323   :  { %v4924_v25 = vpop.eup %4923  ;;  %v3387_v21 = vmul.f32 %v4922_v59, %v6685_v26  ;;  %v3452_v14 = vadd.f32 1e-06, %v3385_v11 }
 0x324   :  { %v3573_v48 = vmul.f32 0.6931472, %v4924_v25 }
 0x325   :  { %v4926_v16 = vpop.eup %4925  ;;  %v3453_v41 = vadd.f32 1e-06, %v3387_v21  ;;  %4935 = vlog2.f32 %v3452_v14 }
 0x326   :  { %v4928_v56 = vpop.eup %4927  ;;  %v3642_v46 = vmul.f32 %v3573_v48, %v6629_v1  ;;  %v3569_v36 = vmul.f32 0.6931472, %v4926_v16 }
 0x327   :  { %v4930_v4 = vpop.eup %4929  ;;  %4937 = vlog2.f32 %v3453_v41  ;;  %v3389_v12 = vmul.f32 %v4928_v56, %v6675_v49 }
 0x328   :  { %v4932_v0 = vpop.eup %4931  ;;  %v3746_v32 = vsel %vm57_vm1, %v3642_v46, 0.0  ;;  %v3640_v38 = vmul.f32 %v3569_v36, %v6633_v50  ;;  %v3571_v15 = vmul.f32 0.6931472, %v4930_v4 }
 0x329   :  { %v4934_v43 = vpop.eup %4933  ;;  %v3747_v13 = vadd.f32 %v3746_v32, %v6842_v5  ;;  %v3575_v22 = vmul.f32 0.6931472, %v4932_v0  ;;  %v3454_v10 = vadd.f32 1e-06, %v3389_v12 }
 0x32a   :  { %v3684_v24 = vsel %vm57_vm1, %v3640_v38, 0.0  ;;  %v3641_v1 = vmul.f32 %v3571_v15, %v6639_v30  ;;  %v3391_v27 = vmul.f32 %v4934_v43, %v6677_v53 }
 0x32b   :  { %v3685_v52 = vadd.f32 %v3684_v24, %v3683_v2  ;;  %v3643_v61 = vmul.f32 %v3575_v22, %v6635_v19  ;;  %4939 = vlog2.f32 %v3454_v10  ;;  %v3653_v2 = vld [vmem:[#allocation2] sm:$0xff] }
 0x32c   :  { %v3715_v58 = vsel %vm57_vm1, %v3641_v1, 0.0  ;;  %v3455_v7 = vadd.f32 1e-06, %v3391_v27 }
 0x32d   :  { %v3716_v50 = vadd.f32 %v3715_v58, %v3714_v8  ;;  %v3777_v28 = vsel %vm57_vm1, %v3643_v61, 0.0 }
 0x32e   :  { %v3778_v51 = vadd.f32 %v3777_v28, %v3776_v44  ;;  %4941 = vlog2.f32 %v3455_v7 }
 0x32f   :  { %v4936_v5 = vpop.eup %4935 }
 0x330   :  { %v3577_v6 = vmul.f32 0.6931472, %v4936_v5 }
 0x331   :  { %v4938_v54 = vpop.eup %4937 }
 0x332   :  { %v3579_v63 = vmul.f32 0.6931472, %v4938_v54  ;;  %v3644_v30 = vmul.f32 %v3577_v6, %v6672_v34 }
 0x334   :  { %v3645_v62 = vmul.f32 %v3579_v63, %v6685_v26  ;;  %v3686_v19 = vsel %vm57_vm1, %v3644_v30, 0.0 }
 0x335   :  { %v4940_v40 = vpop.eup %4939  ;;  %v3687_v37 = vadd.f32 %v3686_v19, %v3685_v52 }
 0x336   :  { %v3717_v60 = vsel %vm57_vm1, %v3645_v62, 0.0  ;;  %v3581_v20 = vmul.f32 0.6931472, %v4940_v40 }
 0x337   :  { %v3718_v31 = vadd.f32 %v3717_v60, %v3716_v50  ;;  %v3781_v17 = vadd.f32 %v3687_v37, %v3653_v2 }
 0x338   :  { %v4942_v42 = vpop.eup %4941  ;;  %v3646_v44 = vmul.f32 %v3581_v20, %v6675_v49 }
 0x339   :  { %v3782_v39 = vadd.f32 %v3718_v31, %v3654_v33  ;;  %3785 = vst.msk [vmem:[#allocation2] sm:$0xff] %vm57_vm1, %v3781_v17  ;;  %v3583_v34 = vmul.f32 0.6931472, %v4942_v42 }
 0x33a   :  { %v3748_v26 = vsel %vm57_vm1, %v3646_v44, 0.0 }
 0x33b   :  { %3786 = vst.msk [vmem:[#allocation2 + $0x8] sm:$0xff] %vm57_vm1, %v3782_v39  ;;  %v3749_v29 = vadd.f32 %v3748_v26, %v3747_v13  ;;  %v3647_v35 = vmul.f32 %v3583_v34, %v6677_v53 }
 0x33d   :  { %v3783_v3 = vadd.f32 %v3749_v29, %v3655_v18  ;;  %v3779_v47 = vsel %vm57_vm1, %v3647_v35, 0.0 }
 0x33e   :  { %v3780_v8 = vadd.f32 %v3779_v47, %v3778_v51 }
 0x33f   :  { %3787 = vst.msk [vmem:[#allocation2 + $0x10] sm:$0xff] %vm57_vm1, %v3783_v3 }
 0x340   :  { %v3784_v49 = vadd.f32 %v3780_v8, %v3656_v23  ;;  %v4060_v57 = vld [vmem:[#allocation2] sm:$0xff] }
 0x341   :  { %v4064_v45 = vsel %vm57_vm1, %v4060_v57, 0.0 }
 0x342   :  { %3788 = vst.msk [vmem:[#allocation2 + $0x18] sm:$0xff] %vm57_vm1, %v3784_v49  ;;  %v4061_v9 = vld [vmem:[#allocation2 + $0x8] sm:$0xff] }
 0x343   :  { %v4065_v55 = vsel %vm57_vm1, %v4061_v9, 0.0 }
 0x344   :  { %v4066_v11 = vadd.f32 %v4065_v55, %v4064_v45 }
 0x346   :  { %v4062_v59 = vld [vmem:[#allocation2 + $0x10] sm:$0xff] }
 0x347   :  { %v4067_v53 = vsel %vm57_vm1, %v4062_v59, 0.0 }
 0x348   :  { %v4068_v25 = vadd.f32 %v4067_v53, %v4066_v11 }
 0x349   :  { %v4063_v21 = vld [vmem:[#allocation2 + $0x18] sm:$0xff] }
 0x34a   :  { %v4069_v14 = vsel %vm57_vm1, %v4063_v21, 0.0 }
 0x34b   :  { %v4070_v48 = vadd.f32 %v4069_v14, %v4068_v25 }
 0x34d   :  { %4071 = vadd.xlane.f32.xlu0 %v4070_v48 }
 0x3da   :  { %v4072_v16 = vpop.xlane.xlu0 %4071 }
 0x3db   :  { %v4073_v41 = vrot.slane %v4072_v16, 4 }
 0x3dd   :  { %v4074_v56 = vadd.f32 %v4073_v41, %v4072_v16 }
 0x3df   :  { %v4075_v46 = vrot.slane %v4074_v56, 2 }
 0x3e1   :  { %v4076_v36 = vadd.f32 %v4075_v46, %v4074_v56 }
 0x3e3   :  { %v4077_v4 = vrot.slane %v4076_v36, 1 }
 0x3e5   :  { %v4078_v12 = vadd.f32 %v4077_v4, %v4076_v36 }
 0x3e7   :  { %4354 = vpush %v4078_v12 }
 0x418   :  { %s4355_s7 = spop %4354 }
 0x419   :  { %v4080_v0 = vstv %s4355_s7 }
 0x41a   :  { %4081 = vst [vmem:[#allocation8] sm:$0x1] %v4080_v0 }
 0x41b   :  { %4998 = shalt.err (!%p4995_p6)
}
 0x41c   :  { %s4999_s12 = scalar_lea.hbm %s6901_s2, 16 }
 0x41d   :  { %p5000_p7 = scmp.ne.s32.totalorder %s6901_s2, %s4999_s12  ;;  %p5003_p8 = scmp.lt.u32.totalorder %s4999_s12, %s6901_s2 }
 0x41f   :  { %p5005_p9 = pnand %p5003_p8, %p5000_p7 }
 0x421   :  { %5008 = shalt.err (!%p5005_p9)
}
 0x422   :  { %4091 = dma.vmem_to_hbm [thread:$0]  %s4089_s6, 16, %s6901_s2, [#allocation5]  }
 0x423   :  { %5013 = dma.done.wait [#allocation5], 16  }
 0x424   :  { %5014 = vsyncadd [#allocation5], 4294967280 }
 0x425   :  { %4095 = vsyncpa [#allocation4], 1 }
 0x426   :  { %4096 = vsyncpa [#allocation7], 1 }
 0x427   :  { %4097 = vsyncpa [#allocation5], 1 }

</bundles_post_ra>
